<compile_context>
chip_gen: v5e
topology: v5e:2x2
jax: 0.10.0
libtpu: 0.0.40
codegen_flags: <defaults>
</compile_context>

<pallas_src>
import math

import jax
import jax.numpy as jnp
from jax.experimental import pallas as pl
from jax.experimental.pallas import tpu as pltpu

NEIGH = 9          # 3x3 superpixel candidate neighbourhood (SSN convention)
_NEG_INF = -1e30   # additive mask for off-grid candidate slots


# ---------------------------------------------------------------------------
# Pallas kernels
# ---------------------------------------------------------------------------
def _sims_pool_kernel(x_ref, cand_ref, wf_ref):
    """Pass A: SSN soft-assignment softmax + per-cell soft pooling of [x | 1]."""
    x = x_ref[...]            # (G, P, C+1); last channel is constant 1.0
    cs = cand_ref[...]        # (G, 9, C+1); [2*centroid | -||centroid||^2 + mask]
    # sims logits = 2*x.cand - ||cand||^2 (+ -inf on off-grid slots); the -||cand||^2
    # term and the mask ride in the candidates' extra column (x's ones column).
    slog = jnp.einsum('gpc,gnc->gpn', x, cs, preferred_element_type=jnp.float32)
    m = jnp.max(slog, axis=-1, keepdims=True)
    e = jnp.exp(slog - m)                       # exactly 0 on masked slots (underflow)
    sims = e / (jnp.sum(e, axis=-1, keepdims=True) + 1e-12)      # (G, P, 9)
    # Pooling partials: sims^T @ [x | 1] -> [pooled x | sims mass] per candidate slot.
    wf_ref[...] = jnp.einsum('gpn,gpc->gnc', sims, x,
                             preferred_element_type=jnp.float32)  # (G, 9, C+1)


def _attn_kernel(x_ref, cand_ref, vc_ref, o_ref):
    """Pass B: fused sims * attention softmax over 9 superpixel summaries + value mix."""
    x = x_ref[...]            # (G, P, C+1); last channel is constant 1.0
    cw = cand_ref[...]        # (G, 9, C+1); W_q/b_q/scale/sims-logits/mask all folded in
    vc = vc_ref[...]          # (G, 9, C)   candidate superpixel V summaries
    logits = jnp.einsum('gpc,gnc->gpn', x, cw, preferred_element_type=jnp.float32)
    m = jnp.max(logits, axis=-1, keepdims=True)
    e = jnp.exp(logits - m)                     # 0 on masked slots
    w = e / (jnp.sum(e, axis=-1, keepdims=True) + 1e-8)          # (G, P, 9)
    o_ref[...] = jnp.einsum('gpn,gnc->gpc', w, vc,
                            preferred_element_type=jnp.float32)  # (G, P, C)


# ---------------------------------------------------------------------------
# pallas_call wrappers
# ---------------------------------------------------------------------------
def _compiler_params():
    # 48 MiB scoped VMEM: safe on v5e/v6e (128 MiB physical) and within v7x's 64 MiB/TC.
    return pltpu.CompilerParams(dimension_semantics=("parallel",),
                                vmem_limit_bytes=48 * 1024 * 1024)


def _pallas_sims_pool(x_aug, cand_s, tc):
    pnc, p, c1 = x_aug.shape
    return pl.pallas_call(
        _sims_pool_kernel,
        out_shape=jax.ShapeDtypeStruct((pnc, NEIGH, c1), jnp.float32),
        grid=(pnc // tc,),
        in_specs=[
            pl.BlockSpec((tc, p, c1), lambda i: (i, 0, 0)),
            pl.BlockSpec((tc, NEIGH, c1), lambda i: (i, 0, 0)),
        ],
        out_specs=pl.BlockSpec((tc, NEIGH, c1), lambda i: (i, 0, 0)),
        compiler_params=_compiler_params(),
    )(x_aug, cand_s)


def _pallas_attn(x_aug, cand_w, vc, tc):
    pnc, p, c1 = x_aug.shape
    c = vc.shape[-1]
    return pl.pallas_call(
        _attn_kernel,
        out_shape=jax.ShapeDtypeStruct((pnc, p, c), jnp.float32),
        grid=(pnc // tc,),
        in_specs=[
            pl.BlockSpec((tc, p, c1), lambda i: (i, 0, 0)),
            pl.BlockSpec((tc, NEIGH, c1), lambda i: (i, 0, 0)),
            pl.BlockSpec((tc, NEIGH, c), lambda i: (i, 0, 0)),
        ],
        out_specs=pl.BlockSpec((tc, p, c), lambda i: (i, 0, 0)),
        compiler_params=_compiler_params(),
    )(x_aug, cand_w, vc)


# ---------------------------------------------------------------------------
# JAX glue (cell-grid ops only — no pixel-level intermediates)
# ---------------------------------------------------------------------------
def _round_up(x, m):
    return ((x + m - 1) // m) * m


def _choose_tile(nc, want):
    """Sublane-aligned tile of cells; NC will be zero-padded up to a multiple of it."""
    want = max(8, (want // 8) * 8)
    return want if nc > want else _round_up(max(nc, 1), 8)


def _gather_neighbors(grid_feat):
    """(B, nH, nW, C) -> ((B, nH, nW, 9, C), (nH, nW, 9) bool) via pad + 9 static slices."""
    B, nH, nW, C = grid_feat.shape
    padded = jnp.pad(grid_feat, ((0, 0), (1, 1), (1, 1), (0, 0)))
    ih, iw = jnp.arange(nH), jnp.arange(nW)
    slabs, valid = [], []
    for di in (-1, 0, 1):
        for dj in (-1, 0, 1):
            slabs.append(padded[:, 1 + di:1 + di + nH, 1 + dj:1 + dj + nW, :])
            ok_h = (ih + di >= 0) & (ih + di < nH)
            ok_w = (iw + dj >= 0) & (iw + dj < nW)
            valid.append(ok_h[:, None] & ok_w[None, :])
    cand = jnp.stack(slabs, axis=3)                  # (B, nH, nW, 9, C)
    mask = jnp.stack(valid, axis=-1)                 # (nH, nW, 9) bool
    return cand, mask


def _pool_finalize(wf, B, nH, nW, C):
    """3x3 shift-add of per-cell pooled [x|mass] partials into the superpixel grid."""
    wf = wf.reshape(B, nH, nW, NEIGH, C + 1)
    acc = jnp.zeros((B, nH, nW, C + 1), jnp.float32)
    for di in (-1, 0, 1):
        for dj in (-1, 0, 1):
            k = 3 * (di + 1) + (dj + 1)
            dst_r = slice(max(di, 0), nH + min(di, 0))
            src_r = slice(max(-di, 0), nH + min(-di, 0))
            dst_c = slice(max(dj, 0), nW + min(dj, 0))
            src_c = slice(max(-dj, 0), nW + min(-dj, 0))
            acc = acc.at[:, dst_r, dst_c, :].add(wf[:, src_r, src_c, k, :])
    return acc[..., :C] / (acc[..., C:] + 1e-8)      # (B, nH, nW, C) pooled x


def init_sna_params(key, channels):
    k1, _ = jax.random.split(key)
    w_qkv = (jax.random.normal(k1, (channels, 3 * channels), jnp.float32)
             / math.sqrt(channels))
    b_qkv = jnp.zeros((3 * channels,), jnp.float32)
    return {"w_qkv": w_qkv, "b_qkv": b_qkv}


def sna_forward(x_nchw, params, stride=4, tile_cells=512):
    """Forward pass of SNA. x_nchw: (B, C, H, W) -> (B, C, H, W)."""
    B, C, H, W = x_nchw.shape
    assert H % stride == 0 and W % stride == 0
    nH, nW = H // stride, W // stride
    P = stride * stride
    NC = B * nH * nW                      # total number of grid cells (superpixels)
    tc = _choose_tile(NC, tile_cells)
    pNC = _round_up(NC, tc)
    pad = pNC - NC
    scale = 1.0 / math.sqrt(C)

    w_qkv, b_qkv = params["w_qkv"], params["b_qkv"]
    w_q, w_k, w_v = w_qkv[:, :C], w_qkv[:, C:2 * C], w_qkv[:, 2 * C:]
    b_q, b_k, b_v = b_qkv[:C], b_qkv[C:2 * C], b_qkv[2 * C:]

    # NCHW -> cell-blocked (NC, P, C+1): the S*S pixels of one grid cell are contiguous.
    # A constant ones-column is appended so per-(cell,neighbour) biases/masks can ride
    # in the candidates' extra column (bias add becomes part of the MXU contraction).
    x = jnp.transpose(x_nchw, (0, 2, 3, 1)).astype(jnp.float32)           # NHWC
    x_cells = (x.reshape(B, nH, stride, nW, stride, C)
                .transpose(0, 1, 3, 2, 4, 5))                             # (B,nH,nW,S,S,C)
    x_cb = x_cells.reshape(NC, P, C)
    x_aug = jnp.concatenate([x_cb, jnp.ones((NC, P, 1), jnp.float32)], axis=-1)

    # sp_sims support data (all cell-level, tiny): centroids + 3x3 neighbour candidates.
    centroids = x_cells.mean(axis=(3, 4))                                 # (B,nH,nW,C)
    cand, valid = _gather_neighbors(centroids)                            # (B,nH,nW,9,C)
    mask_bias = jnp.broadcast_to(jnp.where(valid, 0.0, _NEG_INF)[None],
                                 (B, nH, nW, NEIGH))
    c2 = jnp.sum(cand * cand, axis=-1)                                    # (B,nH,nW,9)
    sims_bias = mask_bias - c2                                            # (B,nH,nW,9)

    cand_s = jnp.concatenate([2.0 * cand, sims_bias[..., None]], axis=-1)
    cand_s = cand_s.reshape(NC, NEIGH, C + 1)

    if pad:
        x_aug = jnp.pad(x_aug, ((0, pad), (0, 0), (0, 0)))
        cand_s = jnp.pad(cand_s, ((0, pad), (0, 0), (0, 0)))

    # ---- Pass A (Pallas): SSN sims + per-cell soft pooling of [x | 1] ----
    wf = _pallas_sims_pool(x_aug, cand_s, tc)[:NC]

    # Cell-level finalize: shift-add pooling, THEN project K/V on superpixels only
    # (pooling is linear so this is exact; biases applied after mass normalisation).
    pooled_x = _pool_finalize(wf, B, nH, nW, C)                           # (B,nH,nW,C)
    k_sp = pooled_x @ w_k + b_k
    v_sp = pooled_x @ w_v + b_v
    kc, _ = _gather_neighbors(k_sp)                                       # (B,nH,nW,9,C)
    vc, _ = _gather_neighbors(v_sp)

    # Fold W_q, b_q, the 1/sqrt(C) scale, the sims logits and the mask into the
    # candidates for Pass B:
    #   logits[p,n] = x_p . (2*cand_n + (kc_n @ W_q^T)/sqrt(C))
    #                 + (-||cand_n||^2 + (b_q . kc_n)/sqrt(C) + mask_n)
    kq = jnp.einsum('bhwno,io->bhwni', kc, w_q)                           # kc @ W_q^T
    cand_comb = 2.0 * cand + scale * kq
    bias_comb = sims_bias + scale * jnp.einsum('bhwno,o->bhwn', kc, b_q)
    cand_w = jnp.concatenate([cand_comb, bias_comb[..., None]], axis=-1)
    cand_w = cand_w.reshape(NC, NEIGH, C + 1)
    vc = vc.reshape(NC, NEIGH, C)
    if pad:
        cand_w = jnp.pad(cand_w, ((0, pad), (0, 0), (0, 0)))
        vc = jnp.pad(vc, ((0, pad), (0, 0), (0, 0)))

    # ---- Pass B (Pallas): fused sims*attention softmax + value mix ----
    out_cb = _pallas_attn(x_aug, cand_w, vc, tc)[:NC]

    out = (out_cb.reshape(B, nH, nW, stride, stride, C)
                 .transpose(0, 1, 3, 2, 4, 5)
                 .reshape(B, H, W, C))
    return jnp.transpose(out, (0, 3, 1, 2))


if __name__ == "__main__":
    key = jax.random.PRNGKey(0)
    kx, kp = jax.random.split(key)
    B, C, H, W = 2, 32, 16, 16
    x = jax.random.normal(kx, (B, C, H, W), jnp.float32)
    params = init_sna_params(kp, C)

    out = sna_forward(x, params, stride=4, tile_cells=512)
    out = jax.block_until_ready(out)
    assert out.shape == (B, C, H, W)
    assert bool(jnp.all(jnp.isfinite(out)))
    print("KERNEL_OK")
</pallas_src>

<mosaic_0001>
module attributes {stable_mosaic.version = 11 : i64} {
  func.func @_sims_pool_kernel(%arg0: i32, %arg1: memref<32x16x33xf32, #tpu.memory_space<vmem>>, %arg2: memref<32x9x33xf32, #tpu.memory_space<vmem>>, %arg3: memref<32x9x33xf32, #tpu.memory_space<vmem>>) attributes {dimension_semantics = [#tpu.dimension_semantics<parallel>], iteration_bounds = array<i64: 1>, scalar_prefetch = 0 : i64, scratch_operands = 0 : i64, tpu.core_type = #tpu.core_type<tc>, window_params = [{transform_indices = @transform_0, window_bounds = array<i64: 32, 16, 33>}, {transform_indices = @transform_1, window_bounds = array<i64: 32, 9, 33>}, {transform_indices = @transform_2, window_bounds = array<i64: 32, 9, 33>}]} {
    %c0 = arith.constant 0 : index
    %c0_0 = arith.constant 0 : index
    %c0_1 = arith.constant 0 : index
    %0 = vector.load %arg1[%c0, %c0_0, %c0_1] : memref<32x16x33xf32, #tpu.memory_space<vmem>>, vector<32x16x33xf32>
    %c0_2 = arith.constant 0 : index
    %c0_3 = arith.constant 0 : index
    %c0_4 = arith.constant 0 : index
    %1 = vector.load %arg2[%c0_2, %c0_3, %c0_4] : memref<32x9x33xf32, #tpu.memory_space<vmem>>, vector<32x9x33xf32>
    "tpu.trace_start"() <{level = 10 : i32, message = "gpc,gnc->gpn"}> : () -> ()
    %cst = arith.constant dense<0.000000e+00> : vector<32x16x9xf32>
    %2 = tpu.matmul %0, %1, %cst {dimension_numbers = #tpu.dot_dimension_numbers<[2], [2], [1], [1], [0, 0, 0, 1, 1, 1], [0], [0]>} : vector<32x16x33xf32>, vector<32x9x33xf32>, vector<32x16x9xf32> -> vector<32x16x9xf32>
    "tpu.trace_stop"() : () -> ()
    %cst_5 = arith.constant dense<0xFF800000> : vector<32x16xf32>
    %3 = vector.multi_reduction <maximumf>, %2, %cst_5 [2] : vector<32x16x9xf32> to vector<32x16xf32>
    %4 = vector.shape_cast %3 : vector<32x16xf32> to vector<32x16x1xf32>
    %5 = vector.broadcast %4 : vector<32x16x1xf32> to vector<32x16x9xf32>
    %6 = arith.subf %2, %5 : vector<32x16x9xf32>
    %7 = math.exp %6 : vector<32x16x9xf32>
    %cst_6 = arith.constant dense<0.000000e+00> : vector<32x16xf32>
    %8 = vector.multi_reduction <add>, %7, %cst_6 [2] : vector<32x16x9xf32> to vector<32x16xf32>
    %9 = vector.shape_cast %8 : vector<32x16xf32> to vector<32x16x1xf32>
    %cst_7 = arith.constant 9.99999996E-13 : f32
    %10 = vector.broadcast %cst_7 : f32 to vector<32x16x1xf32>
    %11 = arith.addf %9, %10 : vector<32x16x1xf32>
    %12 = vector.broadcast %11 : vector<32x16x1xf32> to vector<32x16x9xf32>
    %13 = arith.divf %7, %12 : vector<32x16x9xf32>
    "tpu.trace_start"() <{level = 10 : i32, message = "gpn,gpc->gnc"}> : () -> ()
    %cst_8 = arith.constant dense<0.000000e+00> : vector<32x9x33xf32>
    %14 = tpu.matmul %13, %0, %cst_8 {dimension_numbers = #tpu.dot_dimension_numbers<[1], [1], [2], [2], [0, 0, 0, 2, 1, 2], [0], [0]>} : vector<32x16x9xf32>, vector<32x16x33xf32>, vector<32x9x33xf32> -> vector<32x9x33xf32>
    "tpu.trace_stop"() : () -> ()
    %c0_9 = arith.constant 0 : index
    %c0_10 = arith.constant 0 : index
    %c0_11 = arith.constant 0 : index
    %15 = vector.load %arg3[%c0_9, %c0_10, %c0_11] : memref<32x9x33xf32, #tpu.memory_space<vmem>>, vector<32x9x33xf32>
    tpu.vector_store %arg3[%c0_9, %c0_10, %c0_11], %14 {strides = array<i32>} : memref<32x9x33xf32, #tpu.memory_space<vmem>>, vector<32x9x33xf32>,
    return
  }
  func.func @transform_0(%arg0: i32) -> (i32, i32, i32) {
    %c0_i32 = arith.constant 0 : i32
    %c0_i32_0 = arith.constant 0 : i32
    %c0_i32_1 = arith.constant 0 : i32
    return %arg0, %c0_i32, %c0_i32_0 : i32, i32, i32
  }
  func.func @transform_1(%arg0: i32) -> (i32, i32, i32) {
    %c0_i32 = arith.constant 0 : i32
    %c0_i32_0 = arith.constant 0 : i32
    %c0_i32_1 = arith.constant 0 : i32
    return %arg0, %c0_i32, %c0_i32_0 : i32, i32, i32
  }
  func.func @transform_2(%arg0: i32) -> (i32, i32, i32) {
    %c0_i32 = arith.constant 0 : i32
    %c0_i32_0 = arith.constant 0 : i32
    %c0_i32_1 = arith.constant 0 : i32
    return %arg0, %c0_i32, %c0_i32_0 : i32, i32, i32
  }
}

</mosaic_0001>

<bundles_post_ra>
// kernel: tpu_custom_call.1
= control target key start
LH: loop header
LB: loop body
LE: loop exit
PB: predicated region body
PF: predicated region fallthrough
CT: control target
= control target key end

     0   :  { %vm139_vm0 = vcmask 269312   ;;  %vm1260_vm1 = vcmask 72704   ;;  %s8571_s1 = inlined_call_operand.vmem [shape: f32[32,9,33], index: 1, kind: input, shape index: {}]   ;;  %s8572_s0 = inlined_call_operand.vmem [shape: f32[32,16,33], index: 0, kind: input, shape index: {}]   ;;  %s8573_s2 = inlined_call_operand.vmem [shape: f32[32,9,33], index: 2, kind: output, shape index: {}]  }
   0x1   :  { %v76_v0 = vld [vmem:[%s8571_s1 + $0x8] sm:$0x1]  ;;  %v78_v1 = vld [vmem:[%s8571_s1 + $0x18] sm:$0x1]  ;;  %v75_v4 = vld [vmem:[%s8571_s1] sm:$0xff] }
   0x2   :  { %v80_v2 = vld [vmem:[%s8571_s1 + $0x28] sm:$0x1]  ;;  %4883 = vmatpush.xpose.msk.msra.mxu0 %vm139_vm0, %v76_v0  ;;  %4887 = vmatpush.xpose.msk.msra.mxu1 %vm139_vm0, %v78_v1  ;;  %v82_v3 = vld [vmem:[%s8571_s1 + $0x38] sm:$0x1]  ;;  %v77_v5 = vld [vmem:[%s8571_s1 + $0x10] sm:$0xff] }
   0x3   :  { %4891 = vmatpush.xpose.msk.msra.mxu2 %vm139_vm0, %v80_v2  ;;  %4895 = vmatpush.xpose.msk.msra.mxu3 %vm139_vm0, %v82_v3  ;;  %v79_v6 = vld [vmem:[%s8571_s1 + $0x20] sm:$0xff]  ;;  %v81_v7 = vld [vmem:[%s8571_s1 + $0x30] sm:$0xff]  ;;  %v88_v8 = vld [vmem:[%s8571_s1 + $0x68] sm:$0x1] }
   0x4   :  { %v5431_v9 = vld [vmem:[%s8572_s0] sm:$0xff]  ;;  %v5436_v10 = vld [vmem:[%s8572_s0 + $0x10] sm:$0xff]  ;;  %v84_v11 = vld [vmem:[%s8571_s1 + $0x48] sm:$0x1] }
   0x5   :  { %v5446_v12 = vld [vmem:[%s8572_s0 + $0x20] sm:$0xff]  ;;  %v5451_v13 = vld [vmem:[%s8572_s0 + $0x30] sm:$0xff]  ;;  %v86_v14 = vld [vmem:[%s8571_s1 + $0x58] sm:$0x1] }
   0x6   :  { %4884 = vmatpush.xpose.msk.msra.mxu0 %vm139_vm0, %v75_v4  ;;  %4888 = vmatpush.xpose.msk.msra.mxu1 %vm139_vm0, %v77_v5  ;;  %v90_v15 = vld [vmem:[%s8571_s1 + $0x78] sm:$0x1]  ;;  %v87_v16 = vld [vmem:[%s8571_s1 + $0x60] sm:$0xff]  ;;  %v92_v18 = vld [vmem:[%s8571_s1 + $0x88] sm:$0x1] }
   0x7   :  { %4892 = vmatpush.xpose.msk.msra.mxu2 %vm139_vm0, %v79_v6  ;;  %4896 = vmatpush.xpose.msk.msra.mxu3 %vm139_vm0, %v81_v7  ;;  %v83_v17 = vld [vmem:[%s8571_s1 + $0x40] sm:$0xff]  ;;  %v96_v19 = vld [vmem:[%s8571_s1 + $0xa8] sm:$0x1]  ;;  %v85_v20 = vld [vmem:[%s8571_s1 + $0x50] sm:$0xff] }
   0x8   :  { %v89_v21 = vld [vmem:[%s8571_s1 + $0x70] sm:$0xff]  ;;  %v98_v22 = vld [vmem:[%s8571_s1 + $0xb8] sm:$0x1]  ;;  %v5507_v25 = vld [vmem:[%s8572_s0 + $0x8] sm:$0xff] }
   0x9   :  { %4885 = vmatmul.msk.f32.vlgmr.msra.gmra.mxu0 %vm139_vm0, %v5431_v9  ;;  %4889 = vmatmul.msk.f32.vlgmr.msra.gmra.mxu1 %vm139_vm0, %v5436_v10  ;;  %v94_v23 = vld [vmem:[%s8571_s1 + $0x98] sm:$0x1]  ;;  %v5512_v26 = vld [vmem:[%s8572_s0 + $0x28] sm:$0xff]  ;;  %v91_v28 = vld [vmem:[%s8571_s1 + $0x80] sm:$0xff] }
   0xa   :  { %4899 = vmatpush.xpose.msk.msrb.mxu0 %vm139_vm0, %v84_v11  ;;  %4893 = vmatmul.msk.f32.vlgmr.msra.gmra.mxu2 %vm139_vm0, %v5446_v12  ;;  %v5502_v24 = vld [vmem:[%s8572_s0 + $0x18] sm:$0xff]  ;;  %v95_v29 = vld [vmem:[%s8571_s1 + $0xa0] sm:$0xff]  ;;  %v97_v30 = vld [vmem:[%s8571_s1 + $0xb0] sm:$0xff] }
   0xb   :  { %4907 = vmatpush.xpose.msk.msrb.mxu2 %vm139_vm0, %v88_v8  ;;  %4897 = vmatmul.msk.f32.vlgmr.msra.gmra.mxu3 %vm139_vm0, %v5451_v13  ;;  %v5517_v27 = vld [vmem:[%s8572_s0 + $0x38] sm:$0xff]  ;;  %v93_v31 = vld [vmem:[%s8571_s1 + $0x90] sm:$0xff]  ;;  %v5550_v32 = vld [vmem:[%s8572_s0 + $0x40] sm:$0xff] }
   0xc   :  { %4903 = vmatpush.xpose.msk.msrb.mxu1 %vm139_vm0, %v86_v14  ;;  %4911 = vmatpush.xpose.msk.msrb.mxu3 %vm139_vm0, %v90_v15  ;;  %v5555_v33 = vld [vmem:[%s8572_s0 + $0x50] sm:$0xff]  ;;  %v5560_v34 = vld [vmem:[%s8572_s0 + $0x60] sm:$0xff]  ;;  %v104_v36 = vld [vmem:[%s8571_s1 + $0xe8] sm:$0x1] }
   0xd   :  { %v5565_v35 = vld [vmem:[%s8572_s0 + $0x70] sm:$0xff]  ;;  %v100_v37 = vld [vmem:[%s8571_s1 + $0xc8] sm:$0x1]  ;;  %v106_v38 = vld [vmem:[%s8571_s1 + $0xf8] sm:$0x1] }
   0xe   :  { %4900 = vmatpush.xpose.msk.msrb.mxu0 %vm139_vm0, %v83_v17  ;;  %v102_v39 = vld [vmem:[%s8571_s1 + $0xd8] sm:$0x1]  ;;  %v103_v40 = vld [vmem:[%s8571_s1 + $0xe0] sm:$0xff]  ;;  %v105_v42 = vld [vmem:[%s8571_s1 + $0xf0] sm:$0xff] }
   0xf   :  { %4908 = vmatpush.xpose.msk.msrb.mxu2 %vm139_vm0, %v87_v16  ;;  %v99_v41 = vld [vmem:[%s8571_s1 + $0xc0] sm:$0xff]  ;;  %v101_v43 = vld [vmem:[%s8571_s1 + $0xd0] sm:$0xff]  ;;  %v5606_v44 = vld [vmem:[%s8572_s0 + $0x48] sm:$0xff] }
  0x10   :  { %4904 = vmatpush.xpose.msk.msrb.mxu1 %vm139_vm0, %v85_v20  ;;  %4912 = vmatpush.xpose.msk.msrb.mxu3 %vm139_vm0, %v89_v21  ;;  %v5611_v45 = vld [vmem:[%s8572_s0 + $0x58] sm:$0xff]  ;;  %v5616_v46 = vld [vmem:[%s8572_s0 + $0x68] sm:$0xff]  ;;  %v27_v48 = vld [vmem:[%s8572_s0 + $0x80] sm:$0xff] }
  0x11   :  { %4890 = vmatmul.msk.f32.gmra.mxu1 %vm139_vm0, %v5502_v24  ;;  %4886 = vmatmul.msk.f32.gmra.mxu0 %vm139_vm0, %v5507_v25  ;;  %v5621_v47 = vld [vmem:[%s8572_s0 + $0x78] sm:$0xff]  ;;  %v29_v49 = vld [vmem:[%s8572_s0 + $0x90] sm:$0xff]  ;;  %v31_v50 = vld [vmem:[%s8572_s0 + $0xa0] sm:$0xff] }
  0x12   :  { %4915 = vmatpush.xpose.msk.msra.mxu0 %vm139_vm0, %v92_v18  ;;  %4894 = vmatmul.msk.f32.gmra.mxu2 %vm139_vm0, %v5512_v26  ;;  %v33_v51 = vld [vmem:[%s8572_s0 + $0xb0] sm:$0xff]  ;;  %v112_v52 = vld [vmem:[%s8571_s1 + $0x128] sm:$0x1]  ;;  %v110_v54 = vld [vmem:[%s8571_s1 + $0x118] sm:$0x1] }
  0x13   :  { %4923 = vmatpush.xpose.msk.msra.mxu2 %vm139_vm0, %v96_v19  ;;  %4898 = vmatmul.msk.f32.gmra.mxu3 %vm139_vm0, %v5517_v27  ;;  %v108_v53 = vld [vmem:[%s8571_s1 + $0x108] sm:$0x1]  ;;  %v114_v55 = vld [vmem:[%s8571_s1 + $0x138] sm:$0x1]  ;;  %v111_v56 = vld [vmem:[%s8571_s1 + $0x120] sm:$0xff] }
  0x14   :  { %4927 = vmatpush.xpose.msk.msra.mxu3 %vm139_vm0, %v98_v22  ;;  %4919 = vmatpush.xpose.msk.msra.mxu1 %vm139_vm0, %v94_v23  ;;  %v107_v57 = vld [vmem:[%s8571_s1 + $0x100] sm:$0xff]  ;;  %v109_v58 = vld [vmem:[%s8571_s1 + $0x110] sm:$0xff]  ;;  %v28_v60 = vld [vmem:[%s8572_s0 + $0x88] sm:$0xff] }
  0x15   :  { %v113_v59 = vld [vmem:[%s8571_s1 + $0x130] sm:$0xff]  ;;  %v30_v61 = vld [vmem:[%s8572_s0 + $0x98] sm:$0xff]  ;;  %v32_v62 = vld [vmem:[%s8572_s0 + $0xa8] sm:$0xff] }
  0x16   :  { %4916 = vmatpush.xpose.msk.msra.mxu0 %vm139_vm0, %v91_v28  ;;  %v34_v63 = vld [vmem:[%s8572_s0 + $0xb8] sm:$0xff]  ;;  %v35_v0 = vld [vmem:[%s8572_s0 + $0xc0] sm:$0xff]  ;;  %v37_v1 = vld [vmem:[%s8572_s0 + $0xd0] sm:$0xff] }
  0x17   :  { %4924 = vmatpush.xpose.msk.msra.mxu2 %vm139_vm0, %v95_v29  ;;  %v39_v2 = vld [vmem:[%s8572_s0 + $0xe0] sm:$0xff]  ;;  %v41_v3 = vld [vmem:[%s8572_s0 + $0xf0] sm:$0xff]  ;;  %v116_v4 = vld [vmem:[%s8571_s1 + $0x148] sm:$0x1] }
  0x18   :  { %4928 = vmatpush.xpose.msk.msra.mxu3 %vm139_vm0, %v97_v30  ;;  %4920 = vmatpush.xpose.msk.msra.mxu1 %vm139_vm0, %v93_v31  ;;  %v120_v5 = vld [vmem:[%s8571_s1 + $0x168] sm:$0x1]  ;;  %v122_v6 = vld [vmem:[%s8571_s1 + $0x178] sm:$0x1]  ;;  %v115_v8 = vld [vmem:[%s8571_s1 + $0x140] sm:$0xff] }
  0x19   :  { %4901 = vmatmul.msk.f32.vlgmr.msrb.gmra.mxu0 %vm139_vm0, %v5550_v32  ;;  %4905 = vmatmul.msk.f32.vlgmr.msrb.gmra.mxu1 %vm139_vm0, %v5555_v33  ;;  %v118_v7 = vld [vmem:[%s8571_s1 + $0x158] sm:$0x1]  ;;  %v119_v11 = vld [vmem:[%s8571_s1 + $0x160] sm:$0xff]  ;;  %v121_v14 = vld [vmem:[%s8571_s1 + $0x170] sm:$0xff] }
  0x1a   :  { %4909 = vmatmul.msk.f32.vlgmr.msrb.gmra.mxu2 %vm139_vm0, %v5560_v34  ;;  %4931 = vmatpush.xpose.msk.msrb.mxu0 %vm139_vm0, %v100_v37  ;;  %v117_v15 = vld [vmem:[%s8571_s1 + $0x150] sm:$0xff]  ;;  %v36_v16 = vld [vmem:[%s8572_s0 + $0xc8] sm:$0xff]  ;;  %v38_v17 = vld [vmem:[%s8572_s0 + $0xd8] sm:$0xff] }
  0x1b   :  { %4913 = vmatmul.msk.f32.vlgmr.msrb.gmra.mxu3 %vm139_vm0, %v5565_v35  ;;  %4939 = vmatpush.xpose.msk.msrb.mxu2 %vm139_vm0, %v104_v36  ;;  %v40_v18 = vld [vmem:[%s8572_s0 + $0xe8] sm:$0xff]  ;;  %v42_v19 = vld [vmem:[%s8572_s0 + $0xf8] sm:$0xff]  ;;  %v43_v20 = vld [vmem:[%s8572_s0 + $0x100] sm:$0xff] }
  0x1c   :  { %4943 = vmatpush.xpose.msk.msrb.mxu3 %vm139_vm0, %v106_v38  ;;  %4935 = vmatpush.xpose.msk.msrb.mxu1 %vm139_vm0, %v102_v39  ;;  %v45_v21 = vld [vmem:[%s8572_s0 + $0x110] sm:$0xff]  ;;  %v47_v22 = vld [vmem:[%s8572_s0 + $0x120] sm:$0xff]  ;;  %v128_v28 = vld [vmem:[%s8571_s1 + $0x1a8] sm:$0x1] }
  0x1d   :  { %v49_v23 = vld [vmem:[%s8572_s0 + $0x130] sm:$0xff]  ;;  %v124_v29 = vld [vmem:[%s8571_s1 + $0x188] sm:$0x1]  ;;  %v130_v30 = vld [vmem:[%s8571_s1 + $0x1b8] sm:$0x1] }
  0x1e   :  { %4932 = vmatpush.xpose.msk.msrb.mxu0 %vm139_vm0, %v99_v41  ;;  %v126_v31 = vld [vmem:[%s8571_s1 + $0x198] sm:$0x1]  ;;  %v127_v36 = vld [vmem:[%s8571_s1 + $0x1a0] sm:$0xff]  ;;  %v129_v38 = vld [vmem:[%s8571_s1 + $0x1b0] sm:$0xff] }
  0x1f   :  { %4940 = vmatpush.xpose.msk.msrb.mxu2 %vm139_vm0, %v103_v40  ;;  %v123_v37 = vld [vmem:[%s8571_s1 + $0x180] sm:$0xff]  ;;  %v44_v39 = vld [vmem:[%s8572_s0 + $0x108] sm:$0xff]  ;;  %v46_v40 = vld [vmem:[%s8572_s0 + $0x118] sm:$0xff] }
  0x20   :  { %4944 = vmatpush.xpose.msk.msrb.mxu3 %vm139_vm0, %v105_v42  ;;  %4936 = vmatpush.xpose.msk.msrb.mxu1 %vm139_vm0, %v101_v43  ;;  %v48_v41 = vld [vmem:[%s8572_s0 + $0x128] sm:$0xff]  ;;  %v50_v42 = vld [vmem:[%s8572_s0 + $0x138] sm:$0xff]  ;;  %v51_v43 = vld [vmem:[%s8572_s0 + $0x140] sm:$0xff] }
  0x21   :  { %4902 = vmatmul.msk.f32.gmra.mxu0 %vm139_vm0, %v5606_v44  ;;  %4906 = vmatmul.msk.f32.gmra.mxu1 %vm139_vm0, %v5611_v45 }
  0x22   :  { %4910 = vmatmul.msk.f32.gmra.mxu2 %vm139_vm0, %v5616_v46 }
  0x23   :  { %4914 = vmatmul.msk.f32.gmra.mxu3 %vm139_vm0, %v5621_v47 }
  0x29   :  { %4917 = vmatmul.msk.f32.vlgmr.msra.gmra.mxu0 %vm139_vm0, %v27_v48  ;;  %4921 = vmatmul.msk.f32.vlgmr.msra.gmra.mxu1 %vm139_vm0, %v29_v49  ;;  %v53_v48 = vld [vmem:[%s8572_s0 + $0x150] sm:$0xff]  ;;  %v55_v49 = vld [vmem:[%s8572_s0 + $0x160] sm:$0xff] }
  0x2a   :  { %4925 = vmatmul.msk.f32.vlgmr.msra.gmra.mxu2 %vm139_vm0, %v31_v50  ;;  %4947 = vmatpush.xpose.msk.msra.mxu0 %vm139_vm0, %v108_v53  ;;  %v57_v50 = vld [vmem:[%s8572_s0 + $0x170] sm:$0xff]  ;;  %v56_v53 = vld [vmem:[%s8572_s0 + $0x168] sm:$0xff] }
  0x2b   :  { %4929 = vmatmul.msk.f32.vlgmr.msra.gmra.mxu3 %vm139_vm0, %v33_v51  ;;  %4955 = vmatpush.xpose.msk.msra.mxu2 %vm139_vm0, %v112_v52  ;;  %v52_v51 = vld [vmem:[%s8572_s0 + $0x148] sm:$0xff]  ;;  %v54_v52 = vld [vmem:[%s8572_s0 + $0x158] sm:$0xff] }
  0x2c   :  { %4951 = vmatpush.xpose.msk.msra.mxu1 %vm139_vm0, %v110_v54  ;;  %4959 = vmatpush.xpose.msk.msra.mxu3 %vm139_vm0, %v114_v55  ;;  %v58_v54 = vld [vmem:[%s8572_s0 + $0x178] sm:$0xff]  ;;  %v63_v55 = vld [vmem:[%s8572_s0 + $0x1a0] sm:$0xff] }
  0x2e   :  { %4948 = vmatpush.xpose.msk.msra.mxu0 %vm139_vm0, %v107_v57  ;;  %v125_v57 = vld [vmem:[%s8571_s1 + $0x190] sm:$0xff] }
  0x2f   :  { %4956 = vmatpush.xpose.msk.msra.mxu2 %vm139_vm0, %v111_v56  ;;  %v59_v56 = vld [vmem:[%s8572_s0 + $0x180] sm:$0xff] }
  0x30   :  { %4952 = vmatpush.xpose.msk.msra.mxu1 %vm139_vm0, %v109_v58  ;;  %4960 = vmatpush.xpose.msk.msra.mxu3 %vm139_vm0, %v113_v59  ;;  %v65_v58 = vld [vmem:[%s8572_s0 + $0x1b0] sm:$0xff]  ;;  %v136_v59 = vld [vmem:[%s8571_s1 + $0x1e8] sm:$0x1] }
  0x31   :  { %4918 = vmatmul.msk.f32.gmra.mxu0 %vm139_vm0, %v28_v60  ;;  %4922 = vmatmul.msk.f32.gmra.mxu1 %vm139_vm0, %v30_v61  ;;  %v61_v60 = vld [vmem:[%s8572_s0 + $0x190] sm:$0xff]  ;;  %v60_v61 = vld [vmem:[%s8572_s0 + $0x188] sm:$0xff] }
  0x32   :  { %4926 = vmatmul.msk.f32.gmra.mxu2 %vm139_vm0, %v32_v62  ;;  %v64_v62 = vld [vmem:[%s8572_s0 + $0x1a8] sm:$0xff] }
  0x33   :  { %4930 = vmatmul.msk.f32.gmra.mxu3 %vm139_vm0, %v34_v63  ;;  %v132_v63 = vld [vmem:[%s8571_s1 + $0x1c8] sm:$0x1] }
  0x39   :  { %4933 = vmatmul.msk.f32.vlgmr.msrb.gmra.mxu0 %vm139_vm0, %v35_v0  ;;  %4937 = vmatmul.msk.f32.vlgmr.msrb.gmra.mxu1 %vm139_vm0, %v37_v1  ;;  %v134_v0 = vld [vmem:[%s8571_s1 + $0x1d8] sm:$0x1] }
  0x3a   :  { %4941 = vmatmul.msk.f32.vlgmr.msrb.gmra.mxu2 %vm139_vm0, %v39_v2  ;;  %4963 = vmatpush.xpose.msk.msrb.mxu0 %vm139_vm0, %v116_v4  ;;  %v66_v1 = vld [vmem:[%s8572_s0 + $0x1b8] sm:$0xff]  ;;  %v135_v2 = vld [vmem:[%s8571_s1 + $0x1e0] sm:$0xff] }
  0x3b   :  { %4945 = vmatmul.msk.f32.vlgmr.msrb.gmra.mxu3 %vm139_vm0, %v41_v3  ;;  %4971 = vmatpush.xpose.msk.msrb.mxu2 %vm139_vm0, %v120_v5  ;;  %v138_v3 = vld [vmem:[%s8571_s1 + $0x1f8] sm:$0x1]  ;;  %v131_v5 = vld [vmem:[%s8571_s1 + $0x1c0] sm:$0xff] }
  0x3c   :  { %4975 = vmatpush.xpose.msk.msrb.mxu3 %vm139_vm0, %v122_v6  ;;  %4967 = vmatpush.xpose.msk.msrb.mxu1 %vm139_vm0, %v118_v7  ;;  %v62_v4 = vld [vmem:[%s8572_s0 + $0x198] sm:$0xff]  ;;  %v133_v6 = vld [vmem:[%s8571_s1 + $0x1d0] sm:$0xff]  ;;  %v67_v7 = vld [vmem:[%s8572_s0 + $0x1c0] sm:$0xff] }
  0x3e   :  { %4964 = vmatpush.xpose.msk.msrb.mxu0 %vm139_vm0, %v115_v8 }
  0x3f   :  { %4972 = vmatpush.xpose.msk.msrb.mxu2 %vm139_vm0, %v119_v11 }
  0x40   :  { %4976 = vmatpush.xpose.msk.msrb.mxu3 %vm139_vm0, %v121_v14  ;;  %4968 = vmatpush.xpose.msk.msrb.mxu1 %vm139_vm0, %v117_v15  ;;  %v70_v14 = vld [vmem:[%s8572_s0 + $0x1d8] sm:$0xff] }
  0x41   :  { %4934 = vmatmul.msk.f32.gmra.mxu0 %vm139_vm0, %v36_v16  ;;  %4938 = vmatmul.msk.f32.gmra.mxu1 %vm139_vm0, %v38_v17 }
  0x42   :  { %4942 = vmatmul.msk.f32.gmra.mxu2 %vm139_vm0, %v40_v18 }
  0x43   :  { %4946 = vmatmul.msk.f32.gmra.mxu3 %vm139_vm0, %v42_v19 }
  0x49   :  { %4949 = vmatmul.msk.f32.vlgmr.msra.gmra.mxu0 %vm139_vm0, %v43_v20  ;;  %4953 = vmatmul.msk.f32.vlgmr.msra.gmra.mxu1 %vm139_vm0, %v45_v21 }
  0x4a   :  { %4957 = vmatmul.msk.f32.vlgmr.msra.gmra.mxu2 %vm139_vm0, %v47_v22  ;;  %4979 = vmatpush.xpose.msk.msra.mxu0 %vm139_vm0, %v124_v29 }
  0x4b   :  { %4961 = vmatmul.msk.f32.vlgmr.msra.gmra.mxu3 %vm139_vm0, %v49_v23  ;;  %4987 = vmatpush.xpose.msk.msra.mxu2 %vm139_vm0, %v128_v28 }
  0x4c   :  { %4991 = vmatpush.xpose.msk.msra.mxu3 %vm139_vm0, %v130_v30  ;;  %4983 = vmatpush.xpose.msk.msra.mxu1 %vm139_vm0, %v126_v31 }
  0x4e   :  { %4980 = vmatpush.xpose.msk.msra.mxu0 %vm139_vm0, %v123_v37 }
  0x4f   :  { %4988 = vmatpush.xpose.msk.msra.mxu2 %vm139_vm0, %v127_v36 }
  0x50   :  { %4992 = vmatpush.xpose.msk.msra.mxu3 %vm139_vm0, %v129_v38  ;;  %4984 = vmatpush.xpose.msk.msra.mxu1 %vm139_vm0, %v125_v57 }
  0x51   :  { %4950 = vmatmul.msk.f32.gmra.mxu0 %vm139_vm0, %v44_v39  ;;  %4954 = vmatmul.msk.f32.gmra.mxu1 %vm139_vm0, %v46_v40 }
  0x52   :  { %4958 = vmatmul.msk.f32.gmra.mxu2 %vm139_vm0, %v48_v41 }
  0x53   :  { %4962 = vmatmul.msk.f32.gmra.mxu3 %vm139_vm0, %v50_v42 }
  0x59   :  { %4965 = vmatmul.msk.f32.vlgmr.msrb.gmra.mxu0 %vm139_vm0, %v51_v43  ;;  %4969 = vmatmul.msk.f32.vlgmr.msrb.gmra.mxu1 %vm139_vm0, %v53_v48 }
  0x5a   :  { %4973 = vmatmul.msk.f32.vlgmr.msrb.gmra.mxu2 %vm139_vm0, %v55_v49  ;;  %4995 = vmatpush.xpose.msk.msrb.mxu0 %vm139_vm0, %v132_v63 }
  0x5b   :  { %4977 = vmatmul.msk.f32.vlgmr.msrb.gmra.mxu3 %vm139_vm0, %v57_v50  ;;  %5003 = vmatpush.xpose.msk.msrb.mxu2 %vm139_vm0, %v136_v59 }
  0x5c   :  { %4999 = vmatpush.xpose.msk.msrb.mxu1 %vm139_vm0, %v134_v0  ;;  %5007 = vmatpush.xpose.msk.msrb.mxu3 %vm139_vm0, %v138_v3 }
  0x5e   :  { %4996 = vmatpush.xpose.msk.msrb.mxu0 %vm139_vm0, %v131_v5 }
  0x5f   :  { %5004 = vmatpush.xpose.msk.msrb.mxu2 %vm139_vm0, %v135_v2 }
  0x60   :  { %5000 = vmatpush.xpose.msk.msrb.mxu1 %vm139_vm0, %v133_v6 }
  0x61   :  { %4966 = vmatmul.msk.f32.gmra.mxu0 %vm139_vm0, %v52_v51  ;;  %4970 = vmatmul.msk.f32.gmra.mxu1 %vm139_vm0, %v54_v52 }
  0x62   :  { %4974 = vmatmul.msk.f32.gmra.mxu2 %vm139_vm0, %v56_v53 }
  0x63   :  { %4978 = vmatmul.msk.f32.gmra.mxu3 %vm139_vm0, %v58_v54 }
  0x69   :  { %4981 = vmatmul.msk.f32.vlgmr.msra.gmra.mxu0 %vm139_vm0, %v59_v56  ;;  %4985 = vmatmul.msk.f32.vlgmr.msra.gmra.mxu1 %vm139_vm0, %v61_v60 }
  0x6a   :  { %4989 = vmatmul.msk.f32.vlgmr.msra.gmra.mxu2 %vm139_vm0, %v63_v55  ;;  %2975 = vmatpush.msra.mxu1 %v5502_v24  ;;  %v69_v24 = vld [vmem:[%s8572_s0 + $0x1d0] sm:$0xff] }
  0x6b   :  { %4993 = vmatmul.msk.f32.vlgmr.msra.gmra.mxu3 %vm139_vm0, %v65_v58  ;;  %3036 = vmatpush.msra.mxu2 %v5512_v26  ;;  %v137_v26 = vld [vmem:[%s8571_s1 + $0x1f0] sm:$0xff] }
  0x6c   :  { %5008 = vmatpush.xpose.msk.msrb.mxu3 %vm139_vm0, %v137_v26  ;;  %2914 = vmatpush.msra.mxu0 %v5507_v25 }
  0x6d   :  { %3037 = vmatpush.msra.mxu2 %v5446_v12  ;;  %v71_v12 = vld [vmem:[%s8572_s0 + $0x1e0] sm:$0xff]  ;;  %2976 = vmatpush.msra.mxu1 %v5436_v10  ;;  %v73_v10 = vld [vmem:[%s8572_s0 + $0x1f0] sm:$0xff] }
  0x6e   :  { %2915 = vmatpush.msra.mxu0 %v5431_v9  ;;  %v72_v9 = vld [vmem:[%s8572_s0 + $0x1e8] sm:$0xff] }
  0x70   :  { %3097 = vmatpush.msra.mxu3 %v5517_v27 }
  0x71   :  { %4982 = vmatmul.msk.f32.gmra.mxu0 %vm139_vm0, %v60_v61  ;;  %4986 = vmatmul.msk.f32.gmra.mxu1 %vm139_vm0, %v62_v4 }
  0x72   :  { %4990 = vmatmul.msk.f32.gmra.mxu2 %vm139_vm0, %v64_v62  ;;  %3098 = vmatpush.msra.mxu3 %v5451_v13 }
  0x73   :  { %4994 = vmatmul.msk.f32.gmra.mxu3 %vm139_vm0, %v66_v1 }
  0x79   :  { %4997 = vmatmul.msk.f32.vlgmr.msrb.gmra.mxu0 %vm139_vm0, %v67_v7  ;;  %5001 = vmatmul.msk.f32.vlgmr.msrb.gmra.mxu1 %vm139_vm0, %v69_v24 }
  0x7a   :  { %5005 = vmatmul.msk.f32.vlgmr.msrb.gmra.mxu2 %vm139_vm0, %v71_v12  ;;  %3219 = vmatpush.msrb.mxu1 %v5611_v45 }
  0x7b   :  { %3280 = vmatpush.msrb.mxu2 %v5616_v46  ;;  %5009 = vmatmul.msk.f32.vlgmr.msrb.gmra.mxu3 %vm139_vm0, %v73_v10 }
  0x7c   :  { %3158 = vmatpush.msrb.mxu0 %v5606_v44  ;;  %3341 = vmatpush.msrb.mxu3 %v5621_v47 }
  0x7d   :  { %3281 = vmatpush.msrb.mxu2 %v5560_v34  ;;  %3220 = vmatpush.msrb.mxu1 %v5555_v33  ;;  %v68_v33 = vld [vmem:[%s8572_s0 + $0x1c8] sm:$0xff] }
  0x7e   :  { %3159 = vmatpush.msrb.mxu0 %v5550_v32  ;;  %3342 = vmatpush.msrb.mxu3 %v5565_v35  ;;  %v74_v32 = vld [vmem:[%s8572_s0 + $0x1f8] sm:$0xff] }
  0x81   :  { %4998 = vmatmul.msk.f32.gmra.mxu0 %vm139_vm0, %v68_v33  ;;  %5002 = vmatmul.msk.f32.gmra.mxu1 %vm139_vm0, %v70_v14 }
  0x82   :  { %5006 = vmatmul.msk.f32.gmra.mxu2 %vm139_vm0, %v72_v9 }
  0x83   :  { %5010 = vmatmul.msk.f32.gmra.mxu3 %vm139_vm0, %v74_v32 }
  0x86   :  { %v5959_v13 = vpop.f32.mrf.mxu0  ;;  %v5961_v25 = vpop.f32.mrf.mxu1 }
  0x87   :  { %v1267_v27 = vsel %vm1260_vm1, %v5961_v25, -inf  ;;  %v1261_v34 = vsel %vm1260_vm1, %v5959_v13, -inf }
  0x88   :  { %1268 = vmax.xlane.f32.xlu1 %v1267_v27  ;;  %1262 = vmax.xlane.f32.xlu0 %v1261_v34 }
  0x8d   :  { %v5975_v35 = vpop.f32.mrf.mxu2 }
  0x8e   :  { %v5977_v44 = vpop.f32.mrf.mxu3  ;;  %v1273_v45 = vsel %vm1260_vm1, %v5975_v35, -inf  ;;  %v5981_v46 = vpop.f32.mrf.mxu1 }
  0x8f   :  { %v1279_v47 = vsel %vm1260_vm1, %v5977_v44, -inf  ;;  %v5985_v8 = vpop.f32.mrf.mxu0  ;;  %1274 = vmax.xlane.f32.xlu2 %v1273_v45  ;;  %v1270_v11 = vsel %vm1260_vm1, %v5981_v46, -inf }
  0x90   :  { %1271 = vmax.xlane.f32.xlu1 %v1270_v11  ;;  %1280 = vmax.xlane.f32.xlu0 %v1279_v47  ;;  %v1264_v17 = vsel %vm1260_vm1, %v5985_v8, -inf }
  0x95   :  { %v5993_v15 = vpop.f32.mrf.mxu2 }
  0x96   :  { %v5995_v16 = vpop.f32.mrf.mxu3  ;;  %v1276_v18 = vsel %vm1260_vm1, %v5993_v15, -inf  ;;  %v6005_v21 = vpop.f32.mrf.mxu1 }
  0x97   :  { %v1282_v19 = vsel %vm1260_vm1, %v5995_v16, -inf  ;;  %1277 = vmax.xlane.f32.xlu2 %v1276_v18  ;;  %v6003_v20 = vpop.f32.mrf.mxu0  ;;  %v1291_v28 = vsel %vm1260_vm1, %v6005_v21, -inf }
  0x98   :  { %1283 = vmax.xlane.f32.xlu1 %v1282_v19  ;;  %1265 = vmax.xlane.f32.xlu0 %v1264_v17  ;;  %v1285_v22 = vsel %vm1260_vm1, %v6003_v20, -inf }
  0x9d   :  { %v6009_v23 = vpop.f32.mrf.mxu2 }
  0x9e   :  { %v1297_v29 = vsel %vm1260_vm1, %v6009_v23, -inf  ;;  %v6015_v30 = vpop.f32.mrf.mxu3  ;;  %v6027_v40 = vpop.f32.mrf.mxu1 }
  0x9f   :  { %1286 = vmax.xlane.f32.xlu2 %v1285_v22  ;;  %v6017_v31 = vpop.f32.mrf.mxu0  ;;  %v1303_v36 = vsel %vm1260_vm1, %v6015_v30, -inf  ;;  %v1294_v43 = vsel %vm1260_vm1, %v6027_v40, -inf }
  0xa0   :  { %1292 = vmax.xlane.f32.xlu1 %v1291_v28  ;;  %1298 = vmax.xlane.f32.xlu0 %v1297_v29  ;;  %v1288_v38 = vsel %vm1260_vm1, %v6017_v31, -inf }
  0xa5   :  { %v6021_v37 = vpop.f32.mrf.mxu2 }
  0xa6   :  { %v1300_v39 = vsel %vm1260_vm1, %v6021_v37, -inf  ;;  %v6029_v41 = vpop.f32.mrf.mxu3  ;;  %v6041_v51 = vpop.f32.mrf.mxu1 }
  0xa7   :  { %1304 = vmax.xlane.f32.xlu2 %v1303_v36  ;;  %v6031_v42 = vpop.f32.mrf.mxu0  ;;  %v1306_v48 = vsel %vm1260_vm1, %v6029_v41, -inf  ;;  %v1315_v54 = vsel %vm1260_vm1, %v6041_v51, -inf }
  0xa8   :  { %1301 = vmax.xlane.f32.xlu1 %v1300_v39  ;;  %1289 = vmax.xlane.f32.xlu0 %v1288_v38  ;;  %v1309_v49 = vsel %vm1260_vm1, %v6031_v42, -inf }
  0xad   :  { %v6039_v50 = vpop.f32.mrf.mxu2 }
  0xae   :  { %v6043_v52 = vpop.f32.mrf.mxu3  ;;  %v1321_v53 = vsel %vm1260_vm1, %v6039_v50, -inf  ;;  %v6055_v58 = vpop.f32.mrf.mxu1 }
  0xaf   :  { %1295 = vmax.xlane.f32.xlu2 %v1294_v43  ;;  %v1327_v55 = vsel %vm1260_vm1, %v6043_v52, -inf  ;;  %v6051_v56 = vpop.f32.mrf.mxu0  ;;  %v1318_v61 = vsel %vm1260_vm1, %v6055_v58, -inf }
  0xb0   :  { %1307 = vmax.xlane.f32.xlu0 %v1306_v48  ;;  %1310 = vmax.xlane.f32.xlu1 %v1309_v49  ;;  %v1312_v59 = vsel %vm1260_vm1, %v6051_v56, -inf }
  0xb5   :  { %v6053_v57 = vpop.f32.mrf.mxu2 }
  0xb6   :  { %v1324_v60 = vsel %vm1260_vm1, %v6053_v57, -inf  ;;  %v6063_v62 = vpop.f32.mrf.mxu3  ;;  %v6075_v4 = vpop.f32.mrf.mxu1 }
  0xb7   :  { %1322 = vmax.xlane.f32.xlu2 %v1321_v53  ;;  %v6065_v63 = vpop.f32.mrf.mxu0  ;;  %v1330_v1 = vsel %vm1260_vm1, %v6063_v62, -inf  ;;  %v1339_v12 = vsel %vm1260_vm1, %v6075_v4, -inf }
  0xb8   :  { %1316 = vmax.xlane.f32.xlu0 %v1315_v54  ;;  %1328 = vmax.xlane.f32.xlu1 %v1327_v55  ;;  %v1333_v3 = vsel %vm1260_vm1, %v6065_v63, -inf }
  0xbd   :  { %v6067_v0 = vpop.f32.mrf.mxu2 }
  0xbe   :  { %v1345_v2 = vsel %vm1260_vm1, %v6067_v0, -inf  ;;  %v6077_v5 = vpop.f32.mrf.mxu3  ;;  %v6089_v10 = vpop.f32.mrf.mxu1 }
  0xbf   :  { %1313 = vmax.xlane.f32.xlu2 %v1312_v59  ;;  %v6079_v6 = vpop.f32.mrf.mxu0  ;;  %v1351_v26 = vsel %vm1260_vm1, %v6077_v5, -inf  ;;  %v1342_v34 = vsel %vm1260_vm1, %v6089_v10, -inf }
  0xc0   :  { %1325 = vmax.xlane.f32.xlu0 %v1324_v60  ;;  %1319 = vmax.xlane.f32.xlu1 %v1318_v61  ;;  %v1336_v7 = vsel %vm1260_vm1, %v6079_v6, -inf }
  0xc5   :  { %v6087_v24 = vpop.f32.mrf.mxu2 }
  0xc6   :  { %v6091_v9 = vpop.f32.mrf.mxu3  ;;  %v1348_v27 = vsel %vm1260_vm1, %v6087_v24, -inf  ;;  %v6103_v47 = vpop.f32.mrf.mxu1 }
  0xc7   :  { %1331 = vmax.xlane.f32.xlu2 %v1330_v1  ;;  %8627 = vst [vmem:[#allocation2_spill] sm:$0xff] %v6091_v9  ;;  %v1354_v33 = vsel %vm1260_vm1, %v6091_v9, -inf  ;;  %v6099_v32 = vpop.f32.mrf.mxu0  ;;  %v1363_v17 = vsel %vm1260_vm1, %v6103_v47, -inf }
  0xc8   :  { %1346 = vmax.xlane.f32.xlu1 %v1345_v2  ;;  %1334 = vmax.xlane.f32.xlu0 %v1333_v3  ;;  %8628 = vst [vmem:[#allocation3_spill] sm:$0xff] %v6103_v47  ;;  %v1357_v11 = vsel %vm1260_vm1, %v6099_v32, -inf }
  0xcd   :  { %v6101_v45 = vpop.f32.mrf.mxu2 }
  0xce   :  { %v1369_v14 = vsel %vm1260_vm1, %v6101_v45, -inf  ;;  %v6111_v18 = vpop.f32.mrf.mxu3  ;;  %v6123_v38 = vpop.f32.mrf.mxu1 }
  0xcf   :  { %1340 = vmax.xlane.f32.xlu2 %v1339_v12  ;;  %v6113_v19 = vpop.f32.mrf.mxu0  ;;  %v1375_v28 = vsel %vm1260_vm1, %v6111_v18, -inf  ;;  %v1366_v48 = vsel %vm1260_vm1, %v6123_v38, -inf }
  0xd0   :  { %1352 = vmax.xlane.f32.xlu0 %v1351_v26  ;;  %1337 = vmax.xlane.f32.xlu1 %v1336_v7  ;;  %v1360_v36 = vsel %vm1260_vm1, %v6113_v19, -inf }
  0xd5   :  { %v6115_v22 = vpop.f32.mrf.mxu2 }
  0xd6   :  { %8629 = vst [vmem:[#allocation4_spill] sm:$0xff] %v6115_v22  ;;  %v1372_v29 = vsel %vm1260_vm1, %v6115_v22, -inf  ;;  %v6125_v39 = vpop.f32.mrf.mxu3  ;;  %v6137_v55 = vpop.f32.mrf.mxu1 }
  0xd7   :  { %1349 = vmax.xlane.f32.xlu2 %v1348_v27  ;;  %v6127_v43 = vpop.f32.mrf.mxu0  ;;  %v1378_v49 = vsel %vm1260_vm1, %v6125_v39, -inf  ;;  %8632 = vst [vmem:[#allocation7_spill] sm:$0xff] %v6137_v55  ;;  %v1387_v61 = vsel %vm1260_vm1, %v6137_v55, -inf }
  0xd8   :  { %1343 = vmax.xlane.f32.xlu0 %v1342_v34  ;;  %1355 = vmax.xlane.f32.xlu1 %v1354_v33  ;;  %8630 = vst [vmem:[#allocation5_spill] sm:$0xff] %v6127_v43  ;;  %v1381_v53 = vsel %vm1260_vm1, %v6127_v43, -inf }
  0xdd   :  { %v6135_v54 = vpop.f32.mrf.mxu2 }
  0xde   :  { %8631 = vst [vmem:[#allocation6_spill] sm:$0xff] %v6135_v54  ;;  %v6139_v59 = vpop.f32.mrf.mxu3  ;;  %v1393_v60 = vsel %vm1260_vm1, %v6135_v54, -inf  ;;  %v6151_v12 = vpop.f32.mrf.mxu1 }
  0xdf   :  { %1358 = vmax.xlane.f32.xlu2 %v1357_v11  ;;  %8633 = vst [vmem:[#allocation8_spill] sm:$0xff] %v6139_v59  ;;  %v1399_v1 = vsel %vm1260_vm1, %v6139_v59, -inf  ;;  %v6147_v2 = vpop.f32.mrf.mxu0  ;;  %v1390_v33 = vsel %vm1260_vm1, %v6151_v12, -inf }
  0xe0   :  { %1370 = vmax.xlane.f32.xlu0 %v1369_v14  ;;  %1364 = vmax.xlane.f32.xlu1 %v1363_v17  ;;  %8634 = vst [vmem:[#allocation9_spill] sm:$0xff] %v6147_v2  ;;  %v1384_v27 = vsel %vm1260_vm1, %v6147_v2, -inf }
  0xe1   :  { %8636 = vst [vmem:[#allocation11_spill] sm:$0xff] %v6151_v12 }
  0xe5   :  { %v6149_v3 = vpop.f32.mrf.mxu2 }
  0xe6   :  { %8635 = vst [vmem:[#allocation10_spill] sm:$0xff] %v6149_v3  ;;  %v1396_v34 = vsel %vm1260_vm1, %v6149_v3, -inf  ;;  %v6161_v11 = vpop.f32.mrf.mxu3 }
  0xe7   :  { %1376 = vmax.xlane.f32.xlu2 %v1375_v28  ;;  %8637 = vst [vmem:[#allocation12_spill] sm:$0xff] %v6161_v11  ;;  %v6163_v14 = vpop.f32.mrf.mxu0 }
  0xe8   :  { %1373 = vmax.xlane.f32.xlu1 %v1372_v29  ;;  %1361 = vmax.xlane.f32.xlu0 %v1360_v36  ;;  %8638 = vst [vmem:[#allocation13_spill] sm:$0xff] %v6163_v14 }
  0xed   :  { %v6167_v28 = vpop.f32.mrf.mxu2 }
  0xee   :  { %8639 = vst [vmem:[#allocation14_spill] sm:$0xff] %v6167_v28 }
  0xef   :  { %1367 = vmax.xlane.f32.xlu2 %v1366_v48  ;;  %v1402_v48 = vsel %vm1260_vm1, %v6161_v11, -inf }
  0xf0   :  { %1379 = vmax.xlane.f32.xlu0 %v1378_v49  ;;  %1382 = vmax.xlane.f32.xlu1 %v1381_v53  ;;  %v1417_v49 = vsel %vm1260_vm1, %v6167_v28, -inf  ;;  %v1405_v53 = vsel %vm1260_vm1, %v6163_v14, -inf }
  0xf7   :  { %1394 = vmax.xlane.f32.xlu2 %v1393_v60  ;;  %v6179_v60 = vpop.f32.mrf.mxu1 }
  0xf8   :  { %1388 = vmax.xlane.f32.xlu0 %v1387_v61  ;;  %1400 = vmax.xlane.f32.xlu1 %v1399_v1  ;;  %8640 = vst [vmem:[#allocation15_spill] sm:$0xff] %v6179_v60  ;;  %v6181_v61 = vpop.f32.mrf.mxu3  ;;  %v1411_v59 = vsel %vm1260_vm1, %v6179_v60, -inf }
  0xf9   :  { %8641 = vst [vmem:[#allocation16_spill] sm:$0xff] %v6181_v61 }
  0xfb   :  { %v6153_v26 = vpop.xlane.xlu1 %1268  ;;  %v1263_v7 = vpop.xlane.xlu0 %1262 }
  0xff   :  { %1385 = vmax.xlane.f32.xlu2 %v1384_v27  ;;  %v6185_v27 = vpop.f32.mrf.mxu0  ;;  %v6199_v43 = vpop.f32.mrf.mxu1 }
 0x100   :  { %1397 = vmax.xlane.f32.xlu0 %v1396_v34  ;;  %1391 = vmax.xlane.f32.xlu1 %v1390_v33  ;;  %8642 = vst [vmem:[#allocation17_spill] sm:$0xff] %v6185_v27  ;;  %v6203_v47 = vpop.f32.mrf.mxu3 }
 0x101   :  { %8644 = vst [vmem:[#allocation19_spill] sm:$0xff] %v6199_v43 }
 0x102   :  { %v6165_v17 = vpop.xlane.xlu2 %1274  ;;  %8645 = vst [vmem:[#allocation20_spill] sm:$0xff] %v6203_v47 }
 0x103   :  { %v6169_v29 = vpop.xlane.xlu1 %1271  ;;  %v6171_v36 = vpop.xlane.xlu0 %1280 }
 0x107   :  { %1403 = vmax.xlane.f32.xlu2 %v1402_v48  ;;  %v1423_v48 = vsel %vm1260_vm1, %v6181_v61, -inf  ;;  %v6221_v28 = vpop.f32.mrf.mxu1 }
 0x108   :  { %1418 = vmax.xlane.f32.xlu1 %v1417_v49  ;;  %1406 = vmax.xlane.f32.xlu0 %v1405_v53  ;;  %v1408_v49 = vsel %vm1260_vm1, %v6185_v27, -inf  ;;  %v6197_v53 = vpop.f32.mrf.mxu2  ;;  %v6217_v27 = vpop.f32.mrf.mxu0  ;;  %8648 = vst [vmem:[#allocation23_spill] sm:$0xff] %v6221_v28 }
 0x109   :  { %8643 = vst [vmem:[#allocation18_spill] sm:$0xff] %v6197_v53  ;;  %v1420_v14 = vsel %vm1260_vm1, %v6197_v53, -inf }
 0x10a   :  { %v6183_v1 = vpop.xlane.xlu2 %1277  ;;  %8647 = vst [vmem:[#allocation22_spill] sm:$0xff] %v6217_v27 }
 0x10b   :  { %v6187_v34 = vpop.xlane.xlu1 %1283  ;;  %v6189_v33 = vpop.xlane.xlu0 %1265 }
 0x10f   :  { %1412 = vmax.xlane.f32.xlu2 %v1411_v59  ;;  %v1414_v59 = vsel %vm1260_vm1, %v6199_v43, -inf  ;;  %v1429_v43 = vsel %vm1260_vm1, %v6217_v27, -inf }
 0x110   :  { %1424 = vmax.xlane.f32.xlu0 %v1423_v48  ;;  %1409 = vmax.xlane.f32.xlu1 %v1408_v49  ;;  %v1426_v48 = vsel %vm1260_vm1, %v6203_v47, -inf  ;;  %v6215_v49 = vpop.f32.mrf.mxu2  ;;  %v6234_v47 = vpop.f32.mrf.mxu3 }
 0x111   :  { %8646 = vst [vmem:[#allocation21_spill] sm:$0xff] %v6215_v49  ;;  %v6240_v2 = vpop.f32.mrf.mxu0 }
 0x112   :  { %v6201_v22 = vpop.xlane.xlu2 %1286  ;;  %8649 = vst [vmem:[#allocation24_spill] sm:$0xff] %v6234_v47 }
 0x113   :  { %v6205_v9 = vpop.xlane.xlu1 %1292  ;;  %v6207_v60 = vpop.xlane.xlu0 %1298 }
 0x117   :  { %1421 = vmax.xlane.f32.xlu2 %v1420_v14  ;;  %v1441_v14 = vsel %vm1260_vm1, %v6215_v49, -inf }
 0x118   :  { %1415 = vmax.xlane.f32.xlu0 %v1414_v59  ;;  %1427 = vmax.xlane.f32.xlu1 %v1426_v48  ;;  %v1435_v59 = vsel %vm1260_vm1, %v6221_v28, -inf  ;;  %v1453_v48 = vsub.f32 %v5959_v13, %v1263_v7  ;;  %v6236_v12 = vpop.f32.mrf.mxu2  ;;  %v1455_v28 = vsub.f32 %v5961_v25, %v6153_v26  ;;  %v1447_v13 = vsel %vm1260_vm1, %v6234_v47, -inf  ;;  %v6258_v26 = vpop.f32.mrf.mxu1 }
 0x119   :  { %8650 = vst [vmem:[#allocation25_spill] sm:$0xff] %v6236_v12  ;;  %v1444_v7 = vsel %vm1260_vm1, %v6236_v12, -inf }
 0x11a   :  { %v6219_v61 = vpop.xlane.xlu2 %1304  ;;  %v1517_v3 = vmul.f32 1.442695, %v1453_v48  ;;  %v1521_v48 = vmul.f32 1.442695, %v1455_v28  ;;  %8651 = vst [vmem:[#allocation26_spill] sm:$0xff] %v6258_v26  ;;  %v1438_v28 = vsel %vm1260_vm1, %v6258_v26, -inf }
 0x11b   :  { %v6223_v11 = vpop.xlane.xlu1 %1301  ;;  %v6225_v53 = vpop.xlane.xlu0 %1289 }
 0x11c   :  { %5076 = vpow2.f32 %v1517_v3 }
 0x11d   :  { %5078 = vpow2.f32 %v1521_v48 }
 0x11f   :  { %1430 = vmax.xlane.f32.xlu2 %v1429_v43  ;;  %v1457_v43 = vsub.f32 %v5975_v35, %v6165_v17  ;;  %v6262_v35 = vpop.f32.mrf.mxu3 }
 0x120   :  { %1442 = vmax.xlane.f32.xlu0 %v1441_v14  ;;  %1436 = vmax.xlane.f32.xlu1 %v1435_v59  ;;  %v1432_v14 = vsel %vm1260_vm1, %v6240_v2, -inf  ;;  %v1459_v59 = vsub.f32 %v5977_v44, %v6171_v36  ;;  %v1456_v44 = vsub.f32 %v5981_v46, %v6169_v29  ;;  %v1454_v36 = vsub.f32 %v5985_v8, %v6189_v33 }
 0x121   :  { %v1525_v25 = vmul.f32 1.442695, %v1457_v43  ;;  %v1458_v43 = vsub.f32 %v5993_v15, %v6183_v1  ;;  %v1460_v1 = vsub.f32 %v5995_v16, %v6187_v34 }
 0x122   :  { %v6238_v54 = vpop.xlane.xlu2 %1295  ;;  %v1529_v47 = vmul.f32 1.442695, %v1459_v59  ;;  %v6268_v3 = vpop.eup %5076  ;;  %v1519_v46 = vmul.f32 1.442695, %v1454_v36 }
 0x123   :  { %v6242_v27 = vpop.xlane.xlu0 %1307  ;;  %v6244_v49 = vpop.xlane.xlu1 %1310  ;;  %5080 = vpow2.f32 %v1525_v25  ;;  %v1527_v59 = vmul.f32 1.442695, %v1458_v43  ;;  %v1461_v25 = vsub.f32 %v6003_v20, %v6201_v22  ;;  %v1531_v43 = vmul.f32 1.442695, %v1460_v1 }
 0x124   :  { %5082 = vpow2.f32 %v1529_v47  ;;  %v6282_v29 = vpop.eup %5078  ;;  %v1462_v1 = vsub.f32 %v6017_v31, %v6225_v53 }
 0x125   :  { %v1533_v16 = vmul.f32 1.442695, %v1461_v25 }
 0x127   :  { %1448 = vmax.xlane.f32.xlu2 %v1447_v13  ;;  %v1450_v13 = vsel %vm1260_vm1, %v6262_v35, -inf }
 0x128   :  { %1445 = vmax.xlane.f32.xlu1 %v1444_v7  ;;  %1433 = vmax.xlane.f32.xlu0 %v1432_v14  ;;  %v1645_v7 = vsel %vm1260_vm1, %v6268_v3, 0.0  ;;  %v1523_v14 = vmul.f32 1.442695, %v1456_v44  ;;  %v1465_v44 = vsub.f32 %v6009_v23, %v6207_v60 }
 0x129   :  { %v6286_v8 = vpop.eup %5080 }
 0x12a   :  { %v6260_v55 = vpop.xlane.xlu2 %1322  ;;  %v6292_v15 = vpop.eup %5082  ;;  %5084 = vpow2.f32 %v1523_v14  ;;  %v1541_v20 = vmul.f32 1.442695, %v1465_v44 }
 0x12b   :  { %v6264_v17 = vpop.xlane.xlu0 %1316  ;;  %v6266_v12 = vpop.xlane.xlu1 %1328  ;;  %5086 = vpow2.f32 %v1519_v46  ;;  %v1663_v36 = vsel %vm1260_vm1, %v6292_v15, 0.0  ;;  %v1463_v46 = vsub.f32 %v6005_v21, %v6205_v9 }
 0x12c   :  { %5088 = vpow2.f32 %v1527_v59  ;;  %v1467_v59 = vsub.f32 %v6015_v30, %v6219_v61  ;;  %v1535_v30 = vmul.f32 1.442695, %v1462_v1 }
 0x12d   :  { %5090 = vpow2.f32 %v1531_v43 }
 0x12e   :  { %5092 = vpow2.f32 %v1533_v16  ;;  %v1545_v21 = vmul.f32 1.442695, %v1467_v59  ;;  %v1466_v16 = vsub.f32 %v6021_v37, %v6223_v11 }
 0x12f   :  { %1439 = vmax.xlane.f32.xlu2 %v1438_v28  ;;  %v1657_v28 = vsel %vm1260_vm1, %v6286_v8, 0.0  ;;  %5094 = vpow2.f32 %v1541_v20  ;;  %v1464_v20 = vsub.f32 %v6027_v40, %v6238_v54 }
 0x130   :  { %1646 = vadd.xlane.f32.xlu1 %v1645_v7  ;;  %1451 = vmax.xlane.f32.xlu0 %v1450_v13  ;;  %v1651_v13 = vsel %vm1260_vm1, %v6282_v29, 0.0  ;;  %v6306_v34 = vpop.eup %5084 }
 0x131   :  { %v6310_v23 = vpop.eup %5086  ;;  %v1654_v44 = vsel %vm1260_vm1, %v6306_v34, 0.0  ;;  %v1539_v37 = vmul.f32 1.442695, %v1464_v20 }
 0x132   :  { %v6284_v48 = vpop.xlane.xlu2 %1313  ;;  %v6316_v14 = vpop.eup %5088  ;;  %v1648_v25 = vsel %vm1260_vm1, %v6310_v23, 0.0 }
 0x133   :  { %v6288_v33 = vpop.xlane.xlu0 %1325  ;;  %v6290_v47 = vpop.xlane.xlu1 %1319 }
 0x134   :  { %v6330_v9 = vpop.eup %5090 }
 0x135   :  { %v6334_v31 = vpop.eup %5092  ;;  %v1666_v59 = vsel %vm1260_vm1, %v6330_v9, 0.0 }
 0x136   :  { %v6340_v43 = vpop.eup %5094 }
 0x137   :  { %1658 = vadd.xlane.f32.xlu2 %v1657_v28  ;;  %v1660_v28 = vsel %vm1260_vm1, %v6316_v14, 0.0  ;;  %v1681_v1 = vsel %vm1260_vm1, %v6340_v43, 0.0 }
 0x138   :  { %1664 = vadd.xlane.f32.xlu1 %v1663_v36  ;;  %1652 = vadd.xlane.f32.xlu0 %v1651_v13  ;;  %v1537_v36 = vmul.f32 1.442695, %v1463_v46  ;;  %v1468_v46 = vsub.f32 %v6029_v41, %v6242_v27 }
 0x13a   :  { %v6308_v22 = vpop.xlane.xlu2 %1331  ;;  %5096 = vpow2.f32 %v1537_v36  ;;  %v1547_v40 = vmul.f32 1.442695, %v1468_v46 }
 0x13b   :  { %v6312_v60 = vpop.xlane.xlu1 %1346  ;;  %v6314_v7 = vpop.xlane.xlu0 %1334  ;;  %5098 = vpow2.f32 %v1545_v21  ;;  %v1469_v21 = vsub.f32 %v6031_v42, %v6244_v49 }
 0x13c   :  { %5100 = vpow2.f32 %v1535_v30  ;;  %v1473_v30 = vsub.f32 %v6039_v50, %v6260_v55 }
 0x13e   :  { %v1557_v42 = vmul.f32 1.442695, %v1473_v30 }
 0x13f   :  { %1649 = vadd.xlane.f32.xlu2 %v1648_v25  ;;  %v1669_v25 = vsel %vm1260_vm1, %v6334_v31, 0.0 }
 0x140   :  { %1655 = vadd.xlane.f32.xlu1 %v1654_v44  ;;  %1661 = vadd.xlane.f32.xlu0 %v1660_v28  ;;  %v1543_v44 = vmul.f32 1.442695, %v1466_v16  ;;  %v6354_v11 = vpop.eup %5096  ;;  %v1471_v16 = vsub.f32 %v6041_v51, %v6264_v17 }
 0x141   :  { %v6358_v41 = vpop.eup %5098  ;;  %v1675_v20 = vsel %vm1260_vm1, %v6354_v11, 0.0 }
 0x142   :  { %v6332_v61 = vpop.xlane.xlu2 %1340  ;;  %8652 = vst [vmem:[#allocation27_spill] sm:$0xff] %v6358_v41  ;;  %v6364_v36 = vpop.eup %5100  ;;  %5102 = vpow2.f32 %v1543_v44  ;;  %v1553_v50 = vmul.f32 1.442695, %v1471_v16 }
 0x143   :  { %v6336_v53 = vpop.xlane.xlu0 %1352  ;;  %v6338_v13 = vpop.xlane.xlu1 %1337  ;;  %5104 = vpow2.f32 %v1539_v37  ;;  %v1672_v46 = vsel %vm1260_vm1, %v6364_v36, 0.0  ;;  %v1475_v37 = vsub.f32 %v6043_v52, %v6266_v12 }
 0x144   :  { %5106 = vpow2.f32 %v1547_v40  ;;  %v1470_v40 = vsub.f32 %v6051_v56, %v6284_v48 }
 0x146   :  { %v1551_v52 = vmul.f32 1.442695, %v1470_v40 }
 0x147   :  { %1667 = vadd.xlane.f32.xlu2 %v1666_v59  ;;  %v1687_v59 = vsel %vm1260_vm1, %v6358_v41, 0.0 }
 0x148   :  { %1682 = vadd.xlane.f32.xlu1 %v1681_v1  ;;  %1670 = vadd.xlane.f32.xlu0 %v1669_v25  ;;  %v1549_v1 = vmul.f32 1.442695, %v1469_v21  ;;  %v6378_v49 = vpop.eup %5102  ;;  %v1474_v21 = vsub.f32 %v6053_v57, %v6288_v33 }
 0x149   :  { %v6382_v51 = vpop.eup %5104  ;;  %v1684_v30 = vsel %vm1260_vm1, %v6378_v49, 0.0 }
 0x14a   :  { %v6356_v54 = vpop.xlane.xlu2 %1349  ;;  %v6388_v44 = vpop.eup %5106  ;;  %5108 = vpow2.f32 %v1549_v1  ;;  %v1559_v56 = vmul.f32 1.442695, %v1474_v21 }
 0x14b   :  { %v6360_v27 = vpop.xlane.xlu0 %1343  ;;  %v6362_v28 = vpop.xlane.xlu1 %1355  ;;  %8655 = vst [vmem:[#allocation30_spill] sm:$0xff] %v6388_v44  ;;  %5110 = vpow2.f32 %v1557_v42  ;;  %v1690_v16 = vsel %vm1260_vm1, %v6388_v44, 0.0  ;;  %v1472_v42 = vsub.f32 %v6055_v58, %v6290_v47 }
 0x14c   :  { %8653 = vst [vmem:[#allocation28_spill] sm:$0xff] %v6362_v28  ;;  %5112 = vpow2.f32 %v1553_v50  ;;  %v1476_v50 = vsub.f32 %v6063_v62, %v6308_v22 }
 0x14e   :  { %v1563_v58 = vmul.f32 1.442695, %v1476_v50 }
 0x14f   :  { %1676 = vadd.xlane.f32.xlu2 %v1675_v20  ;;  %v1678_v20 = vsel %vm1260_vm1, %v6382_v51, 0.0 }
 0x150   :  { %1673 = vadd.xlane.f32.xlu1 %v1672_v46  ;;  %1688 = vadd.xlane.f32.xlu0 %v1687_v59  ;;  %v1561_v46 = vmul.f32 1.442695, %v1475_v37  ;;  %v6402_v12 = vpop.eup %5108  ;;  %v1477_v37 = vsub.f32 %v6065_v63, %v6314_v7 }
 0x151   :  { %v6406_v57 = vpop.eup %5110  ;;  %v1693_v40 = vsel %vm1260_vm1, %v6402_v12, 0.0 }
 0x152   :  { %v6380_v55 = vpop.xlane.xlu2 %1358  ;;  %8656 = vst [vmem:[#allocation31_spill] sm:$0xff] %v6406_v57  ;;  %v6412_v1 = vpop.eup %5112  ;;  %5114 = vpow2.f32 %v1561_v46  ;;  %v1565_v62 = vmul.f32 1.442695, %v1477_v37 }
 0x153   :  { %v6384_v17 = vpop.xlane.xlu0 %1370  ;;  %v6386_v25 = vpop.xlane.xlu1 %1364  ;;  %5116 = vpow2.f32 %v1551_v52  ;;  %v1699_v21 = vsel %vm1260_vm1, %v6412_v1, 0.0  ;;  %v1481_v52 = vsub.f32 %v6067_v0, %v6312_v60 }
 0x154   :  { %8654 = vst [vmem:[#allocation29_spill] sm:$0xff] %v6386_v25  ;;  %5118 = vpow2.f32 %v1559_v56  ;;  %v1479_v56 = vsub.f32 %v6075_v4, %v6332_v61 }
 0x156   :  { %v1569_v0 = vmul.f32 1.442695, %v1479_v56 }
 0x157   :  { %1685 = vadd.xlane.f32.xlu2 %v1684_v30  ;;  %v1705_v30 = vsel %vm1260_vm1, %v6406_v57, 0.0 }
 0x158   :  { %1691 = vadd.xlane.f32.xlu1 %v1690_v16  ;;  %1679 = vadd.xlane.f32.xlu0 %v1678_v20  ;;  %v1555_v16 = vmul.f32 1.442695, %v1472_v42  ;;  %v6426_v47 = vpop.eup %5114  ;;  %v1483_v42 = vsub.f32 %v6077_v5, %v6336_v53 }
 0x159   :  { %v6430_v63 = vpop.eup %5116  ;;  %v1711_v50 = vsel %vm1260_vm1, %v6426_v47, 0.0 }
 0x15a   :  { %v6404_v48 = vpop.xlane.xlu2 %1376  ;;  %v6436_v46 = vpop.eup %5118  ;;  %5120 = vpow2.f32 %v1555_v16  ;;  %v1577_v4 = vmul.f32 1.442695, %v1483_v42 }
 0x15b   :  { %v6408_v33 = vpop.xlane.xlu1 %1373  ;;  %v6410_v59 = vpop.xlane.xlu0 %1361  ;;  %8659 = vst [vmem:[#allocation34_spill] sm:$0xff] %v6436_v46  ;;  %5122 = vpow2.f32 %v1563_v58  ;;  %v1708_v37 = vsel %vm1260_vm1, %v6436_v46, 0.0  ;;  %v1478_v58 = vsub.f32 %v6079_v6, %v6338_v13 }
 0x15c   :  { %8657 = vst [vmem:[#allocation32_spill] sm:$0xff] %v6408_v33  ;;  %5124 = vpow2.f32 %v1565_v62  ;;  %v1482_v62 = vsub.f32 %v6087_v24, %v6356_v54 }
 0x15e   :  { %v1575_v6 = vmul.f32 1.442695, %v1482_v62 }
 0x15f   :  { %1694 = vadd.xlane.f32.xlu2 %v1693_v40  ;;  %v1696_v40 = vsel %vm1260_vm1, %v6430_v63, 0.0 }
 0x160   :  { %1700 = vadd.xlane.f32.xlu1 %v1699_v21  ;;  %1706 = vadd.xlane.f32.xlu0 %v1705_v30  ;;  %v1573_v21 = vmul.f32 1.442695, %v1481_v52  ;;  %v6450_v60 = vpop.eup %5120  ;;  %v1480_v52 = vsub.f32 %v6089_v10, %v6360_v27 }
 0x161   :  { %v6454_v5 = vpop.eup %5122  ;;  %v1702_v56 = vsel %vm1260_vm1, %v6450_v60, 0.0 }
 0x162   :  { %v6428_v22 = vpop.xlane.xlu2 %1367  ;;  %v6460_v16 = vpop.eup %5124  ;;  %5126 = vpow2.f32 %v1573_v21  ;;  %v1571_v24 = vmul.f32 1.442695, %v1480_v52 }
 0x163   :  { %v6432_v7 = vpop.xlane.xlu0 %1379  ;;  %v6434_v20 = vpop.xlane.xlu1 %1382  ;;  %5128 = vpow2.f32 %v1569_v0  ;;  %v1717_v42 = vsel %vm1260_vm1, %v6460_v16, 0.0  ;;  %v1485_v0 = vsub.f32 %v6099_v32, %v6380_v55 }
 0x164   :  { %8658 = vst [vmem:[#allocation33_spill] sm:$0xff] %v6434_v20  ;;  %5130 = vpow2.f32 %v1577_v4  ;;  %v1489_v4 = vsub.f32 %v6101_v45, %v6384_v17 }
 0x166   :  { %v1589_v32 = vmul.f32 1.442695, %v1489_v4 }
 0x167   :  { %1712 = vadd.xlane.f32.xlu2 %v1711_v50  ;;  %v1714_v50 = vsel %vm1260_vm1, %v6454_v5, 0.0 }
 0x168   :  { %1709 = vadd.xlane.f32.xlu1 %v1708_v37  ;;  %1697 = vadd.xlane.f32.xlu0 %v1696_v40  ;;  %v1567_v37 = vmul.f32 1.442695, %v1478_v58  ;;  %v6474_v13 = vpop.eup %5126 }
 0x169   :  { %v6478_v10 = vpop.eup %5128  ;;  %v1729_v58 = vsel %vm1260_vm1, %v6474_v13, 0.0 }
 0x16a   :  { %v6452_v61 = vpop.xlane.xlu2 %1394  ;;  %v6484_v21 = vpop.eup %5130  ;;  %5132 = vpow2.f32 %v1567_v37  ;;  %v1723_v52 = vsel %vm1260_vm1, %v6478_v10, 0.0 }
 0x16b   :  { %v6456_v53 = vpop.xlane.xlu0 %1388  ;;  %v6458_v30 = vpop.xlane.xlu1 %1400  ;;  %8661 = vst [vmem:[#allocation36_spill] sm:$0xff] %v6484_v21  ;;  %5134 = vpow2.f32 %v1575_v6  ;;  %v1735_v62 = vsel %vm1260_vm1, %v6484_v21, 0.0  ;;  %v1491_v6 = vsub.f32 %v6111_v18, %v6404_v48 }
 0x16c   :  { %8660 = vst [vmem:[#allocation35_spill] sm:$0xff] %v6458_v30  ;;  %5136 = vpow2.f32 %v1571_v24  ;;  %v1486_v24 = vsub.f32 %v6113_v19, %v6410_v59 }
 0x16f   :  { %1703 = vadd.xlane.f32.xlu2 %v1702_v56  ;;  %v1581_v56 = vmul.f32 1.442695, %v1485_v0 }
 0x170   :  { %1718 = vadd.xlane.f32.xlu1 %v1717_v42  ;;  %1715 = vadd.xlane.f32.xlu0 %v1714_v50  ;;  %v6496_v42 = vpop.eup %5132 }
 0x171   :  { %v6500_v50 = vpop.eup %5134  ;;  %5138 = vpow2.f32 %v1581_v56  ;;  %v1720_v0 = vsel %vm1260_vm1, %v6496_v42, 0.0 }
 0x172   :  { %v6476_v54 = vpop.xlane.xlu2 %1385  ;;  %v6506_v37 = vpop.eup %5136  ;;  %5140 = vpow2.f32 %v1589_v32  ;;  %v1488_v32 = vsub.f32 %v6123_v38, %v6428_v22 }
 0x173   :  { %v6480_v27 = vpop.xlane.xlu0 %1397  ;;  %v6482_v40 = vpop.xlane.xlu1 %1391  ;;  %v1726_v4 = vsel %vm1260_vm1, %v6506_v37, 0.0 }
 0x177   :  { %1730 = vadd.xlane.f32.xlu2 %v1729_v58  ;;  %v1732_v58 = vsel %vm1260_vm1, %v6500_v50, 0.0  ;;  %v6520_v18 = vpop.eup %5138 }
 0x178   :  { %1736 = vadd.xlane.f32.xlu1 %v1735_v62  ;;  %1724 = vadd.xlane.f32.xlu0 %v1723_v52  ;;  %v1593_v62 = vmul.f32 1.442695, %v1491_v6  ;;  %v1583_v52 = vmul.f32 1.442695, %v1486_v24  ;;  %8663 = vst [vmem:[#allocation38_spill] sm:$0xff] %v6520_v18  ;;  %v6526_v59 = vpop.eup %5140  ;;  %v1741_v24 = vsel %vm1260_vm1, %v6520_v18, 0.0 }
 0x179   :  { %8664 = vst [vmem:[#allocation39_spill] sm:$0xff] %v6526_v59  ;;  %v1753_v6 = vsel %vm1260_vm1, %v6526_v59, 0.0 }
 0x17a   :  { %v6498_v55 = vpop.xlane.xlu2 %1403  ;;  %5142 = vpow2.f32 %v1593_v62 }
 0x17b   :  { %v6502_v45 = vpop.xlane.xlu1 %1418  ;;  %v6504_v17 = vpop.xlane.xlu0 %1406  ;;  %5144 = vpow2.f32 %v1583_v52  ;;  %v8669_v52 = vld [vmem:[#allocation9_spill] sm:$0xff] }
 0x17f   :  { %1721 = vadd.xlane.f32.xlu2 %v1720_v0  ;;  %v1492_v0 = vsub.f32 %v6125_v39, %v6432_v7  ;;  %v8668_v39 = vld [vmem:[#allocation7_spill] sm:$0xff] }
 0x180   :  { %1727 = vadd.xlane.f32.xlu1 %v1726_v4  ;;  %1733 = vadd.xlane.f32.xlu0 %v1732_v58  ;;  %v1587_v4 = vmul.f32 1.442695, %v1488_v32  ;;  %v6538_v62 = vpop.eup %5142  ;;  %v1495_v7 = vsub.f32 %v8668_v39, %v6456_v53 }
 0x181   :  { %v1595_v58 = vmul.f32 1.442695, %v1492_v0  ;;  %8666 = vst [vmem:[#allocation41_spill] sm:$0xff] %v6538_v62  ;;  %v6542_v22 = vpop.eup %5144  ;;  %v1759_v0 = vsel %vm1260_vm1, %v6538_v62, 0.0 }
 0x182   :  { %v6518_v56 = vpop.xlane.xlu2 %1412  ;;  %8667 = vst [vmem:[#allocation42_spill] sm:$0xff] %v6542_v22  ;;  %5146 = vpow2.f32 %v1587_v4  ;;  %v1744_v32 = vsel %vm1260_vm1, %v6542_v22, 0.0 }
 0x183   :  { %8662 = vst [vmem:[#allocation37_spill] sm:$0xff] %v6518_v56  ;;  %v6522_v48 = vpop.xlane.xlu0 %1424  ;;  %v6524_v19 = vpop.xlane.xlu1 %1409  ;;  %5148 = vpow2.f32 %v1595_v58 }
 0x188   :  { %1754 = vadd.xlane.f32.xlu1 %v1753_v6  ;;  %1742 = vadd.xlane.f32.xlu0 %v1741_v24  ;;  %v1494_v6 = vsub.f32 %v8669_v52, %v6476_v54  ;;  %v1601_v24 = vmul.f32 1.442695, %v1495_v7  ;;  %v6554_v4 = vpop.eup %5146  ;;  %v8675_v54 = vld [vmem:[#allocation6_spill] sm:$0xff] }
 0x189   :  { %8671 = vst [vmem:[#allocation9_spill] sm:$0xff] %v6554_v4  ;;  %v6560_v58 = vpop.eup %5148  ;;  %v1497_v39 = vsub.f32 %v8675_v54, %v6452_v61  ;;  %v8676_v52 = vld [vmem:[#allocation10_spill] sm:$0xff] }
 0x18a   :  { %v6536_v26 = vpop.xlane.xlu2 %1421  ;;  %v1599_v59 = vmul.f32 1.442695, %v1494_v6  ;;  %8674 = vst [vmem:[#allocation45_spill] sm:$0xff] %v6560_v58  ;;  %5150 = vpow2.f32 %v1601_v24  ;;  %v1762_v7 = vsel %vm1260_vm1, %v6560_v58, 0.0  ;;  %v1750_v6 = vsel %vm1260_vm1, %v6554_v4, 0.0 }
 0x18b   :  { %8665 = vst [vmem:[#allocation40_spill] sm:$0xff] %v6536_v26  ;;  %v6540_v56 = vpop.xlane.xlu0 %1415  ;;  %v1428_v38 = vpop.xlane.xlu1 %1427 }
 0x18c   :  { %5152 = vpow2.f32 %v1599_v59 }
 0x190   :  { %1745 = vadd.xlane.f32.xlu1 %v1744_v32  ;;  %1760 = vadd.xlane.f32.xlu0 %v1759_v0  ;;  %v1498_v32 = vsub.f32 %v8676_v52, %v6480_v27  ;;  %v1605_v0 = vmul.f32 1.442695, %v1497_v39  ;;  %v8679_v27 = vld [vmem:[#allocation11_spill] sm:$0xff]  ;;  %v8680_v52 = vld [vmem:[#allocation12_spill] sm:$0xff] }
 0x191   :  { %v1496_v54 = vsub.f32 %v8679_v27, %v6482_v40 }
 0x192   :  { %v6552_v26 = vpop.xlane.xlu2 %1430  ;;  %5154 = vpow2.f32 %v1605_v0 }
 0x193   :  { %8670 = vst [vmem:[#allocation7_spill] sm:$0xff] %v6552_v26  ;;  %v6556_v30 = vpop.xlane.xlu0 %1442  ;;  %v6558_v53 = vpop.xlane.xlu1 %1436 }
 0x194   :  { %8672 = vst [vmem:[#allocation43_spill] sm:$0xff] %v6556_v30  ;;  %v6572_v30 = vpop.eup %5150 }
 0x195   :  { %8673 = vst [vmem:[#allocation44_spill] sm:$0xff] %v6558_v53  ;;  %v1607_v53 = vmul.f32 1.442695, %v1498_v32  ;;  %v6576_v59 = vpop.eup %5152  ;;  %v1771_v39 = vsel %vm1260_vm1, %v6572_v30, 0.0 }
 0x196   :  { %8677 = vst [vmem:[#allocation6_spill] sm:$0xff] %v6572_v30  ;;  %v1768_v32 = vsel %vm1260_vm1, %v6576_v59, 0.0 }
 0x197   :  { %8678 = vst [vmem:[#allocation10_spill] sm:$0xff] %v6576_v59  ;;  %5156 = vpow2.f32 %v1607_v53 }
 0x198   :  { %1763 = vadd.xlane.f32.xlu1 %v1762_v7  ;;  %1751 = vadd.xlane.f32.xlu0 %v1750_v6  ;;  %v1500_v7 = vsub.f32 %v8680_v52, %v6498_v55  ;;  %v1603_v6 = vmul.f32 1.442695, %v1496_v54  ;;  %v6588_v0 = vpop.eup %5154  ;;  %v8684_v55 = vld [vmem:[#allocation14_spill] sm:$0xff]  ;;  %v8685_v52 = vld [vmem:[#allocation20_spill] sm:$0xff] }
 0x199   :  { %8682 = vst [vmem:[#allocation12_spill] sm:$0xff] %v6588_v0  ;;  %v1505_v27 = vsub.f32 %v8684_v55, %v6502_v45 }
 0x19a   :  { %v6570_v26 = vpop.xlane.xlu2 %1448  ;;  %v1611_v4 = vmul.f32 1.442695, %v1500_v7  ;;  %5158 = vpow2.f32 %v1603_v6  ;;  %v1777_v7 = vsel %vm1260_vm1, %v6588_v0, 0.0 }
 0x19b   :  { %v1446_v61 = vpop.xlane.xlu1 %1445  ;;  %v6574_v24 = vpop.xlane.xlu0 %1433 }
 0x19c   :  { %5160 = vpow2.f32 %v1611_v4 }
 0x19d   :  { %v6594_v53 = vpop.eup %5156 }
 0x19e   :  { %8683 = vst [vmem:[#allocation46_spill] sm:$0xff] %v6594_v53  ;;  %v1780_v54 = vsel %vm1260_vm1, %v6594_v53, 0.0 }
 0x1a0   :  { %1772 = vadd.xlane.f32.xlu1 %v1771_v39  ;;  %1769 = vadd.xlane.f32.xlu0 %v1768_v32  ;;  %v1508_v39 = vsub.f32 %v8685_v52, %v1428_v38  ;;  %v1621_v32 = vmul.f32 1.442695, %v1505_v27  ;;  %v8688_v38 = vld [vmem:[#allocation16_spill] sm:$0xff]  ;;  %v8689_v52 = vld [vmem:[#allocation25_spill] sm:$0xff] }
 0x1a1   :  { %v1507_v4 = vsub.f32 %v8688_v38, %v6522_v48  ;;  %v1514_v53 = vsub.f32 %v8689_v52, %v1446_v61  ;;  %v8692_v52 = vld [vmem:[#allocation13_spill] sm:$0xff] }
 0x1a2   :  { %v6586_v20 = vpop.xlane.xlu2 %1439  ;;  %v1627_v30 = vmul.f32 1.442695, %v1508_v39  ;;  %5162 = vpow2.f32 %v1621_v32 }
 0x1a3   :  { %8681 = vst [vmem:[#allocation11_spill] sm:$0xff] %v6586_v20  ;;  %v6590_v33 = vpop.xlane.xlu1 %1646  ;;  %v6592_v40 = vpop.xlane.xlu0 %1451 }
 0x1a4   :  { %v6603_v20 = vpop.eup %5158  ;;  %5164 = vpow2.f32 %v1627_v30 }
 0x1a5   :  { %8686 = vst [vmem:[#allocation14_spill] sm:$0xff] %v6603_v20  ;;  %v6607_v45 = vpop.eup %5160  ;;  %v1774_v27 = vsel %vm1260_vm1, %v6603_v20, 0.0 }
 0x1a6   :  { %8687 = vst [vmem:[#allocation20_spill] sm:$0xff] %v6607_v45  ;;  %v1786_v39 = vsel %vm1260_vm1, %v6607_v45, 0.0 }
 0x1a8   :  { %1781 = vadd.xlane.f32.xlu1 %v1780_v54  ;;  %1778 = vadd.xlane.f32.xlu0 %v1777_v7  ;;  %v1625_v54 = vmul.f32 1.442695, %v1507_v4  ;;  %v1639_v7 = vmul.f32 1.442695, %v1514_v53  ;;  %v6621_v48 = vpop.eup %5162  ;;  %v1501_v4 = vsub.f32 %v8692_v52, %v6504_v17 }
 0x1a9   :  { %8690 = vst [vmem:[#allocation16_spill] sm:$0xff] %v6621_v48  ;;  %v1801_v20 = vsel %vm1260_vm1, %v6621_v48, 0.0 }
 0x1aa   :  { %v1659_v59 = vpop.xlane.xlu2 %1658  ;;  %v6623_v30 = vpop.eup %5164  ;;  %v1613_v45 = vmul.f32 1.442695, %v1501_v4 }
 0x1ab   :  { %v6605_v6 = vpop.xlane.xlu1 %1664  ;;  %v1653_v25 = vpop.xlane.xlu0 %1652  ;;  %v6612_v0 = vadd.f32 1e-12, %v1659_v59  ;;  %8691 = vst [vmem:[#allocation25_spill] sm:$0xff] %v6623_v30 }
 0x1ac   :  { %v1839_v55 = vadd.f32 1e-12, %v1653_v25 }
 0x1ad   :  { %vm1966_vm11 = vweird.f32 %v6612_v0 }
 0x1ae   :  { %5166 = vrcp.f32 %v1839_v55  ;;  %v1942_v17 = vand.u32 2147483648, %v1839_v55  ;;  %v1940_v48 = vand.u32 2147483647, %v1839_v55  ;;  %vm1936_vm3 = vweird.f32 %v1839_v55 }
 0x1af   :  { %5168 = vrcp.f32 %v6612_v0 }
 0x1b0   :  { %1775 = vadd.xlane.f32.xlu1 %v1774_v27  ;;  %1787 = vadd.xlane.f32.xlu0 %v1786_v39  ;;  %5170 = vpow2.f32 %v1625_v54  ;;  %v1810_v54 = vsel %vm1260_vm1, %v6623_v30, 0.0  ;;  %v1943_v57 = vor.u32 1.1754944e-38, %v1942_v17  ;;  %vm1941_vm5 = vcmp.eq.f32.partialorder %v1940_v48, 8.507059e+37 }
 0x1b1   :  { %5172 = vpow2.f32 %v1639_v7 }
 0x1b2   :  { %v6619_v25 = vpop.xlane.xlu2 %1649 }
 0x1b3   :  { %v1656_v61 = vpop.xlane.xlu1 %1655  ;;  %v1662_v59 = vpop.xlane.xlu0 %1661 }
 0x1b4   :  { %v6625_v32 = vadd.f32 1e-12, %v1656_v61  ;;  %v5167_v38 = vpop.eup %5166  ;;  %v6629_v27 = vadd.f32 1e-12, %v1662_v59 }
 0x1b5   :  { %v1932_v53 = vmul.f32 %v5167_v38, %v1839_v55  ;;  %v6632_v39 = vpop.eup %5168  ;;  %vm1937_vm2 = vweird.f32 %v5167_v38 }
 0x1b6   :  { %5174 = vrcp.f32 %v6625_v32  ;;  %v6639_v7 = vpop.eup %5170  ;;  %v1962_v59 = vmul.f32 %v6632_v39, %v6612_v0  ;;  %vm1938_vm4 = vmor %vm1936_vm3, %vm1937_vm2  ;;  %v1955_v48 = vand.u32 2147483647, %v6625_v32  ;;  %vm1951_vm7 = vweird.f32 %v6625_v32 }
 0x1b7   :  { %v1933_v61 = vsub.f32 1.0, %v1932_v53  ;;  %5176 = vrcp.f32 %v6629_v27  ;;  %8693 = vst [vmem:[#allocation13_spill] sm:$0xff] %v6639_v7  ;;  %v6645_v21 = vpop.eup %5172  ;;  %v8695_v53 = vld [vmem:[#allocation17_spill] sm:$0xff]  ;;  %v1807_v41 = vsel %vm1260_vm1, %v6639_v7, 0.0  ;;  %vm1967_vm10 = vweird.f32 %v6632_v39 }
 0x1b8   :  { %1802 = vadd.xlane.f32.xlu1 %v1801_v20  ;;  %1811 = vadd.xlane.f32.xlu0 %v1810_v54  ;;  %8694 = vst [vmem:[#allocation47_spill] sm:$0xff] %v6645_v21  ;;  %v1502_v54 = vsub.f32 %v8695_v53, %v6524_v19  ;;  %5178 = vpow2.f32 %v1613_v45  ;;  %v1963_v18 = vsub.f32 1.0, %v1962_v59  ;;  %v1828_v62 = vsel %vm1260_vm1, %v6645_v21, 0.0  ;;  %vm6690_vm12 = vmor %vm1966_vm11, %vm1967_vm10 }
 0x1b9   :  { %v1934_v28 = vmul.f32 %v5167_v38, %v1933_v61  ;;  %v1957_v45 = vand.u32 2147483648, %v6625_v32  ;;  %vm1956_vm9 = vcmp.eq.f32.partialorder %v1955_v48, 8.507059e+37  ;;  %vm1981_vm15 = vweird.f32 %v6629_v27 }
 0x1ba   :  { %v6643_v52 = vpop.xlane.xlu2 %1667  ;;  %v1964_v17 = vmul.f32 %v6632_v39, %v1963_v18 }
 0x1bb   :  { %v6647_v30 = vpop.xlane.xlu1 %1682  ;;  %v6649_v20 = vpop.xlane.xlu0 %1670  ;;  %v1935_v46 = vadd.f32 %v5167_v38, %v1934_v28  ;;  %v1615_v28 = vmul.f32 1.442695, %v1502_v54  ;;  %v1958_v53 = vor.u32 1.1754944e-38, %v1957_v45  ;;  %v8696_v54 = vld [vmem:[#allocation19_spill] sm:$0xff] }
 0x1bc   :  { %v5175_v4 = vpop.eup %5174  ;;  %v1504_v18 = vsub.f32 %v8696_v54, %v6540_v56  ;;  %v1970_v56 = vand.u32 2147483647, %v6612_v0 }
 0x1bd   :  { %v1947_v22 = vmul.f32 %v5175_v4, %v6625_v32  ;;  %v1939_v61 = vsel %vm1938_vm4, %v5167_v38, %v1935_v46  ;;  %v6654_v44 = vpop.eup %5176  ;;  %vm1952_vm6 = vweird.f32 %v5175_v4  ;;  %5180 = vpow2.f32 %v1615_v28 }
 0x1be   :  { %v1944_v19 = vsel %vm1941_vm5, %v1943_v57, %v1939_v61  ;;  %vm1953_vm8 = vmor %vm1951_vm7, %vm1952_vm6  ;;  %v1972_v28 = vand.u32 2147483648, %v6612_v0  ;;  %v8700_v0 = vld [vmem:[#allocation24_spill] sm:$0xff]  ;;  %vm1971_vm13 = vcmp.eq.f32.partialorder %v1970_v56, 8.507059e+37  ;;  %vm1982_vm14 = vweird.f32 %v6654_v44 }
 0x1bf   :  { %v1948_v58 = vsub.f32 1.0, %v1947_v22  ;;  %v1945_v55 = vmul.f32 %v6282_v29, %v1944_v19  ;;  %v1977_v22 = vmul.f32 %v6654_v44, %v6629_v27  ;;  %v1987_v56 = vand.u32 2147483648, %v6629_v27  ;;  %vm6731_vm2 = vmor %vm1981_vm15, %vm1982_vm14 }
 0x1c0   :  { %1808 = vadd.xlane.f32.xlu1 %v1807_v41  ;;  %1829 = vadd.xlane.f32.xlu0 %v1828_v62  ;;  %v6673_v62 = vpop.eup %5178 }
 0x1c1   :  { %v1949_v46 = vmul.f32 %v5175_v4, %v1948_v58  ;;  %2923 = vxpose.xlu2.b32.start [1/2] (short) (narrow) %v1945_v55, 16  ;;  %v6676_v58 = vadd.f32 1e-12, %v6605_v6  ;;  %v1978_v19 = vsub.f32 1.0, %v1977_v22  ;;  %v1789_v32 = vsel %vm1260_vm1, %v6673_v62, 0.0 }
 0x1c2   :  { %v1677_v38 = vpop.xlane.xlu2 %1676 }
 0x1c3   :  { %v6666_v59 = vadd.f32 1e-12, %v1677_v38  ;;  %v6668_v57 = vpop.xlane.xlu1 %1673  ;;  %v6670_v41 = vpop.xlane.xlu0 %1688  ;;  %v1950_v29 = vadd.f32 %v5175_v4, %v1949_v46  ;;  %v1965_v46 = vadd.f32 %v6632_v39, %v1964_v17  ;;  %v1979_v38 = vmul.f32 %v6654_v44, %v1978_v19 }
 0x1c4   :  { %v6694_v48 = vpop.eup %5180  ;;  %v2000_v21 = vand.u32 2147483647, %v6676_v58  ;;  %vm1996_vm10 = vweird.f32 %v6676_v58 }
 0x1c5   :  { %5182 = vrcp.f32 %v6666_v59  ;;  %v1954_v61 = vsel %vm1953_vm8, %v5175_v4, %v1950_v29  ;;  %v1619_v4 = vmul.f32 1.442695, %v1504_v18  ;;  %8699 = vst [vmem:[#allocation17_spill] sm:$0xff] %v6694_v48  ;;  %v1515_v29 = vsub.f32 %v8700_v0, %v6570_v26 }
 0x1c6   :  { %v1959_v55 = vsel %vm1956_vm9, %v1958_v53, %v1954_v61  ;;  %5184 = vrcp.f32 %v6676_v58  ;;  %v1973_v18 = vor.u32 1.1754944e-38, %v1972_v28  ;;  %v6709_v61 = vadd.f32 1e-12, %v6643_v52 }
 0x1c7   :  { %v1960_v6 = vmul.f32 %v6306_v34, %v1959_v55  ;;  %v1969_v34 = vsel %vm6690_vm12, %v6632_v39, %v1965_v46  ;;  %5186 = vpow2.f32 %v1619_v4  ;;  %v1516_v26 = vsub.f32 %v6262_v35, %v6592_v40 }
 0x1c8   :  { %1790 = vadd.xlane.f32.xlu1 %v1789_v32  ;;  %v1974_v39 = vsel %vm1971_vm13, %v1973_v18, %v1969_v34  ;;  %v1980_v46 = vadd.f32 %v6654_v44, %v1979_v38  ;;  %v1641_v52 = vmul.f32 1.442695, %v1515_v29  ;;  %v1792_v28 = vsel %vm1260_vm1, %v6694_v48, 0.0 }
 0x1c9   :  { %2924 = vxpose.xlu2.b32.end [2/2] (short) (narrow) %v1960_v6, 16  ;;  %v1975_v4 = vmul.f32 %v6286_v8, %v1974_v39  ;;  %v1985_v35 = vand.u32 2147483647, %v6629_v27  ;;  %v1643_v34 = vmul.f32 1.442695, %v1516_v26  ;;  %v1988_v39 = vor.u32 1.1754944e-38, %v1987_v56 }
 0x1ca   :  { %v6696_v22 = vpop.xlane.xlu2 %1685  ;;  %v1984_v0 = vsel %vm6731_vm2, %v6654_v44, %v1980_v46  ;;  %v6742_v27 = vadd.f32 1e-12, %v6649_v20  ;;  %vm2056_vm5 = vweird.f32 %v6666_v59  ;;  %v2060_v45 = vand.u32 2147483647, %v6666_v59 }
 0x1cb   :  { %v6702_v17 = vpop.eup %5182  ;;  %v6706_v53 = vpop.xlane.xlu1 %1691  ;;  %vm1986_vm3 = vcmp.eq.f32.partialorder %v1985_v35, 8.507059e+37  ;;  %vm2001_vm14 = vcmp.eq.f32.partialorder %v2000_v21, 8.507059e+37  ;;  %vm2011_vm15 = vweird.f32 %v6709_v61 }
 0x1cc   :  { %v1680_v54 = vpop.xlane.xlu0 %1679  ;;  %v2052_v55 = vmul.f32 %v6702_v17, %v6666_v59  ;;  %v6715_v19 = vpop.eup %5184  ;;  %v1989_v44 = vsel %vm1986_vm3, %v1988_v39, %v1984_v0  ;;  %vm2057_vm4 = vweird.f32 %v6702_v17  ;;  %v6778_v0 = vadd.f32 1e-12, %v6668_v57 }
 0x1cd   :  { %v6713_v32 = vadd.f32 1e-12, %v1680_v54  ;;  %v1992_v40 = vmul.f32 %v6715_v19, %v6676_v58  ;;  %v6739_v29 = vpop.eup %5186  ;;  %vm6770_vm6 = vmor %vm2056_vm5, %vm2057_vm4  ;;  %vm2061_vm7 = vcmp.eq.f32.partialorder %v2060_v45, 8.507059e+37  ;;  %vm1997_vm8 = vweird.f32 %v6715_v19 }
 0x1ce   :  { %v2053_v6 = vsub.f32 1.0, %v2052_v55  ;;  %v1798_v56 = vsel %vm1260_vm1, %v6739_v29, 0.0  ;;  %vm6809_vm11 = vmor %vm1996_vm10, %vm1997_vm8  ;;  %vm2026_vm10 = vweird.f32 %v6742_v27 }
 0x1cf   :  { %5188 = vrcp.f32 %v6713_v32  ;;  %v1993_v46 = vsub.f32 1.0, %v1992_v40  ;;  %v1990_v40 = vmul.f32 %v6316_v14, %v1989_v44  ;;  %vm2071_vm12 = vweird.f32 %v6713_v32 }
 0x1d0   :  { %5190 = vrcp.f32 %v6709_v61  ;;  %1793 = vadd.xlane.f32.xlu1 %v1792_v28  ;;  %v2054_v8 = vmul.f32 %v6702_v17, %v2053_v6 }
 0x1d1   :  { %2984 = vxpose.xlu2.b32.start [1/2] (short) (narrow) %v1975_v4, 16  ;;  %5192 = vpow2.f32 %v1641_v52  ;;  %v1510_v52 = vsub.f32 %v6240_v2, %v6574_v24  ;;  %v2062_v4 = vand.u32 2147483648, %v6666_v59  ;;  %v1994_v24 = vmul.f32 %v6715_v19, %v1993_v46 }
 0x1d2   :  { %v1695_v38 = vpop.xlane.xlu2 %1694  ;;  %v2055_v28 = vadd.f32 %v6702_v17, %v2054_v8 }
 0x1d3   :  { %v6744_v54 = vadd.f32 1e-12, %v1695_v38  ;;  %v6746_v18 = vpop.xlane.xlu1 %1700  ;;  %v1631_v44 = vmul.f32 1.442695, %v1510_v52  ;;  %v2063_v46 = vor.u32 1.1754944e-38, %v2062_v4  ;;  %v1995_v2 = vadd.f32 %v6715_v19, %v1994_v24 }
 0x1d4   :  { %v6748_v55 = vpop.xlane.xlu0 %1706  ;;  %v2059_v14 = vsel %vm6770_vm6, %v6702_v17, %v2055_v28  ;;  %v2002_v17 = vand.u32 2147483648, %v6676_v58 }
 0x1d5   :  { %v6750_v26 = vpop.eup %5188  ;;  %5194 = vrcp.f32 %v6744_v54  ;;  %v2064_v52 = vsel %vm2061_vm7, %v2063_v46, %v2059_v14  ;;  %v2015_v14 = vand.u32 2147483647, %v6709_v61  ;;  %vm2146_vm5 = vweird.f32 %v6744_v54 }
 0x1d6   :  { %v6753_v6 = vpop.eup %5190  ;;  %5196 = vpow2.f32 %v1643_v34  ;;  %v2067_v20 = vmul.f32 %v6750_v26, %v6713_v32  ;;  %vm2072_vm9 = vweird.f32 %v6750_v26  ;;  %v2065_v24 = vmul.f32 %v6354_v11, %v2064_v52 }
 0x1d7   :  { %5198 = vrcp.f32 %v6742_v27  ;;  %v2007_v34 = vmul.f32 %v6753_v6, %v6709_v61  ;;  %v6775_v38 = vpop.eup %5192  ;;  %vm6824_vm13 = vmor %vm2071_vm12, %vm2072_vm9  ;;  %vm2012_vm3 = vweird.f32 %v6753_v6  ;;  %vm2016_vm8 = vcmp.eq.f32.partialorder %v2015_v14, 8.507059e+37 }
 0x1d8   :  { %v2068_v35 = vsub.f32 1.0, %v2067_v20  ;;  %1799 = vadd.xlane.f32.xlu1 %v1798_v56  ;;  %8705 = vst [vmem:[#allocation19_spill] sm:$0xff] %v6775_v38  ;;  %5200 = vrcp.f32 %v6778_v0  ;;  %v1831_v45 = vsel %vm1260_vm1, %v6775_v38, 0.0  ;;  %vm6866_vm6 = vmor %vm2011_vm15, %vm2012_vm3  ;;  %v2030_v14 = vand.u32 2147483647, %v6742_v27 }
 0x1d9   :  { %2985 = vxpose.xlu2.b32.end [2/2] (short) (narrow) %v1990_v40, 16 }
 0x1da   :  { %v1713_v8 = vpop.xlane.xlu2 %1712  ;;  %v2069_v59 = vmul.f32 %v6750_v26, %v2068_v35  ;;  %v2008_v35 = vsub.f32 1.0, %v2007_v34  ;;  %v2077_v34 = vand.u32 2147483648, %v6713_v32 }
 0x1db   :  { %v6784_v39 = vpop.eup %5194  ;;  %v6786_v20 = vpop.xlane.xlu1 %1709  ;;  %v6840_v38 = vadd.f32 1e-12, %v1713_v8 }
 0x1dc   :  { %v1698_v56 = vpop.xlane.xlu0 %1697  ;;  %v6789_v7 = vpop.eup %5196  ;;  %v2142_v57 = vmul.f32 %v6784_v39, %v6744_v54  ;;  %v2070_v4 = vadd.f32 %v6750_v26, %v2069_v59  ;;  %v2075_v59 = vand.u32 2147483647, %v6713_v32  ;;  %v2009_v46 = vmul.f32 %v6753_v6, %v2008_v35 }
 0x1dd   :  { %8706 = vst [vmem:[#allocation24_spill] sm:$0xff] %v6789_v7  ;;  %v6793_v40 = vadd.f32 1e-12, %v1698_v56  ;;  %v6796_v28 = vpop.eup %5198  ;;  %v1834_v58 = vsel %vm1260_vm1, %v6789_v7, 0.0  ;;  %v2003_v32 = vor.u32 1.1754944e-38, %v2002_v17  ;;  %v2017_v7 = vand.u32 2147483648, %v6709_v61 }
 0x1de   :  { %v2143_v48 = vsub.f32 1.0, %v2142_v57  ;;  %v2022_v56 = vmul.f32 %v6796_v28, %v6742_v27  ;;  %v2074_v52 = vsel %vm6824_vm13, %v6750_v26, %v2070_v4  ;;  %v6838_v35 = vpop.eup %5200  ;;  %vm2076_vm2 = vcmp.eq.f32.partialorder %v2075_v59, 8.507059e+37 }
 0x1df   :  { %5202 = vrcp.f32 %v6793_v40  ;;  %vm2147_vm4 = vweird.f32 %v6784_v39  ;;  %v2037_v59 = vmul.f32 %v6838_v35, %v6778_v0  ;;  %v2018_v61 = vor.u32 1.1754944e-38, %v2017_v7 }
 0x1e0   :  { %5204 = vpow2.f32 %v1631_v44  ;;  %1832 = vadd.xlane.f32.xlu1 %v1831_v45  ;;  %v1999_v44 = vsel %vm6809_vm11, %v6715_v19, %v1995_v2  ;;  %v2144_v45 = vmul.f32 %v6784_v39, %v2143_v48  ;;  %v2078_v2 = vor.u32 1.1754944e-38, %v2077_v34  ;;  %vm6874_vm7 = vmor %vm2146_vm5, %vm2147_vm4 }
 0x1e1   :  { %3167 = vxpose.xlu2.b32.start [1/2] (short) (narrow) %v2065_v24, 16  ;;  %v2004_v17 = vsel %vm2001_vm14, %v2003_v32, %v1999_v44  ;;  %v2010_v48 = vadd.f32 %v6753_v6, %v2009_v46  ;;  %v2023_v4 = vsub.f32 1.0, %v2022_v56  ;;  %v2152_v56 = vand.u32 2147483648, %v6744_v54 }
 0x1e2   :  { %v6829_v57 = vpop.xlane.xlu2 %1703  ;;  %v2079_v26 = vsel %vm2076_vm2, %v2078_v2, %v2074_v52  ;;  %v2145_v8 = vadd.f32 %v6784_v39, %v2144_v45  ;;  %v2005_v44 = vmul.f32 %v6292_v15, %v2004_v17  ;;  %v2150_v15 = vand.u32 2147483647, %v6744_v54 }
 0x1e3   :  { %v1719_v19 = vpop.xlane.xlu1 %1718  ;;  %v2080_v32 = vmul.f32 %v6382_v51, %v2079_v26  ;;  %v2024_v51 = vmul.f32 %v6796_v28, %v2023_v4  ;;  %v2038_v26 = vsub.f32 1.0, %v2037_v59  ;;  %vm2027_vm11 = vweird.f32 %v6796_v28 }
 0x1e4   :  { %v6842_v21 = vadd.f32 1e-12, %v1719_v19  ;;  %v1716_v45 = vpop.xlane.xlu0 %1715  ;;  %v2014_v19 = vsel %vm6866_vm6, %v6753_v6, %v2010_v48  ;;  %v2149_v54 = vsel %vm6874_vm7, %v6784_v39, %v2145_v8  ;;  %v2153_v48 = vor.u32 1.1754944e-38, %v2152_v56  ;;  %vm6909_vm13 = vmor %vm2026_vm10, %vm2027_vm11 }
 0x1e5   :  { %v6844_v24 = vpop.eup %5202  ;;  %v2019_v4 = vsel %vm2016_vm8, %v2018_v61, %v2014_v19  ;;  %vm2151_vm9 = vcmp.eq.f32.partialorder %v2150_v15, 8.507059e+37  ;;  %v2025_v8 = vadd.f32 %v6796_v28, %v2024_v51  ;;  %v2032_v56 = vand.u32 2147483648, %v6742_v27 }
 0x1e6   :  { %v6848_v34 = vpop.eup %5204  ;;  %v2157_v11 = vmul.f32 %v6844_v24, %v6793_v40  ;;  %5206 = vrcp.f32 %v6842_v21  ;;  %v2154_v39 = vsel %vm2151_vm9, %v2153_v48, %v2149_v54  ;;  %vm2162_vm12 = vweird.f32 %v6844_v24 }
 0x1e7   :  { %8711 = vst [vmem:[#allocation48_spill] sm:$0xff] %v6848_v34  ;;  %5208 = vrcp.f32 %v6840_v38  ;;  %v1816_v6 = vsel %vm1260_vm1, %v6848_v34, 0.0  ;;  %v2167_v52 = vand.u32 2147483648, %v6793_v40  ;;  %v2039_v15 = vmul.f32 %v6838_v35, %v2038_v26 }
 0x1e8   :  { %v2158_v46 = vsub.f32 1.0, %v2157_v11  ;;  %1835 = vadd.xlane.f32.xlu1 %v1834_v58  ;;  %v2155_v19 = vmul.f32 %v6402_v12, %v2154_v39  ;;  %vm2161_vm14 = vweird.f32 %v6793_v40  ;;  %v2029_v61 = vsel %vm6909_vm13, %v6796_v28, %v2025_v8 }
 0x1e9   :  { %3045 = vxpose.xlu0.b32.start [1/2] (short) (narrow) %v2005_v44, 16  ;;  %3168 = vxpose.xlu2.b32.end [2/2] (short) (narrow) %v2080_v32, 16  ;;  %v6889_v44 = vadd.f32 1e-12, %v1716_v45  ;;  %v2020_v32 = vmul.f32 %v6330_v9, %v2019_v4  ;;  %v2165_v9 = vand.u32 2147483647, %v6793_v40  ;;  %vm6920_vm15 = vmor %vm2161_vm14, %vm2162_vm12  ;;  %v2040_v4 = vadd.f32 %v6838_v35, %v2039_v15 }
 0x1ea   :  { %v6879_v2 = vpop.xlane.xlu2 %1730  ;;  %v2159_v17 = vmul.f32 %v6844_v24, %v2158_v46  ;;  %v2033_v54 = vor.u32 1.1754944e-38, %v2032_v56  ;;  %v6929_v26 = vadd.f32 1e-12, %v6746_v18  ;;  %vm2031_vm2 = vcmp.eq.f32.partialorder %v2030_v14, 8.507059e+37 }
 0x1eb   :  { %5210 = vrcp.f32 %v6889_v44  ;;  %v2168_v28 = vor.u32 1.1754944e-38, %v2167_v52  ;;  %vm2166_vm3 = vcmp.eq.f32.partialorder %v2165_v9, 8.507059e+37  ;;  %vm2042_vm4 = vweird.f32 %v6838_v35 }
 0x1ec   :  { %v6887_v11 = vpop.eup %5206  ;;  %v2160_v46 = vadd.f32 %v6844_v24, %v2159_v17  ;;  %v2034_v48 = vsel %vm2031_vm2, %v2033_v54, %v2029_v61  ;;  %vm2041_vm5 = vweird.f32 %v6778_v0  ;;  %v2045_v18 = vand.u32 2147483647, %v6778_v0 }
 0x1ed   :  { %v2262_v7 = vmul.f32 %v6887_v11, %v6842_v21  ;;  %v6896_v59 = vpop.eup %5208  ;;  %vm2267_vm6 = vweird.f32 %v6887_v11  ;;  %v2035_v56 = vmul.f32 %v6334_v31, %v2034_v48  ;;  %vm6945_vm7 = vmor %vm2041_vm5, %vm2042_vm4  ;;  %vm2266_vm8 = vweird.f32 %v6842_v21 }
 0x1ee   :  { %v2232_v51 = vmul.f32 %v6896_v59, %v6840_v38  ;;  %v2164_v17 = vsel %vm6920_vm15, %v6844_v24, %v2160_v46  ;;  %v2047_v24 = vand.u32 2147483648, %v6778_v0  ;;  %v2044_v0 = vsel %vm6945_vm7, %v6838_v35, %v2040_v4  ;;  %vm2268_vm9 = vmor %vm2266_vm8, %vm2267_vm6 }
 0x1ef   :  { %v2263_v45 = vsub.f32 1.0, %v2262_v7  ;;  %v2169_v7 = vsel %vm2166_vm3, %v2168_v28, %v2164_v17  ;;  %v2270_v15 = vand.u32 2147483647, %v6842_v21  ;;  %vm2046_vm10 = vcmp.eq.f32.partialorder %v2045_v18, 8.507059e+37  ;;  %v6984_v18 = vpop.xlane.xlu1 %1736 }
 0x1f0   :  { %1817 = vadd.xlane.f32.xlu1 %v1816_v6  ;;  %v2233_v39 = vsub.f32 1.0, %v2232_v51  ;;  %v2170_v52 = vmul.f32 %v6430_v63, %v2169_v7  ;;  %v2048_v31 = vor.u32 1.1754944e-38, %v2047_v24  ;;  %v6961_v9 = vadd.f32 1e-12, %v6829_v57  ;;  %v6971_v57 = vpop.xlane.xlu0 %1724 }
 0x1f1   :  { %3046 = vxpose.xlu0.b32.end [2/2] (short) (narrow) %v2020_v32, 16  ;;  %3350 = vxpose.xlu2.b32.start [1/2] (short) (narrow) %v2155_v19, 16  ;;  %v2264_v40 = vmul.f32 %v6887_v11, %v2263_v45  ;;  %v6937_v8 = vpop.eup %5210  ;;  %v2272_v32 = vand.u32 2147483648, %v6842_v21  ;;  %vm2271_vm11 = vcmp.eq.f32.partialorder %v2270_v15, 8.507059e+37  ;;  %vm2237_vm12 = vweird.f32 %v6896_v59 }
 0x1f2   :  { %v1722_v27 = vpop.xlane.xlu2 %1721  ;;  %v2247_v45 = vmul.f32 %v6937_v8, %v6889_v44  ;;  %v2234_v19 = vmul.f32 %v6896_v59, %v2233_v39  ;;  %v2049_v35 = vsel %vm2046_vm10, %v2048_v31, %v2044_v0  ;;  %vm2236_vm13 = vweird.f32 %v6840_v38 }
 0x1f3   :  { %v6931_v6 = vadd.f32 1e-12, %v1722_v27  ;;  %v2265_v14 = vadd.f32 %v6887_v11, %v2264_v40  ;;  %v2273_v51 = vor.u32 1.1754944e-38, %v2272_v32  ;;  %v2242_v40 = vand.u32 2147483648, %v6840_v38  ;;  %vm6977_vm14 = vmor %vm2236_vm13, %vm2237_vm12 }
 0x1f4   :  { %v2248_v12 = vsub.f32 1.0, %v2247_v45  ;;  %v2235_v54 = vadd.f32 %v6896_v59, %v2234_v19  ;;  %v2240_v28 = vand.u32 2147483647, %v6840_v38  ;;  %v6992_v46 = vadd.f32 1e-12, %v6590_v33 }
 0x1f5   :  { %5212 = vrcp.f32 %v6931_v6  ;;  %v2269_v63 = vsel %vm2268_vm9, %v6887_v11, %v2265_v14  ;;  %v2050_v11 = vmul.f32 %v6364_v36, %v2049_v35  ;;  %v2287_v48 = vand.u32 2147483648, %v6931_v6 }
 0x1f6   :  { %5214 = vrcp.f32 %v6929_v26  ;;  %v2274_v27 = vsel %vm2271_vm11, %v2273_v51, %v2269_v63  ;;  %v2285_v36 = vand.u32 2147483647, %v6931_v6  ;;  %v2239_v38 = vsel %vm6977_vm14, %v6896_v59, %v2235_v54 }
 0x1f7   :  { %5216 = vrcp.f32 %v6961_v9  ;;  %v2275_v4 = vmul.f32 %v6460_v16, %v2274_v27  ;;  %v2249_v16 = vmul.f32 %v6937_v8, %v2248_v12  ;;  %v2243_v14 = vor.u32 1.1754944e-38, %v2242_v40  ;;  %v1728_v12 = vpop.xlane.xlu1 %1727 }
 0x1f8   :  { %vm2281_vm2 = vweird.f32 %v6931_v6  ;;  %vm2241_vm3 = vcmp.eq.f32.partialorder %v2240_v28, 8.507059e+37  ;;  %v2288_v32 = vor.u32 1.1754944e-38, %v2287_v48  ;;  %vm2286_vm5 = vcmp.eq.f32.partialorder %v2285_v36, 8.507059e+37  ;;  %v1734_v35 = vpop.xlane.xlu0 %1733 }
 0x1f9   :  { %3106 = vxpose.xlu0.b32.start [1/2] (short) (narrow) %v2035_v56, 16  ;;  %3351 = vxpose.xlu2.b32.end [2/2] (short) (narrow) %v2170_v52, 16  ;;  %v6995_v52 = vadd.f32 1e-12, %v6879_v2  ;;  %v2244_v0 = vsel %vm2241_vm3, %v2243_v14, %v2239_v38  ;;  %v2250_v31 = vadd.f32 %v6937_v8, %v2249_v16  ;;  %vm2252_vm6 = vweird.f32 %v6937_v8 }
 0x1fa   :  { %v2257_v33 = vand.u32 2147483648, %v6889_v44  ;;  %5218 = vrcp.f32 %v6992_v46  ;;  %v2245_v19 = vmul.f32 %v6426_v47, %v2244_v0  ;;  %vm2251_vm7 = vweird.f32 %v6889_v44 }
 0x1fb   :  { %v5213_v58 = vpop.eup %5212  ;;  %v2255_v2 = vand.u32 2147483647, %v6889_v44  ;;  %5220 = vrcp.f32 %v6995_v52  ;;  %vm2253_vm8 = vmor %vm2251_vm7, %vm2252_vm6  ;;  %v7012_v27 = vadd.f32 1e-12, %v1734_v35  ;;  %v2182_v40 = vand.u32 2147483648, %v6929_v26 }
 0x1fc   :  { %v2277_v21 = vmul.f32 %v5213_v58, %v6931_v6  ;;  %v6964_v61 = vpop.eup %5214  ;;  %vm2282_vm15 = vweird.f32 %v5213_v58  ;;  %v2254_v51 = vsel %vm2253_vm8, %v6937_v8, %v2250_v31  ;;  %v2258_v47 = vor.u32 1.1754944e-38, %v2257_v33 }
 0x1fd   :  { %v2172_v39 = vmul.f32 %v6964_v61, %v6929_v26  ;;  %vm2283_vm4 = vmor %vm2281_vm2, %vm2282_vm15  ;;  %v6997_v59 = vpop.eup %5216  ;;  %vm2256_vm9 = vcmp.eq.f32.partialorder %v2255_v2, 8.507059e+37  ;;  %vm2177_vm10 = vweird.f32 %v6964_v61  ;;  %vm2176_vm11 = vweird.f32 %v6929_v26 }
 0x1fe   :  { %v2278_v17 = vsub.f32 1.0, %v2277_v21  ;;  %v2259_v44 = vsel %vm2256_vm9, %v2258_v47, %v2254_v51  ;;  %v2180_v48 = vand.u32 2147483647, %v6929_v26  ;;  %5222 = vrcp.f32 %v7012_v27  ;;  %vm2178_vm12 = vmor %vm2176_vm11, %vm2177_vm10 }
 0x1ff   :  { %v2173_v6 = vsub.f32 1.0, %v2172_v39  ;;  %v2260_v28 = vmul.f32 %v6454_v5, %v2259_v44  ;;  %v7036_v26 = vadd.f32 1e-12, %v6971_v57  ;;  %v7039_v38 = vadd.f32 1e-12, %v6647_v30  ;;  %v7041_v14 = vpop.xlane.xlu1 %1754 }
 0x200   :  { %v2279_v24 = vmul.f32 %v5213_v58, %v2278_v17  ;;  %v7014_v54 = vpop.eup %5218  ;;  %vm2181_vm13 = vcmp.eq.f32.partialorder %v2180_v48, 8.507059e+37  ;;  %vm2192_vm14 = vweird.f32 %v6997_v59  ;;  %v7050_v57 = vpop.xlane.xlu0 %1742  ;;  %vm2191_vm15 = vweird.f32 %v6961_v9 }
 0x201   :  { %3107 = vxpose.xlu0.b32.end [2/2] (short) (narrow) %v2050_v11, 16  ;;  %3594 = vxpose.xlu2.b32.start [1/2] (short) (narrow) %v2275_v4, 16  ;;  %v2174_v21 = vmul.f32 %v6964_v61, %v2173_v6  ;;  %v7021_v8 = vpop.eup %5220  ;;  %v1902_v4 = vmul.f32 %v7014_v54, %v6992_v46  ;;  %v2195_v30 = vand.u32 2147483647, %v6961_v9  ;;  %vm2193_vm2 = vmor %vm2191_vm15, %vm2192_vm14  ;;  %v2332_v47 = vand.u32 2147483648, %v6995_v52 }
 0x202   :  { %v2280_v56 = vadd.f32 %v5213_v58, %v2279_v24  ;;  %v2183_v24 = vor.u32 1.1754944e-38, %v2182_v40  ;;  %vm1906_vm6 = vweird.f32 %v6992_v46  ;;  %vm2326_vm7 = vweird.f32 %v6995_v52 }
 0x203   :  { %v2175_v11 = vadd.f32 %v6964_v61, %v2174_v21  ;;  %v1903_v39 = vsub.f32 1.0, %v1902_v4  ;;  %vm2196_vm3 = vcmp.eq.f32.partialorder %v2195_v30, 8.507059e+37  ;;  %vm2341_vm14 = vweird.f32 %v7012_v27 }
 0x204   :  { %v2284_v15 = vsel %vm2283_vm4, %v5213_v58, %v2280_v56  ;;  %v2187_v58 = vmul.f32 %v6997_v59, %v6961_v9  ;;  %vm1907_vm4 = vweird.f32 %v7014_v54 }
 0x205   :  { %v2289_v45 = vsel %vm2286_vm5, %v2288_v32, %v2284_v15  ;;  %v2179_v7 = vsel %vm2178_vm12, %v6964_v61, %v2175_v11  ;;  %v7045_v61 = vpop.eup %5222  ;;  %v2197_v32 = vand.u32 2147483648, %v6961_v9  ;;  %v7064_v9 = vadd.f32 1e-12, %v1728_v12  ;;  %vm7087_vm8 = vmor %vm1906_vm6, %vm1907_vm4 }
 0x206   :  { %v2290_v63 = vmul.f32 %v6496_v42, %v2289_v45  ;;  %v7017_v42 = vadd.f32 1e-12, %v6619_v25  ;;  %v2188_v17 = vsub.f32 1.0, %v2187_v58  ;;  %v2322_v25 = vmul.f32 %v7021_v8, %v6995_v52 }
 0x207   :  { %v2184_v36 = vsel %vm2181_vm13, %v2183_v24, %v2179_v7  ;;  %v1904_v45 = vmul.f32 %v7014_v54, %v1903_v39  ;;  %v2337_v31 = vmul.f32 %v7045_v61, %v7012_v27  ;;  %v7069_v58 = vadd.f32 1e-12, %v6696_v22 }
 0x208   :  { %5224 = vrcp.f32 %v7017_v42  ;;  %v2189_v5 = vmul.f32 %v6997_v59, %v2188_v17  ;;  %v2323_v16 = vsub.f32 1.0, %v2322_v25  ;;  %v2185_v15 = vmul.f32 %v6412_v1, %v2184_v36  ;;  %v7080_v17 = vpop.xlane.xlu1 %1745  ;;  %v1761_v4 = vpop.xlane.xlu0 %1760 }
 0x209   :  { %3533 = vxpose.xlu0.b32.start [1/2] (short) (narrow) %v2245_v19, 16  ;;  %3595 = vxpose.xlu2.b32.end [2/2] (short) (narrow) %v2290_v63, 16  ;;  %5226 = vrcp.f32 %v7036_v26  ;;  %v2198_v19 = vor.u32 1.1754944e-38, %v2197_v32  ;;  %v1905_v63 = vadd.f32 %v7014_v54, %v1904_v45  ;;  %v2338_v35 = vsub.f32 1.0, %v2337_v31 }
 0x20a   :  { %v2190_v56 = vadd.f32 %v6997_v59, %v2189_v5  ;;  %5228 = vrcp.f32 %v7039_v38  ;;  %v2324_v33 = vmul.f32 %v7021_v8, %v2323_v16  ;;  %vm2327_vm5 = vweird.f32 %v7021_v8 }
 0x20b   :  { %v1912_v12 = vand.u32 2147483648, %v6992_v46  ;;  %v2330_v11 = vand.u32 2147483647, %v6995_v52  ;;  %5230 = vrcp.f32 %v7064_v9  ;;  %vm7093_vm9 = vmor %vm2326_vm7, %vm2327_vm5  ;;  %v2339_v25 = vmul.f32 %v7045_v61, %v2338_v35 }
 0x20c   :  { %v2194_v6 = vsel %vm2193_vm2, %v6997_v59, %v2190_v56  ;;  %v2325_v59 = vadd.f32 %v7021_v8, %v2324_v33  ;;  %5232 = vrcp.f32 %v7069_v58  ;;  %v2333_v5 = vor.u32 1.1754944e-38, %v2332_v47 }
 0x20d   :  { %v2199_v2 = vsel %vm2196_vm3, %v2198_v19, %v2194_v6  ;;  %v1913_v24 = vor.u32 1.1754944e-38, %v1912_v12  ;;  %vm2331_vm10 = vcmp.eq.f32.partialorder %v2330_v11, 8.507059e+37  ;;  %v7110_v36 = vadd.f32 1e-12, %v1761_v4 }
 0x20e   :  { %v7048_v0 = vpop.eup %5224  ;;  %v2200_v22 = vmul.f32 %v6450_v60, %v2199_v2  ;;  %v1909_v60 = vsel %vm7087_vm8, %v7014_v54, %v1905_v63  ;;  %v7113_v56 = vadd.f32 1e-12, %v6670_v41  ;;  %vm2342_vm12 = vweird.f32 %v7045_v61 }
 0x20f   :  { %v1917_v1 = vmul.f32 %v7048_v0, %v7017_v42  ;;  %v7073_v51 = vpop.eup %5226  ;;  %v2347_v45 = vand.u32 2147483648, %v7012_v27  ;;  %vm1922_vm13 = vweird.f32 %v7048_v0  ;;  %v2345_v41 = vand.u32 2147483647, %v7012_v27  ;;  %vm7130_vm15 = vmor %vm2341_vm14, %vm2342_vm12 }
 0x210   :  { %v7078_v44 = vpop.eup %5228  ;;  %v2292_v52 = vmul.f32 %v7073_v51, %v7036_v26  ;;  %5234 = vrcp.f32 %v7110_v36  ;;  %vm1921_vm2 = vweird.f32 %v7017_v42  ;;  %v1925_v63 = vand.u32 2147483647, %v7017_v42  ;;  %v1764_v27 = vpop.xlane.xlu1 %1763 }
 0x211   :  { %3534 = vxpose.xlu0.b32.end [2/2] (short) (narrow) %v2260_v28, 16  ;;  %v1918_v21 = vsub.f32 1.0, %v1917_v1  ;;  %v1910_v28 = vand.u32 2147483647, %v6992_v46  ;;  %v2329_v46 = vsel %vm7093_vm9, %v7021_v8, %v2325_v59  ;;  %v2082_v7 = vmul.f32 %v7078_v44, %v7039_v38  ;;  %vm1923_vm3 = vmor %vm1921_vm2, %vm1922_vm13 }
 0x212   :  { %v2334_v39 = vsel %vm2331_vm10, %v2333_v5, %v2329_v46  ;;  %v2293_v32 = vsub.f32 1.0, %v2292_v52  ;;  %v2340_v8 = vadd.f32 %v7045_v61, %v2339_v25  ;;  %v1927_v1 = vand.u32 2147483648, %v7017_v42 }
 0x213   :  { %v1919_v54 = vmul.f32 %v7048_v0, %v1918_v21  ;;  %vm1911_vm11 = vcmp.eq.f32.partialorder %v1910_v28, 8.507059e+37  ;;  %v2083_v30 = vsub.f32 1.0, %v2082_v7  ;;  %v2335_v33 = vmul.f32 %v6474_v13, %v2334_v39 }
 0x214   :  { %v1914_v16 = vsel %vm1911_vm11, %v1913_v24, %v1909_v60  ;;  %5236 = vrcp.f32 %v7113_v56  ;;  %v2344_v35 = vsel %vm7130_vm15, %v7045_v61, %v2340_v8  ;;  %v2348_v42 = vor.u32 1.1754944e-38, %v2347_v45 }
 0x215   :  { %v1920_v31 = vadd.f32 %v7048_v0, %v1919_v54  ;;  %v1915_v19 = vmul.f32 %v6268_v3, %v1914_v16  ;;  %v2294_v3 = vmul.f32 %v7073_v51, %v2293_v32  ;;  %v2084_v47 = vmul.f32 %v7078_v44, %v2083_v30 }
 0x216   :  { %vm2346_vm4 = vcmp.eq.f32.partialorder %v2345_v41, 8.507059e+37  ;;  %v1928_v12 = vor.u32 1.1754944e-38, %v1927_v1  ;;  %v7152_v61 = vadd.f32 1e-12, %v1764_v27  ;;  %vm1926_vm5 = vcmp.eq.f32.partialorder %v1925_v63, 8.507059e+37 }
 0x217   :  { %v1924_v21 = vsel %vm1923_vm3, %v7048_v0, %v1920_v31  ;;  %v2349_v11 = vsel %vm2346_vm4, %v2348_v42, %v2344_v35  ;;  %v2295_v48 = vadd.f32 %v7073_v51, %v2294_v3  ;;  %vm2297_vm6 = vweird.f32 %v7073_v51 }
 0x218   :  { %v1929_v28 = vsel %vm1926_vm5, %v1928_v12, %v1924_v21  ;;  %v2302_v52 = vand.u32 2147483648, %v7036_v26  ;;  %v2085_v4 = vadd.f32 %v7078_v44, %v2084_v47  ;;  %vm2087_vm7 = vweird.f32 %v7078_v44 }
 0x219   :  { %3411 = vxpose.xlu0.b32.start [1/2] (short) (narrow) %v2185_v15, 16  ;;  %v7117_v15 = vpop.eup %5230  ;;  %v2350_v46 = vmul.f32 %v6500_v50, %v2349_v11  ;;  %vm2296_vm8 = vweird.f32 %v7036_v26  ;;  %v2300_v25 = vand.u32 2147483647, %v7036_v26  ;;  %v2092_v7 = vand.u32 2147483648, %v7039_v38 }
 0x21a   :  { %v7122_v6 = vpop.eup %5232  ;;  %v2307_v13 = vmul.f32 %v7117_v15, %v7064_v9  ;;  %5238 = vrcp.f32 %v7152_v61  ;;  %v1930_v5 = vmul.f32 %v6310_v23, %v1929_v28  ;;  %vm7169_vm9 = vmor %vm2296_vm8, %vm2297_vm6  ;;  %vm2086_vm10 = vweird.f32 %v7039_v38 }
 0x21b   :  { %v2097_v59 = vmul.f32 %v7122_v6, %v7069_v58  ;;  %v7156_v60 = vpop.eup %5234  ;;  %v2090_v54 = vand.u32 2147483647, %v7039_v38  ;;  %v2299_v26 = vsel %vm7169_vm9, %v7073_v51, %v2295_v48  ;;  %vm2088_vm11 = vmor %vm2086_vm10, %vm2087_vm7  ;;  %v2303_v38 = vor.u32 1.1754944e-38, %v2302_v52 }
 0x21c   :  { %v2308_v40 = vsub.f32 1.0, %v2307_v13  ;;  %v2472_v50 = vmul.f32 %v7156_v60, %v7110_v36  ;;  %v2089_v16 = vsel %vm2088_vm11, %v7078_v44, %v2085_v4  ;;  %vm2301_vm12 = vcmp.eq.f32.partialorder %v2300_v25, 8.507059e+37 }
 0x21d   :  { %v2098_v0 = vsub.f32 1.0, %v2097_v59  ;;  %v2093_v8 = vor.u32 1.1754944e-38, %v2092_v7  ;;  %v7189_v30 = vadd.f32 1e-12, %v6748_v55  ;;  %v7192_v51 = vadd.f32 1e-12, %v7050_v57 }
 0x21e   :  { %v2309_v23 = vmul.f32 %v7117_v15, %v2308_v40  ;;  %v2304_v45 = vsel %vm2301_vm12, %v2303_v38, %v2299_v26  ;;  %vm2091_vm13 = vcmp.eq.f32.partialorder %v2090_v54, 8.507059e+37  ;;  %v2473_v31 = vsub.f32 1.0, %v2472_v50 }
 0x21f   :  { %v2099_v32 = vmul.f32 %v7122_v6, %v2098_v0  ;;  %vm2312_vm14 = vweird.f32 %v7117_v15  ;;  %vm2102_vm15 = vweird.f32 %v7122_v6  ;;  %v2305_v57 = vmul.f32 %v6478_v10, %v2304_v45 }
 0x220   :  { %v2310_v41 = vadd.f32 %v7117_v15, %v2309_v23  ;;  %vm2311_vm2 = vweird.f32 %v7064_v9  ;;  %v2315_v63 = vand.u32 2147483647, %v7064_v9  ;;  %v2107_v13 = vand.u32 2147483648, %v7069_v58 }
 0x221   :  { %3412 = vxpose.xlu0.b32.end [2/2] (short) (narrow) %v2200_v22, 16  ;;  %v7150_v22 = vadd.f32 1e-12, %v6706_v53  ;;  %v7161_v53 = vpop.eup %5236  ;;  %v2100_v2 = vadd.f32 %v7122_v6, %v2099_v32  ;;  %vm7209_vm3 = vmor %vm2311_vm2, %vm2312_vm14  ;;  %vm2101_vm4 = vweird.f32 %v7069_v58  ;;  %v2105_v3 = vand.u32 2147483647, %v7069_v58 }
 0x222   :  { %v2112_v39 = vmul.f32 %v7161_v53, %v7113_v56  ;;  %v7196_v1 = vpop.eup %5238  ;;  %vm2103_vm5 = vmor %vm2101_vm4, %vm2102_vm15  ;;  %vm2316_vm6 = vcmp.eq.f32.partialorder %v2315_v63, 8.507059e+37  ;;  %v2108_v47 = vor.u32 1.1754944e-38, %v2107_v13  ;;  %v7229_v12 = vadd.f32 1e-12, %v6786_v20  ;;  %v7344_v63 = vpop.xlane.xlu1 %1772 }
 0x223   :  { %5240 = vrcp.f32 %v7150_v22  ;;  %v2487_v10 = vmul.f32 %v7196_v1, %v7152_v61  ;;  %v2104_v42 = vsel %vm2103_vm5, %v7122_v6, %v2100_v2  ;;  %vm2106_vm7 = vcmp.eq.f32.partialorder %v2105_v3, 8.507059e+37  ;;  %v8737_v2 = vld [vmem:[#allocation27_spill] sm:$0xff] }
 0x224   :  { %v2113_v44 = vsub.f32 1.0, %v2112_v39  ;;  %5242 = vrcp.f32 %v7192_v51  ;;  %v2109_v28 = vsel %vm2106_vm7, %v2108_v47, %v2104_v42  ;;  %vm2477_vm8 = vweird.f32 %v7156_v60 }
 0x225   :  { %5244 = vrcp.f32 %v7189_v30  ;;  %v2488_v40 = vsub.f32 1.0, %v2487_v10  ;;  %v2482_v52 = vand.u32 2147483648, %v7110_v36  ;;  %vm2117_vm9 = vweird.f32 %v7161_v53 }
 0x226   :  { %v2114_v21 = vmul.f32 %v7161_v53, %v2113_v44  ;;  %vm2476_vm10 = vweird.f32 %v7110_v36  ;;  %v2122_v25 = vand.u32 2147483648, %v7113_v56  ;;  %v2110_v7 = vmul.f32 %v6378_v49, %v2109_v28 }
 0x227   :  { %vm7249_vm11 = vmor %vm2476_vm10, %vm2477_vm8  ;;  %vm2116_vm12 = vweird.f32 %v7113_v56  ;;  %v2120_v24 = vand.u32 2147483647, %v7113_v56  ;;  %v2489_v49 = vmul.f32 %v7196_v1, %v2488_v40  ;;  %v2483_v56 = vor.u32 1.1754944e-38, %v2482_v52  ;;  %v8740_v40 = vld [vmem:[#allocation45_spill] sm:$0xff]  ;;  %v8741_v52 = vld [vmem:[#allocation30_spill] sm:$0xff] }
 0x228   :  { %v2115_v4 = vadd.f32 %v7161_v53, %v2114_v21  ;;  %v2123_v23 = vor.u32 1.1754944e-38, %v2122_v25  ;;  %v7269_v39 = vadd.f32 1e-12, %v6984_v18  ;;  %vm2492_vm2 = vweird.f32 %v7196_v1  ;;  %v8736_v18 = vld [vmem:[#allocation41_spill] sm:$0xff] }
 0x229   :  { %3716 = vxpose.xlu0.b32.start [1/2] (short) (narrow) %v2335_v33, 16  ;;  %v2094_v33 = vsel %vm2091_vm13, %v2093_v8, %v2089_v16  ;;  %v7201_v55 = vpop.eup %5240  ;;  %vm2118_vm13 = vmor %vm2116_vm12, %vm2117_vm9  ;;  %vm2121_vm15 = vcmp.eq.f32.partialorder %v2120_v24, 8.507059e+37  ;;  %v2490_v32 = vadd.f32 %v7196_v1, %v2489_v49  ;;  %vm2491_vm4 = vweird.f32 %v7152_v61 }
 0x22a   :  { %2861 = vxpose.xlu1.b32.start [1/2] (short) (narrow) %v1915_v19, 16  ;;  %v2317_v19 = vand.u32 2147483648, %v7064_v9  ;;  %v2095_v27 = vmul.f32 %v6340_v43, %v2094_v33  ;;  %v2314_v9 = vsel %vm7209_vm3, %v7117_v15, %v2310_v41  ;;  %v2474_v43 = vmul.f32 %v7156_v60, %v2473_v31  ;;  %v7236_v0 = vpop.eup %5242  ;;  %vm7285_vm5 = vmor %vm2491_vm4, %vm2492_vm2 }
 0x22b   :  { %v2127_v59 = vmul.f32 %v7201_v55, %v7150_v22  ;;  %v7232_v15 = vadd.f32 1e-12, %v7080_v17  ;;  %v7241_v20 = vpop.eup %5244  ;;  %v2119_v50 = vsel %vm2118_vm13, %v7161_v53, %v2115_v4  ;;  %v2497_v53 = vand.u32 2147483648, %v7152_v61 }
 0x22c   :  { %v2318_v58 = vor.u32 1.1754944e-38, %v2317_v19  ;;  %v2475_v48 = vadd.f32 %v7156_v60, %v2474_v43  ;;  %v2202_v54 = vmul.f32 %v7241_v20, %v7189_v30  ;;  %v2124_v16 = vsel %vm2121_vm15, %v2123_v23, %v2119_v50  ;;  %v8742_v50 = vld [vmem:[#allocation38_spill] sm:$0xff] }
 0x22d   :  { %v2128_v6 = vsub.f32 1.0, %v2127_v59  ;;  %5246 = vrcp.f32 %v7232_v15  ;;  %vm2132_vm3 = vweird.f32 %v7201_v55  ;;  %v2495_v44 = vand.u32 2147483647, %v7152_v61 }
 0x22e   :  { %v2319_v11 = vsel %vm2316_vm6, %v2318_v58, %v2314_v9  ;;  %5248 = vrcp.f32 %v7229_v12  ;;  %v2203_v45 = vsub.f32 1.0, %v2202_v54  ;;  %v2137_v19 = vand.u32 2147483648, %v7150_v22 }
 0x22f   :  { %v2320_v17 = vmul.f32 %v6506_v37, %v2319_v11  ;;  %v2382_v37 = vmul.f32 %v7236_v0, %v7192_v51  ;;  %v2129_v26 = vmul.f32 %v7201_v55, %v2128_v6  ;;  %vm2131_vm6 = vweird.f32 %v7150_v22 }
 0x230   :  { %v2135_v13 = vand.u32 2147483647, %v7150_v22  ;;  %5250 = vrcp.f32 %v7269_v39  ;;  %v2494_v61 = vsel %vm7285_vm5, %v7196_v1, %v2490_v32  ;;  %vm2133_vm7 = vmor %vm2131_vm6, %vm2132_vm3  ;;  %v2498_v10 = vor.u32 1.1754944e-38, %v2497_v53 }
 0x231   :  { %3717 = vxpose.xlu0.b32.end [2/2] (short) (narrow) %v2350_v46, 16  ;;  %v2480_v46 = vand.u32 2147483647, %v7110_v36  ;;  %v2479_v36 = vsel %vm7249_vm11, %v7156_v60, %v2475_v48  ;;  %v2383_v38 = vsub.f32 1.0, %v2382_v37  ;;  %v2130_v31 = vadd.f32 %v7201_v55, %v2129_v26 }
 0x232   :  { %2862 = vxpose.xlu1.b32.end [2/2] (short) (narrow) %v1930_v5, 16  ;;  %v2204_v9 = vmul.f32 %v7241_v20, %v2203_v45  ;;  %vm2496_vm8 = vcmp.eq.f32.partialorder %v2495_v44, 8.507059e+37  ;;  %v2138_v43 = vor.u32 1.1754944e-38, %v2137_v19  ;;  %vm2136_vm9 = vcmp.eq.f32.partialorder %v2135_v13, 8.507059e+37 }
 0x233   :  { %vm2481_vm14 = vcmp.eq.f32.partialorder %v2480_v46, 8.507059e+37  ;;  %v7273_v8 = vpop.eup %5246  ;;  %v2384_v35 = vmul.f32 %v7236_v0, %v2383_v38  ;;  %v2134_v22 = vsel %vm2133_vm7, %v7201_v55, %v2130_v31  ;;  %v2499_v59 = vsel %vm2496_vm8, %v2498_v10, %v2494_v61  ;;  %v8747_v10 = vld [vmem:[#allocation28_spill] sm:$0xff] }
 0x234   :  { %v2484_v60 = vsel %vm2481_vm14, %v2483_v56, %v2479_v36  ;;  %v7278_v33 = vpop.eup %5248  ;;  %v2139_v42 = vsel %vm2136_vm9, %v2138_v43, %v2134_v22  ;;  %vm2387_vm10 = vweird.f32 %v7236_v0  ;;  %v2392_v47 = vand.u32 2147483648, %v7192_v51  ;;  %v8748_v22 = vld [vmem:[#allocation2_spill] sm:$0xff]  ;;  %v7350_v43 = vpop.xlane.xlu1 %1781 }
 0x235   :  { %v2485_v41 = vmul.f32 %v8736_v18, %v2484_v60  ;;  %v2217_v3 = vmul.f32 %v7278_v33, %v7229_v12  ;;  %v2385_v1 = vadd.f32 %v7236_v0, %v2384_v35  ;;  %v2205_v11 = vadd.f32 %v7241_v20, %v2204_v9  ;;  %v8743_v60 = vld [vmem:[#allocation31_spill] sm:$0xff]  ;;  %v8746_v35 = vld [vmem:[#allocation36_spill] sm:$0xff] }
 0x236   :  { %vm2207_vm11 = vweird.f32 %v7241_v20  ;;  %v7307_v55 = vpop.eup %5250  ;;  %v2500_v28 = vmul.f32 %v8740_v40, %v2499_v59  ;;  %vm2386_vm12 = vweird.f32 %v7192_v51  ;;  %v2390_v48 = vand.u32 2147483647, %v7192_v51  ;;  %v8752_v40 = vld [vmem:[#allocation4_spill] sm:$0xff] }
 0x237   :  { %v2218_v21 = vsub.f32 1.0, %v2217_v3  ;;  %v2212_v6 = vand.u32 2147483648, %v7189_v30  ;;  %v2140_v4 = vmul.f32 %v8741_v52, %v2139_v42  ;;  %vm2388_vm13 = vmor %vm2386_vm12, %vm2387_vm10  ;;  %vm2206_vm14 = vweird.f32 %v7189_v30 }
 0x238   :  { %v2389_v46 = vsel %vm2388_vm13, %v7236_v0, %v2385_v1  ;;  %vm2208_vm15 = vmor %vm2206_vm14, %vm2207_vm11  ;;  %v2393_v51 = vor.u32 1.1754944e-38, %v2392_v47  ;;  %vm2391_vm2 = vcmp.eq.f32.partialorder %v2390_v48, 8.507059e+37  ;;  %vm2402_vm4 = vweird.f32 %v7273_v8  ;;  %v7354_v1 = vpop.xlane.xlu0 %1751 }
 0x239   :  { %3655 = vxpose.xlu0.b32.start [1/2] (short) (narrow) %v2305_v57, 16  ;;  %v2125_v57 = vmul.f32 %v8737_v2, %v2124_v16  ;;  %v2209_v5 = vsel %vm2208_vm15, %v7241_v20, %v2205_v11  ;;  %v2219_v24 = vmul.f32 %v7278_v33, %v2218_v21  ;;  %v2213_v37 = vor.u32 1.1754944e-38, %v2212_v6  ;;  %v8745_v2 = vld [vmem:[#allocation34_spill] sm:$0xff] }
 0x23a   :  { %3228 = vxpose.xlu1.b32.start [1/2] (short) (narrow) %v2095_v27, 16  ;;  %v2397_v27 = vmul.f32 %v7273_v8, %v7232_v15  ;;  %v2394_v36 = vsel %vm2391_vm2, %v2393_v51, %v2389_v46  ;;  %v2407_v54 = vand.u32 2147483648, %v7232_v15  ;;  %vm2222_vm5 = vweird.f32 %v7278_v33  ;;  %v8753_v51 = vld [vmem:[#allocation33_spill] sm:$0xff] }
 0x23b   :  { %v2220_v56 = vadd.f32 %v7278_v33, %v2219_v24  ;;  %v2395_v20 = vmul.f32 %v8742_v50, %v2394_v36  ;;  %vm2401_vm6 = vweird.f32 %v7232_v15  ;;  %v2405_v26 = vand.u32 2147483647, %v7232_v15 }
 0x23c   :  { %v2398_v58 = vsub.f32 1.0, %v2397_v27  ;;  %v2227_v23 = vand.u32 2147483648, %v7229_v12  ;;  %vm2403_vm7 = vmor %vm2401_vm6, %vm2402_vm4  ;;  %vm2221_vm8 = vweird.f32 %v7229_v12  ;;  %v2225_v16 = vand.u32 2147483647, %v7229_v12  ;;  %v8744_v12 = vld [vmem:[#allocation42_spill] sm:$0xff]  ;;  %v7356_v47 = vpop.xlane.xlu1 %1775 }
 0x23d   :  { %vm2223_vm9 = vmor %vm2221_vm8, %vm2222_vm5  ;;  %v2408_v45 = vor.u32 1.1754944e-38, %v2407_v54  ;;  %vm2406_vm10 = vcmp.eq.f32.partialorder %v2405_v26, 8.507059e+37  ;;  %vm2357_vm12 = vweird.f32 %v7307_v55  ;;  %vm2356_vm13 = vweird.f32 %v7269_v39  ;;  %v8755_v54 = vld [vmem:[#allocation35_spill] sm:$0xff] }
 0x23e   :  { %v2399_v25 = vmul.f32 %v7273_v8, %v2398_v58  ;;  %v2224_v53 = vsel %vm2223_vm9, %v7278_v33, %v2220_v56  ;;  %v2228_v15 = vor.u32 1.1754944e-38, %v2227_v23  ;;  %vm2226_vm11 = vcmp.eq.f32.partialorder %v2225_v16, 8.507059e+37  ;;  %vm2358_vm14 = vmor %vm2356_vm13, %vm2357_vm12  ;;  %v8750_v58 = vld [vmem:[#allocation3_spill] sm:$0xff]  ;;  %v8756_v56 = vld [vmem:[#allocation8_spill] sm:$0xff] }
 0x23f   :  { %v2360_v33 = vand.u32 2147483647, %v7269_v39  ;;  %v1484_v9 = vsub.f32 %v8748_v22, %v8747_v10  ;;  %vm2893_vm2 = vcmask 130048   ;;  %v1499_v50 = vsub.f32 %v8756_v56, %v8755_v54  ;;  %v5337_v22 = vld [vmem:[%s8572_s0 + $0xd0] sm:$0xff] }
 0x240   :  { %v2400_v49 = vadd.f32 %v7273_v8, %v2399_v25  ;;  %v5333_v25 = vld [vmem:[%s8572_s0 + $0x90] sm:$0xff] }
 0x241   :  { %3656 = vxpose.xlu0.b32.end [2/2] (short) (narrow) %v2320_v17, 16  ;;  %v2210_v17 = vand.u32 2147483647, %v7189_v30  ;;  %vm2361_vm15 = vcmp.eq.f32.partialorder %v2360_v33, 8.507059e+37  ;;  %v1579_v59 = vmul.f32 1.442695, %v1484_v9 }
 0x242   :  { %3229 = vxpose.xlu1.b32.end [2/2] (short) (narrow) %v2110_v7, 16  ;;  %v2352_v7 = vmul.f32 %v7307_v55, %v7269_v39  ;;  %v2404_v32 = vsel %vm2403_vm7, %v7273_v8, %v2400_v49  ;;  %v2362_v8 = vand.u32 2147483648, %v7269_v39  ;;  %v8749_v39 = vld [vmem:[#allocation29_spill] sm:$0xff]  ;;  %v8761_v9 = vld [vmem:[#allocation43_spill] sm:$0xff] }
 0x243   :  { %vm2211_vm3 = vcmp.eq.f32.partialorder %v2210_v17, 8.507059e+37  ;;  %v2409_v18 = vsel %vm2406_vm10, %v2408_v45, %v2404_v32  ;;  %5252 = vpow2.f32 %v1579_v59  ;;  %v1487_v42 = vsub.f32 %v8750_v58, %v8749_v39  ;;  %v7368_v17 = vpop.xlane.xlu0 %1769  ;;  %v5335_v32 = vld [vmem:[%s8572_s0 + $0xa0] sm:$0xff]  ;;  %v8757_v45 = vld [vmem:[#allocation40_spill] sm:$0xff]  ;;  %v8762_v59 = vld [vmem:[#allocation21_spill] sm:$0xff] }
 0x244   :  { %v2214_v30 = vsel %vm2211_vm3, %v2213_v37, %v2209_v5  ;;  %v2353_v0 = vsub.f32 1.0, %v2352_v7  ;;  %v2410_v19 = vmul.f32 %v8744_v12, %v2409_v18  ;;  %v2363_v27 = vor.u32 1.1754944e-38, %v2362_v8  ;;  %v7375_v7 = vpop.xlane.xlu1 %1802  ;;  %v8754_v5 = vld [vmem:[#allocation5_spill] sm:$0xff] }
 0x245   :  { %v2215_v38 = vmul.f32 %v8743_v60, %v2214_v30  ;;  %v1585_v21 = vmul.f32 1.442695, %v1487_v42  ;;  %v1493_v24 = vsub.f32 %v8754_v5, %v8753_v51  ;;  %v1609_v60 = vmul.f32 1.442695, %v1499_v50  ;;  %v8759_v8 = vld [vmem:[#allocation37_spill] sm:$0xff]  ;;  %v5339_v50 = vld [vmem:[%s8572_s0 + $0xb0] sm:$0xff] }
 0x246   :  { %v2354_v31 = vmul.f32 %v7307_v55, %v2353_v0  ;;  %v1513_v39 = vsub.f32 %v8762_v59, %v8761_v9 }
 0x247   :  { %5254 = vpow2.f32 %v1585_v21  ;;  %v1597_v30 = vmul.f32 1.442695, %v1493_v24  ;;  %v5338_v24 = vld [vmem:[%s8572_s0 + $0xb8] sm:$0xff] }
 0x248   :  { %v2355_v44 = vadd.f32 %v7307_v55, %v2354_v31  ;;  %v1637_v21 = vmul.f32 1.442695, %v1513_v39 }
 0x249   :  { %4021 = vxpose.xlu0.b32.start [1/2] (short) (narrow) %v2485_v41, 16  ;;  %v2229_v41 = vsel %vm2226_vm11, %v2228_v15, %v2224_v53  ;;  %v7358_v11 = vpop.eup %5252  ;;  %v8758_v53 = vld [vmem:[#allocation18_spill] sm:$0xff] }
 0x24a   :  { %3289 = vxpose.xlu1.b32.start [1/2] (short) (narrow) %v2125_v57, 16  ;;  %v2230_v57 = vmul.f32 %v8745_v2, %v2229_v41  ;;  %v2359_v13 = vsel %vm2358_vm14, %v7307_v55, %v2355_v44  ;;  %v8751_v55 = vld [vmem:[#allocation32_spill] sm:$0xff]  ;;  %v1738_v48 = vsel %vm1260_vm1, %v7358_v11, 0.0  ;;  %v1506_v31 = vsub.f32 %v8758_v53, %v8757_v45  ;;  %v8760_v2 = vld [vmem:[#allocation15_spill] sm:$0xff] }
 0x24b   :  { %v2364_v61 = vsel %vm2361_vm15, %v2363_v27, %v2359_v13  ;;  %v7384_v0 = vpop.xlane.xlu0 %1778 }
 0x24c   :  { %v2365_v3 = vmul.f32 %v8746_v35, %v2364_v61  ;;  %v1623_v12 = vmul.f32 1.442695, %v1506_v31  ;;  %v5336_v35 = vld [vmem:[%s8572_s0 + $0xd8] sm:$0xff] }
 0x24d   :  { %v7370_v46 = vpop.eup %5254 }
 0x24e   :  { %v1747_v37 = vsel %vm1260_vm1, %v7370_v46, 0.0 }
 0x251   :  { %4022 = vxpose.xlu0.b32.end [2/2] (short) (narrow) %v2500_v28, 16  ;;  %v1490_v28 = vsub.f32 %v8752_v40, %v8751_v55 }
 0x252   :  { %3290 = vxpose.xlu1.b32.end [2/2] (short) (narrow) %v2140_v4, 16  ;;  %v5332_v4 = vld [vmem:[%s8572_s0 + $0x98] sm:$0xff] }
 0x253   :  { %v1591_v52 = vmul.f32 1.442695, %v1490_v28  ;;  %v7403_v15 = vpop.xlane.xlu0 %1787 }
 0x255   :  { %5256 = vpow2.f32 %v1591_v52 }
 0x256   :  { %5258 = vpow2.f32 %v1597_v30 }
 0x257   :  { %5260 = vpow2.f32 %v1609_v60 }
 0x258   :  { %5262 = vpow2.f32 %v1623_v12 }
 0x259   :  { %3838 = vxpose.xlu0.b32.start [1/2] (short) (narrow) %v2395_v20, 16  ;;  %v7388_v20 = vpop.xlane.xlu1 %1808 }
 0x25a   :  { %3472 = vxpose.xlu1.b32.start [1/2] (short) (narrow) %v2215_v38, 16  ;;  %v2939_v6 = vpop.trf.xlu2  ;;  %v5334_v38 = vld [vmem:[%s8572_s0 + $0xa8] sm:$0xff] }
 0x25b   :  { %5013 = vmatmul.msk.f32.vlgmr.msra.gmra.mxu1 %vm2893_vm2, %v2939_v6  ;;  %v7382_v49 = vpop.eup %5256  ;;  %v7416_v27 = vpop.xlane.xlu0 %1811  ;;  %v8764_v6 = vld [vmem:[#allocation22_spill] sm:$0xff] }
 0x25c   :  { %3463 = vmatpush.msra.mxu1 %v5332_v4  ;;  %v1756_v26 = vsel %vm1260_vm1, %v7382_v49, 0.0  ;;  %v7396_v16 = vpop.eup %5258 }
 0x25d   :  { %v1765_v18 = vsel %vm1260_vm1, %v7396_v16, 0.0 }
 0x25e   :  { %3464 = vmatpush.msra.mxu1 %v5333_v25 }
 0x261   :  { %3839 = vxpose.xlu0.b32.end [2/2] (short) (narrow) %v2410_v19, 16  ;;  %v7407_v44 = vpop.xlane.xlu1 %1790  ;;  %v7410_v19 = vpop.eup %5260 }
 0x262   :  { %3473 = vxpose.xlu1.b32.end [2/2] (short) (narrow) %v2230_v57, 16  ;;  %v2940_v36 = vpop.trf.xlu2  ;;  %v1503_v57 = vsub.f32 %v8760_v2, %v8759_v8  ;;  %v1783_v33 = vsel %vm1260_vm1, %v7410_v19, 0.0  ;;  %v7424_v10 = vpop.eup %5262 }
 0x263   :  { %5014 = vmatmul.msk.f32.gmra.mxu1 %vm2893_vm2, %v2940_v36  ;;  %v1804_v58 = vsel %vm1260_vm1, %v7424_v10, 0.0  ;;  %v7434_v55 = vpop.xlane.xlu0 %1829  ;;  %v8767_v36 = vld [vmem:[#allocation23_spill] sm:$0xff] }
 0x264   :  { %v1617_v61 = vmul.f32 1.442695, %v1503_v57 }
 0x266   :  { %5264 = vpow2.f32 %v1617_v61 }
 0x267   :  { %5266 = vpow2.f32 %v1637_v21 }
 0x26a   :  { %3777 = vxpose.xlu1.b32.start [1/2] (short) (narrow) %v2365_v3, 16  ;;  %v3000_v23 = vpop.trf.xlu2  ;;  %v7422_v3 = vpop.xlane.xlu1 %1793 }
 0x26b   :  { %5015 = vmatmul.msk.f32.vlgmr.msra.gmra.mxu2 %vm2893_vm2, %v3000_v23 }
 0x26c   :  { %3524 = vmatpush.msra.mxu2 %v5334_v38  ;;  %v7436_v40 = vpop.eup %5264  ;;  %v8769_v38 = vld [vmem:[#allocation11_spill] sm:$0xff] }
 0x26d   :  { %v1795_v4 = vsel %vm1260_vm1, %v7436_v40, 0.0  ;;  %v7444_v5 = vpop.eup %5266 }
 0x26e   :  { %3525 = vmatpush.msra.mxu2 %v5335_v32  ;;  %8765 = vst [vmem:[#allocation41_spill] sm:$0xff] %v7444_v5  ;;  %v1825_v56 = vsel %vm1260_vm1, %v7444_v5, 0.0  ;;  %v8770_v32 = vld [vmem:[#allocation26_spill] sm:$0xff] }
 0x26f   :  { %v1512_v45 = vsub.f32 %v8770_v32, %v8769_v38 }
 0x272   :  { %v3001_v41 = vpop.trf.xlu2  ;;  %v7438_v28 = vpop.xlane.xlu1 %1799 }
 0x273   :  { %5016 = vmatmul.msk.f32.gmra.mxu2 %vm2893_vm2, %v3001_v41 }
 0x27a   :  { %1739 = vadd.xlane.f32.xlu2 %v1738_v48  ;;  %v3183_v13 = vpop.trf.xlu2  ;;  %v8763_v48 = vld [vmem:[#allocation7_spill] sm:$0xff]  ;;  %v7452_v54 = vpop.xlane.xlu1 %1832 }
 0x27b   :  { %5021 = vmatmul.msk.f32.vlgmr.msrb.gmra.mxu1 %vm2893_vm2, %v3183_v13  ;;  %v1509_v52 = vsub.f32 %v8764_v6, %v8763_v48  ;;  %v7498_v6 = vadd.f32 1e-12, %v7041_v14  ;;  %v7516_v14 = vadd.f32 1e-12, %v7384_v0  ;;  %v5344_v0 = vld [vmem:[%s8572_s0 + $0x108] sm:$0xff] }
 0x27c   :  { %3707 = vmatpush.msrb.mxu1 %v5336_v35  ;;  %v5340_v35 = vld [vmem:[%s8572_s0 + $0x88] sm:$0xff]  ;;  %v7724_v5 = vadd.f32 1e-12, %v7452_v54 }
 0x27d   :  { %v1629_v25 = vmul.f32 1.442695, %v1509_v52  ;;  %v7502_v52 = vadd.f32 1e-12, %v7354_v1  ;;  %vm2446_vm7 = vweird.f32 %v7498_v6 }
 0x27e   :  { %3708 = vmatpush.msrb.mxu1 %v5337_v22  ;;  %v5341_v22 = vld [vmem:[%s8572_s0 + $0x80] sm:$0xff] }
 0x27f   :  { %5268 = vpow2.f32 %v1629_v25  ;;  %v7509_v25 = vadd.f32 1e-12, %v7368_v17  ;;  %vm2431_vm15 = vweird.f32 %v7502_v52 }
 0x282   :  { %1748 = vadd.xlane.f32.xlu2 %v1747_v37  ;;  %v3184_v42 = vpop.trf.xlu2  ;;  %v8766_v37 = vld [vmem:[#allocation44_spill] sm:$0xff]  ;;  %v7466_v31 = vpop.xlane.xlu1 %1835 }
 0x283   :  { %5022 = vmatmul.msk.f32.gmra.mxu1 %vm2893_vm2, %v3184_v42  ;;  %v1511_v30 = vsub.f32 %v8767_v36, %v8766_v37  ;;  %v5343_v42 = vld [vmem:[%s8572_s0 + $0xc0] sm:$0xff] }
 0x284   :  { %v5345_v36 = vld [vmem:[%s8572_s0 + $0x100] sm:$0xff] }
 0x285   :  { %v7459_v60 = vpop.eup %5268 }
 0x286   :  { %8768 = vst [vmem:[#allocation27_spill] sm:$0xff] %v7459_v60  ;;  %v1813_v53 = vsel %vm1260_vm1, %v7459_v60, 0.0 }
 0x28a   :  { %1757 = vadd.xlane.f32.xlu2 %v1756_v26  ;;  %v1633_v26 = vmul.f32 1.442695, %v1511_v30  ;;  %v7472_v8 = vpop.xlane.xlu1 %1817  ;;  %v3366_v2 = vpop.trf.xlu2 }
 0x28c   :  { %5270 = vpow2.f32 %v1633_v26 }
 0x28d   :  { %v3061_v51 = vpop.trf.xlu0 }
 0x28e   :  { %5017 = vmatmul.msk.f32.vlgmr.msra.gmra.mxu3 %vm2893_vm2, %v3061_v51  ;;  %v7512_v51 = vadd.f32 1e-12, %v7350_v43  ;;  %v7528_v43 = vadd.f32 1e-12, %v7356_v47 }
 0x28f   :  { %3585 = vmatpush.msra.mxu3 %v5338_v24  ;;  %v7534_v24 = vadd.f32 1e-12, %v7375_v7  ;;  %v7550_v7 = vadd.f32 1e-12, %v7403_v15 }
 0x291   :  { %3586 = vmatpush.msra.mxu3 %v5339_v50 }
 0x292   :  { %1766 = vadd.xlane.f32.xlu2 %v1765_v18  ;;  %v1635_v18 = vmul.f32 1.442695, %v1512_v45  ;;  %v7468_v41 = vpop.eup %5270  ;;  %v3367_v61 = vpop.trf.xlu2 }
 0x293   :  { %v1819_v12 = vsel %vm1260_vm1, %v7468_v41, 0.0 }
 0x294   :  { %5272 = vpow2.f32 %v1635_v18 }
 0x295   :  { %v3062_v23 = vpop.trf.xlu0  ;;  %5274 = vrcp.f32 %v7498_v6 }
 0x296   :  { %5018 = vmatmul.msk.f32.gmra.mxu3 %vm2893_vm2, %v3062_v23  ;;  %5276 = vrcp.f32 %v7502_v52 }
 0x29a   :  { %1784 = vadd.xlane.f32.xlu2 %v1783_v33  ;;  %v7474_v57 = vpop.eup %5272  ;;  %v7486_v59 = vpop.trf.xlu2 }
 0x29b   :  { %8771 = vst [vmem:[#allocation45_spill] sm:$0xff] %v7474_v57  ;;  %v1822_v33 = vsel %vm1260_vm1, %v7474_v57, 0.0  ;;  %v7524_v17 = vpop.eup %5274 }
 0x29c   :  { %v7537_v37 = vpop.eup %5276  ;;  %v2442_v47 = vmul.f32 %v7524_v17, %v7498_v6  ;;  %vm2447_vm5 = vweird.f32 %v7524_v17 }
 0x29d   :  { %v3122_v39 = vpop.trf.xlu0  ;;  %v7559_v23 = vmul.f32 %v7537_v37, %v7502_v52  ;;  %vm7638_vm8 = vmor %vm2446_vm7, %vm2447_vm5  ;;  %vm2432_vm13 = vweird.f32 %v7537_v37 }
 0x29e   :  { %v2443_v45 = vsub.f32 1.0, %v2442_v47 }
 0x2a2   :  { %1805 = vadd.xlane.f32.xlu2 %v1804_v58  ;;  %v5342_v58 = vld [vmem:[%s8572_s0 + $0xc8] sm:$0xff]  ;;  %v7495_v21 = vpop.trf.xlu2 }
 0x2a5   :  { %v3123_v48 = vpop.trf.xlu0 }
 0x2aa   :  { %1796 = vadd.xlane.f32.xlu2 %v1795_v4  ;;  %v7505_v4 = vadd.f32 1e-12, %v7344_v63 }
 0x2ac   :  { %5278 = vrcp.f32 %v7505_v4 }
 0x2ad   :  { %5280 = vrcp.f32 %v7509_v25 }
 0x2ae   :  { %5282 = vrcp.f32 %v7512_v51 }
 0x2af   :  { %5284 = vrcp.f32 %v7516_v14 }
 0x2b2   :  { %1826 = vadd.xlane.f32.xlu2 %v1825_v56  ;;  %v7542_v30 = vpop.eup %5278 }
 0x2b3   :  { %v7546_v56 = vpop.eup %5280 }
 0x2b4   :  { %v7552_v50 = vpop.eup %5282  ;;  %v7567_v15 = vmul.f32 %v7546_v56, %v7509_v25 }
 0x2b5   :  { %v7555_v26 = vpop.eup %5284 }
 0x2ba   :  { %1814 = vadd.xlane.f32.xlu2 %v1813_v53  ;;  %v7563_v53 = vmul.f32 %v7542_v30, %v7505_v4 }
 0x2c2   :  { %1820 = vadd.xlane.f32.xlu2 %v1819_v12  ;;  %v7574_v12 = vmul.f32 %v7552_v50, %v7512_v51 }
 0x2ca   :  { %1823 = vadd.xlane.f32.xlu2 %v1822_v33  ;;  %v7580_v33 = vmul.f32 %v7555_v26, %v7516_v14 }
 0x2ce   :  { %v2877_v13 = vpop.trf.xlu1 }
 0x2cf   :  { %5011 = vmatmul.msk.f32.vlgmr.msra.gmra.mxu0 %vm2893_vm2, %v2877_v13 }
 0x2d0   :  { %3402 = vmatpush.msra.mxu0 %v5340_v35  ;;  %v2428_v35 = vsub.f32 1.0, %v7559_v23  ;;  %v7600_v23 = vadd.f32 1e-12, %v7416_v27 }
 0x2d2   :  { %3403 = vmatpush.msra.mxu0 %v5341_v22 }
 0x2d6   :  { %v2878_v9 = vpop.trf.xlu1 }
 0x2d7   :  { %5012 = vmatmul.msk.f32.gmra.mxu0 %vm2893_vm2, %v2878_v9 }
 0x2df   :  { %5019 = vmatmul.msk.f32.vlgmr.msrb.gmra.mxu0 %vm2893_vm2, %v3122_v39 }
 0x2e0   :  { %3646 = vmatpush.msrb.mxu0 %v5342_v58 }
 0x2e2   :  { %3647 = vmatpush.msrb.mxu0 %v5343_v42  ;;  %v2444_v42 = vmul.f32 %v7524_v17, %v2443_v45 }
 0x2e4   :  { %v2445_v27 = vadd.f32 %v7524_v17, %v2444_v42 }
 0x2e7   :  { %5020 = vmatmul.msk.f32.gmra.mxu0 %vm2893_vm2, %v3123_v48 }
 0x2ed   :  { %v1740_v1 = vpop.xlane.xlu2 %1739 }
 0x2ee   :  { %v7521_v63 = vadd.f32 1e-12, %v1740_v1 }
 0x2ef   :  { %5027 = vmatmul.msk.f32.vlgmr.msra.gmra.mxu0 %vm2893_vm2, %v3366_v2 }
 0x2f0   :  { %3890 = vmatpush.msra.mxu0 %v5344_v0  ;;  %5286 = vrcp.f32 %v7521_v63  ;;  %v2377_v58 = vand.u32 2147483648, %v7521_v63  ;;  %v2375_v0 = vand.u32 2147483647, %v7521_v63  ;;  %vm2371_vm3 = vweird.f32 %v7521_v63 }
 0x2f1   :  { %5288 = vrcp.f32 %v7528_v43 }
 0x2f2   :  { %3891 = vmatpush.msra.mxu0 %v5345_v36  ;;  %5290 = vrcp.f32 %v7534_v24  ;;  %vm2376_vm6 = vcmp.eq.f32.partialorder %v2375_v0, 8.507059e+37  ;;  %v7646_v0 = vadd.f32 1e-12, %v7422_v3 }
 0x2f3   :  { %5292 = vrcp.f32 %v7550_v7 }
 0x2f5   :  { %v1749_v38 = vpop.xlane.xlu2 %1748 }
 0x2f6   :  { %v5287_v32 = vpop.eup %5286  ;;  %v7569_v18 = vadd.f32 1e-12, %v1749_v38  ;;  %v7603_v38 = vadd.f32 1e-12, %v7388_v20  ;;  %v2378_v20 = vor.u32 1.1754944e-38, %v2377_v58 }
 0x2f7   :  { %5028 = vmatmul.msk.f32.gmra.mxu0 %vm2893_vm2, %v3367_v61  ;;  %v2367_v2 = vmul.f32 %v5287_v32, %v7521_v63  ;;  %v7583_v13 = vpop.eup %5288  ;;  %vm2372_vm1 = vweird.f32 %v5287_v32  ;;  %v5346_v63 = vld [vmem:[%s8572_s0 + $0x148] sm:$0xff] }
 0x2f8   :  { %5294 = vrcp.f32 %v7569_v18  ;;  %v7586_v61 = vpop.eup %5290  ;;  %v7597_v47 = vmul.f32 %v7583_v13, %v7528_v43  ;;  %vm2373_vm4 = vmor %vm2371_vm3, %vm2372_vm1  ;;  %v2420_v3 = vand.u32 2147483647, %v7569_v18  ;;  %vm2416_vm11 = vweird.f32 %v7569_v18 }
 0x2f9   :  { %v2368_v22 = vsub.f32 1.0, %v2367_v2  ;;  %v7605_v2 = vpop.eup %5292  ;;  %v7609_v45 = vmul.f32 %v7586_v61, %v7534_v24  ;;  %vm7681_vm1 = vmor %vm2431_vm15, %vm2432_vm13  ;;  %vm2521_vm13 = vweird.f32 %v7509_v25 }
 0x2fa   :  { %v7632_v58 = vmul.f32 %v7605_v2, %v7550_v7  ;;  %vm2421_vm14 = vcmp.eq.f32.partialorder %v2420_v3, 8.507059e+37 }
 0x2fb   :  { %v2369_v1 = vmul.f32 %v5287_v32, %v2368_v22  ;;  %v7612_v22 = vadd.f32 1e-12, %v7407_v44 }
 0x2fd   :  { %v1758_v9 = vpop.xlane.xlu2 %1757  ;;  %v2370_v48 = vadd.f32 %v5287_v32, %v2369_v1  ;;  %v2452_v1 = vand.u32 2147483648, %v7498_v6 }
 0x2fe   :  { %v5295_v39 = vpop.eup %5294  ;;  %v7615_v36 = vadd.f32 1e-12, %v1758_v9  ;;  %v2450_v9 = vand.u32 2147483647, %v7498_v6  ;;  %v5347_v6 = vld [vmem:[%s8572_s0 + $0x140] sm:$0xff] }
 0x2ff   :  { %5035 = vmatmul.msk.f32.vlgmr.msrb.gmra.mxu0 %vm2893_vm2, %v7486_v59  ;;  %v2412_v44 = vmul.f32 %v5295_v39, %v7569_v18  ;;  %v2374_v34 = vsel %vm2373_vm4, %v5287_v32, %v2370_v48  ;;  %vm2417_vm9 = vweird.f32 %v5295_v39  ;;  %vm4815_vm4 = vcmask 262144  }
 0x300   :  { %4134 = vmatpush.msrb.mxu0 %v5346_v63  ;;  %5296 = vrcp.f32 %v7615_v36  ;;  %v2379_v59 = vsel %vm2376_vm6, %v2378_v20, %v2374_v34  ;;  %v2978_v34 = vpop.f32.mrf.mxu1  ;;  %v2449_v20 = vsel %vm7638_vm8, %v7524_v17, %v2445_v27  ;;  %v2453_v63 = vor.u32 1.1754944e-38, %v2452_v1  ;;  %vm2418_vm12 = vmor %vm2416_vm11, %vm2417_vm9 }
 0x301   :  { %5298 = vrcp.f32 %v7603_v38  ;;  %v2413_v32 = vsub.f32 1.0, %v2412_v44  ;;  %v2380_v42 = vmul.f32 %v7358_v11, %v2379_v59  ;;  %v2422_v11 = vand.u32 2147483648, %v7569_v18  ;;  %4817 = vst.msk [vmem:[%s8573_s2 + $0x10] sm:$0xff] %vm139_vm0, %v2978_v34 }
 0x302   :  { %4135 = vmatpush.msrb.mxu0 %v5347_v6  ;;  %v2429_v44 = vmul.f32 %v7537_v37, %v2428_v35  ;;  %5300 = vrcp.f32 %v7612_v22  ;;  %v7661_v17 = vadd.f32 1e-12, %v7438_v28  ;;  %vm2451_vm10 = vcmp.eq.f32.partialorder %v2450_v9, 8.507059e+37 }
 0x303   :  { %3778 = vxpose.xlu1.b32.end [2/2] (short) (narrow) %v2380_v42, 16  ;;  %v2414_v59 = vmul.f32 %v5295_v39, %v2413_v32  ;;  %v2454_v27 = vsel %vm2451_vm10, %v2453_v63, %v2449_v20  ;;  %v2437_v42 = vand.u32 2147483648, %v7502_v52  ;;  %v2423_v34 = vor.u32 1.1754944e-38, %v2422_v11 }
 0x304   :  { %v2430_v6 = vadd.f32 %v7537_v37, %v2429_v44  ;;  %5302 = vrcp.f32 %v7646_v0  ;;  %v8774_v44 = vld [vmem:[#allocation39_spill] sm:$0xff]  ;;  %v2467_v3 = vand.u32 2147483648, %v7615_v36  ;;  %vm2522_vm6 = vweird.f32 %v7546_v56 }
 0x305   :  { %v1767_v35 = vpop.xlane.xlu2 %1766  ;;  %v2415_v48 = vadd.f32 %v5295_v39, %v2414_v59  ;;  %v2455_v63 = vmul.f32 %v8774_v44, %v2454_v27  ;;  %v2465_v27 = vand.u32 2147483647, %v7615_v36  ;;  %vm2461_vm7 = vweird.f32 %v7615_v36  ;;  %vm7749_vm15 = vmor %vm2521_vm13, %vm2522_vm6 }
 0x306   :  { %v5297_v1 = vpop.eup %5296  ;;  %v7665_v32 = vadd.f32 1e-12, %v1767_v35  ;;  %v2468_v35 = vor.u32 1.1754944e-38, %v2467_v3  ;;  %vm2566_vm9 = vweird.f32 %v7516_v14  ;;  %vm2567_vm10 = vweird.f32 %v7555_v26 }
 0x307   :  { %5036 = vmatmul.msk.f32.gmra.mxu0 %vm2893_vm2, %v7495_v21  ;;  %v7671_v28 = vpop.eup %5298  ;;  %v2457_v18 = vmul.f32 %v5297_v1, %v7615_v36  ;;  %v2419_v9 = vsel %vm2418_vm12, %v5295_v39, %v2415_v48  ;;  %v2435_v21 = vand.u32 2147483647, %v7502_v52  ;;  %v2434_v48 = vsel %vm7681_vm1, %v7537_v37, %v2430_v6  ;;  %vm7731_vm12 = vmor %vm2566_vm9, %vm2567_vm10 }
 0x308   :  { %5304 = vrcp.f32 %v7665_v32  ;;  %v2424_v20 = vsel %vm2421_vm14, %v2423_v34, %v2419_v9  ;;  %v7685_v39 = vpop.eup %5300  ;;  %v2438_v52 = vor.u32 1.1754944e-38, %v2437_v42  ;;  %v8777_v34 = vsub.f32 1.0, %v7580_v33  ;;  %v2981_v9 = vpop.f32.mrf.mxu1 }
 0x309   :  { %5306 = vrcp.f32 %v7661_v17  ;;  %v2458_v11 = vsub.f32 1.0, %v2457_v18  ;;  %v2425_v59 = vmul.f32 %v7370_v46, %v2424_v20  ;;  %vm2462_vm3 = vweird.f32 %v5297_v1  ;;  %4818 = vst.msk [vmem:[%s8573_s2 + $0x18] sm:$0x1] %vm4815_vm4, %v2981_v9 }
 0x30a   :  { %v2564_v18 = vmul.f32 %v7555_v26, %v8777_v34  ;;  %vm2436_vm5 = vcmp.eq.f32.partialorder %v2435_v21, 8.507059e+37  ;;  %v2525_v37 = vand.u32 2147483647, %v7509_v25  ;;  %v2527_v33 = vand.u32 2147483648, %v7509_v25  ;;  %v7702_v6 = vpop.eup %5302  ;;  %vm2463_vm8 = vmor %vm2461_vm7, %vm2462_vm3 }
 0x30b   :  { %3960 = vxpose.xlu1.b32.start [1/2] (short) (narrow) %v2455_v63, 16  ;;  %3899 = vxpose.xlu0.b32.start [1/2] (short) (narrow) %v2425_v59, 16  ;;  %v2459_v46 = vmul.f32 %v5297_v1, %v2458_v11  ;;  %v2439_v11 = vsel %vm2436_vm5, %v2438_v52, %v2434_v48  ;;  %v8778_v21 = vsub.f32 1.0, %v7567_v15  ;;  %vm2466_vm11 = vcmp.eq.f32.partialorder %v2465_v27, 8.507059e+37 }
 0x30c   :  { %v2565_v15 = vadd.f32 %v7555_v26, %v2564_v18  ;;  %v2570_v52 = vand.u32 2147483647, %v7516_v14  ;;  %v2572_v9 = vand.u32 2147483648, %v7516_v14  ;;  %vm7753_vm1 = vcmp.eq.f32.partialorder %v2525_v37, 8.507059e+37  ;;  %v3244_v18 = vpop.trf.xlu1 }
 0x30d   :  { %v1785_v42 = vpop.xlane.xlu2 %1784  ;;  %v2460_v20 = vadd.f32 %v5297_v1, %v2459_v46  ;;  %v2519_v44 = vmul.f32 %v7546_v56, %v8778_v21  ;;  %v8779_v21 = vld [vmem:[#allocation9_spill] sm:$0xff]  ;;  %vm2506_vm3 = vweird.f32 %v7665_v32  ;;  %vm2582_vm7 = vweird.f32 %v7552_v50  ;;  %5023 = vmatmul.msk.f32.vlgmr.msrb.gmra.mxu2 %vm2893_vm2, %v3244_v18 }
 0x30e   :  { %v5305_v63 = vpop.eup %5304  ;;  %v7708_v59 = vadd.f32 1e-12, %v1785_v42  ;;  %v2440_v60 = vmul.f32 %v8779_v21, %v2439_v11  ;;  %v2569_v14 = vsel %vm7731_vm12, %v7555_v26, %v2565_v15  ;;  %vm2571_vm5 = vcmp.eq.f32.partialorder %v2570_v52, 8.507059e+37 }
 0x30f   :  { %v7713_v34 = vpop.eup %5306  ;;  %v2502_v46 = vmul.f32 %v5305_v63, %v7665_v32  ;;  %v2464_v36 = vsel %vm2463_vm8, %v5297_v1, %v2460_v20  ;;  %v2520_v57 = vadd.f32 %v7546_v56, %v2519_v44  ;;  %v2512_v1 = vand.u32 2147483648, %v7665_v32 }
 0x310   :  { %5308 = vrcp.f32 %v7708_v59  ;;  %v2469_v48 = vsel %vm2466_vm11, %v2468_v35, %v2464_v36  ;;  %vm2507_vm14 = vweird.f32 %v5305_v63  ;;  %v2510_v20 = vand.u32 2147483647, %v7665_v32 }
 0x311   :  { %v2503_v3 = vsub.f32 1.0, %v2502_v46  ;;  %v2470_v42 = vmul.f32 %v7382_v49, %v2469_v48  ;;  %v8782_v49 = vsub.f32 1.0, %v7574_v12  ;;  %v7745_v11 = vmul.f32 %v7713_v34, %v7661_v17  ;;  %vm2508_vm6 = vmor %vm2506_vm3, %vm2507_vm14 }
 0x312   :  { %v2573_v44 = vor.u32 1.1754944e-38, %v2572_v9  ;;  %v2528_v12 = vor.u32 1.1754944e-38, %v2527_v33  ;;  %v2524_v26 = vsel %vm7749_vm15, %v7546_v56, %v2520_v57  ;;  %v2513_v37 = vor.u32 1.1754944e-38, %v2512_v1 }
 0x313   :  { %v2579_v27 = vmul.f32 %v7552_v50, %v8782_v49  ;;  %3961 = vxpose.xlu1.b32.end [2/2] (short) (narrow) %v2470_v42, 16  ;;  %3900 = vxpose.xlu0.b32.end [2/2] (short) (narrow) %v2440_v60, 16  ;;  %v2504_v54 = vmul.f32 %v5305_v63, %v2503_v3  ;;  %vm2511_vm8 = vcmp.eq.f32.partialorder %v2510_v20, 8.507059e+37  ;;  %vm2581_vm9 = vweird.f32 %v7512_v51  ;;  %v8787_v42 = vld [vmem:[#allocation12_spill] sm:$0xff]  ;;  %v3039_v49 = vpop.f32.mrf.mxu2 }
 0x314   :  { %v2574_v48 = vsel %vm2571_vm5, %v2573_v44, %v2569_v14  ;;  %v2587_v56 = vand.u32 2147483648, %v7512_v51  ;;  %v2585_v1 = vand.u32 2147483647, %v7512_v51  ;;  %vm7782_vm10 = vmor %vm2581_vm9, %vm2582_vm7  ;;  %4819 = vst.msk [vmem:[%s8573_s2 + $0x20] sm:$0xff] %vm139_vm0, %v3039_v49  ;;  %v2608_v51 = vsub.f32 1.0, %v7632_v58  ;;  %v5348_v58 = vld [vmem:[%s8572_s0 + $0xe8] sm:$0xff] }
 0x315   :  { %v1806_v35 = vpop.xlane.xlu2 %1805  ;;  %v2505_v46 = vadd.f32 %v5305_v63, %v2504_v54  ;;  %v2580_v32 = vadd.f32 %v7552_v50, %v2579_v27  ;;  %v2575_v21 = vmul.f32 %v8787_v42, %v2574_v48  ;;  %v2529_v27 = vsel %vm7753_vm1, %v2528_v12, %v2524_v26  ;;  %3768 = vmatpush.msrb.mxu2 %v5348_v58 }
 0x316   :  { %v7761_v36 = vpop.eup %5308  ;;  %v7763_v15 = vadd.f32 1e-12, %v1806_v35  ;;  %v7796_v14 = vadd.f32 1e-12, %v7434_v55  ;;  %v7804_v25 = vmul.f32 %v7685_v39, %v7612_v22  ;;  %v7808_v60 = vmul.f32 %v7702_v6, %v7646_v0 }
 0x317   :  { %v2592_v33 = vmul.f32 %v7761_v36, %v7708_v59  ;;  %v2509_v9 = vsel %vm2508_vm6, %v5305_v63, %v2505_v46  ;;  %v2548_v63 = vsub.f32 1.0, %v7597_v47  ;;  %v2588_v55 = vor.u32 1.1754944e-38, %v2587_v56  ;;  %v8791_v46 = vld [vmem:[#allocation10_spill] sm:$0xff] }
 0x318   :  { %5310 = vrcp.f32 %v7763_v15  ;;  %v2514_v57 = vsel %vm2511_vm8, %v2513_v37, %v2509_v9  ;;  %v7816_v12 = vadd.f32 1e-12, %v7466_v31  ;;  %v2530_v26 = vmul.f32 %v8791_v46, %v2529_v27  ;;  %v3245_v27 = vpop.trf.xlu1 }
 0x319   :  { %v2593_v52 = vsub.f32 1.0, %v2592_v33  ;;  %v2515_v3 = vmul.f32 %v7396_v16, %v2514_v57  ;;  %5312 = vrcp.f32 %v7600_v23  ;;  %v8790_v16 = vsub.f32 1.0, %v7609_v45  ;;  %5024 = vmatmul.msk.f32.gmra.mxu2 %vm2893_vm2, %v3245_v27 }
 0x31a   :  { %v2584_v45 = vsel %vm7782_vm10, %v7552_v50, %v2580_v32  ;;  %5314 = vrcp.f32 %v7724_v5  ;;  %v2668_v50 = vsub.f32 1.0, %v7745_v11  ;;  %vm2586_vm11 = vcmp.eq.f32.partialorder %v2585_v1, 8.507059e+37  ;;  %v5349_v11 = vld [vmem:[%s8572_s0 + $0xe0] sm:$0xff] }
 0x31b   :  { %v2684_v20 = vmul.f32 %v7586_v61, %v8790_v16  ;;  %4082 = vxpose.xlu1.b32.start [1/2] (short) (narrow) %v2515_v3, 16  ;;  %4204 = vxpose.xlu0.b32.start [1/2] (short) (narrow) %v2575_v21, 16  ;;  %v2594_v44 = vmul.f32 %v7761_v36, %v2593_v52  ;;  %v2589_v33 = vsel %vm2586_vm11, %v2588_v55, %v2584_v45  ;;  %vm2687_vm12 = vweird.f32 %v7586_v61  ;;  %v8792_v21 = vld [vmem:[#allocation46_spill] sm:$0xff]  ;;  %v3042_v54 = vpop.f32.mrf.mxu2  ;;  %v3222_v55 = vpop.f32.mrf.mxu1 }
 0x31c   :  { %3769 = vmatpush.msrb.mxu2 %v5349_v11  ;;  %v2692_v32 = vand.u32 2147483648, %v7534_v24  ;;  %vm2597_vm13 = vweird.f32 %v7761_v36  ;;  %vm2686_vm14 = vweird.f32 %v7534_v24  ;;  %v2690_v52 = vand.u32 2147483647, %v7534_v24  ;;  %4820 = vst.msk [vmem:[%s8573_s2 + $0x28] sm:$0x1] %vm4815_vm4, %v3042_v54 }
 0x31d   :  { %v1797_v35 = vpop.xlane.xlu2 %1796  ;;  %v2685_v9 = vadd.f32 %v7586_v61, %v2684_v20  ;;  %v2595_v57 = vadd.f32 %v7761_v36, %v2594_v44  ;;  %v2602_v3 = vand.u32 2147483648, %v7708_v59  ;;  %v2590_v1 = vmul.f32 %v8792_v21, %v2589_v33  ;;  %vm7840_vm15 = vmor %vm2686_vm14, %vm2687_vm12  ;;  %4825 = vst.msk [vmem:[%s8573_s2 + $0x50] sm:$0xff] %vm139_vm0, %v3222_v55 }
 0x31e   :  { %v7819_v37 = vpop.eup %5310  ;;  %v7821_v48 = vadd.f32 1e-12, %v1797_v35  ;;  %vm2596_vm1 = vweird.f32 %v7708_v59  ;;  %v2600_v49 = vand.u32 2147483647, %v7708_v59  ;;  %v7850_v24 = vmul.f32 %v7671_v28, %v7603_v38 }
 0x31f   :  { %v2697_v31 = vmul.f32 %v7819_v37, %v7763_v15  ;;  %v7833_v56 = vpop.eup %5312  ;;  %v2623_v20 = vsub.f32 1.0, %v7804_v25  ;;  %v2689_v45 = vsel %vm7840_vm15, %v7586_v61, %v2685_v9  ;;  %vm7858_vm3 = vmor %vm2596_vm1, %vm2597_vm13  ;;  %v2609_v59 = vmul.f32 %v7605_v2, %v2608_v51 }
 0x320   :  { %5316 = vrcp.f32 %v7821_v48  ;;  %v7846_v16 = vpop.eup %5314  ;;  %v2677_v25 = vand.u32 2147483648, %v7661_v17  ;;  %v2693_v61 = vor.u32 1.1754944e-38, %v2692_v32  ;;  %v2599_v58 = vsel %vm7858_vm3, %v7761_v36, %v2595_v57  ;;  %v3305_v44 = vpop.trf.xlu1 }
 0x321   :  { %v2698_v42 = vsub.f32 1.0, %v2697_v31  ;;  %v2638_v51 = vsub.f32 1.0, %v7808_v60  ;;  %v7879_v46 = vmul.f32 %v7713_v34, %v2668_v50  ;;  %vm2691_vm5 = vcmp.eq.f32.partialorder %v2690_v52, 8.507059e+37  ;;  %5025 = vmatmul.msk.f32.vlgmr.msrb.gmra.mxu3 %vm2893_vm2, %v3305_v44 }
 0x322   :  { %v7883_v33 = vmul.f32 %v7846_v16, %v7724_v5  ;;  %5318 = vrcp.f32 %v7816_v12  ;;  %v2694_v9 = vsel %vm2691_vm5, %v2693_v61, %v2689_v45  ;;  %vm2601_vm6 = vcmp.eq.f32.partialorder %v2600_v49, 8.507059e+37 }
 0x323   :  { %4083 = vxpose.xlu1.b32.end [2/2] (short) (narrow) %v2530_v26, 16  ;;  %4205 = vxpose.xlu0.b32.end [2/2] (short) (narrow) %v2590_v1, 16  ;;  %v2699_v35 = vmul.f32 %v7819_v37, %v2698_v42  ;;  %v2603_v26 = vor.u32 1.1754944e-38, %v2602_v3  ;;  %v2610_v32 = vadd.f32 %v7605_v2, %v2609_v59  ;;  %vm2612_vm7 = vweird.f32 %v7605_v2  ;;  %v8797_v42 = vld [vmem:[#allocation16_spill] sm:$0xff]  ;;  %v3225_v61 = vpop.f32.mrf.mxu1 }
 0x324   :  { %v2617_v50 = vand.u32 2147483648, %v7550_v7  ;;  %vm2702_vm8 = vweird.f32 %v7819_v37  ;;  %v2542_v3 = vand.u32 2147483648, %v7505_v4  ;;  %v2695_v21 = vmul.f32 %v8797_v42, %v2694_v9  ;;  %4826 = vst.msk [vmem:[%s8573_s2 + $0x58] sm:$0x1] %vm4815_vm4, %v3225_v61 }
 0x325   :  { %v7886_v36 = vpop.xlane.xlu2 %1826  ;;  %v2604_v31 = vsel %vm2601_vm6, %v2603_v26, %v2599_v58  ;;  %v2700_v52 = vadd.f32 %v7819_v37, %v2699_v35  ;;  %v2707_v1 = vand.u32 2147483648, %v7763_v15  ;;  %vm2611_vm9 = vweird.f32 %v7550_v7 }
 0x326   :  { %v5317_v11 = vpop.eup %5316  ;;  %v2615_v18 = vand.u32 2147483647, %v7550_v7  ;;  %vm2671_vm10 = vweird.f32 %v7661_v17  ;;  %v2605_v27 = vmul.f32 %v7410_v19, %v2604_v31  ;;  %vm2701_vm11 = vweird.f32 %v7763_v15  ;;  %vm7905_vm12 = vmor %vm2611_vm9, %vm2612_vm7 }
 0x327   :  { %v2652_v57 = vmul.f32 %v5317_v11, %v7821_v48  ;;  %v2705_v54 = vand.u32 2147483647, %v7763_v15  ;;  %v2662_v59 = vand.u32 2147483648, %v7821_v48  ;;  %vm7910_vm13 = vmor %vm2701_vm11, %vm2702_vm8  ;;  %v2614_v19 = vsel %vm7905_vm12, %v7605_v2, %v2610_v32  ;;  %v7933_v32 = vpop.trf.xlu0 }
 0x328   :  { %v2618_v55 = vor.u32 1.1754944e-38, %v2617_v50  ;;  %v2624_v15 = vmul.f32 %v7685_v39, %v2623_v20  ;;  %v7919_v58 = vpop.eup %5318  ;;  %vm2657_vm14 = vweird.f32 %v5317_v11  ;;  %v2660_v26 = vand.u32 2147483647, %v7821_v48  ;;  %v5350_v50 = vld [vmem:[%s8572_s0 + $0xf8] sm:$0xff]  ;;  %v3306_v7 = vpop.trf.xlu1 }
 0x329   :  { %v2653_v49 = vsub.f32 1.0, %v2652_v57  ;;  %v2704_v9 = vsel %vm7910_vm13, %v7819_v37, %v2700_v52  ;;  %v2708_v2 = vor.u32 1.1754944e-38, %v2707_v1  ;;  %vm2616_vm15 = vcmp.eq.f32.partialorder %v2615_v18, 8.507059e+37  ;;  %3829 = vmatpush.msrb.mxu3 %v5350_v50  ;;  %v5351_v1 = vld [vmem:[%s8572_s0 + $0xf0] sm:$0xff] }
 0x32a   :  { %v8802_v20 = vsub.f32 1.0, %v7563_v53  ;;  %vm2537_vm1 = vweird.f32 %v7542_v30  ;;  %vm2656_vm3 = vweird.f32 %v7821_v48  ;;  %vm2706_vm5 = vcmp.eq.f32.partialorder %v2705_v54, 8.507059e+37  ;;  %5026 = vmatmul.msk.f32.gmra.mxu3 %vm2893_vm2, %v3306_v7 }
 0x32b   :  { %v2654_v35 = vmul.f32 %v5317_v11, %v2653_v49  ;;  %4448 = vxpose.xlu1.b32.start [1/2] (short) (narrow) %v2695_v21, 16  ;;  %4265 = vxpose.xlu0.b32.start [1/2] (short) (narrow) %v2605_v27, 16  ;;  %v2619_v52 = vsel %vm2616_vm15, %v2618_v55, %v2614_v19  ;;  %vm2658_vm6 = vmor %vm2656_vm3, %vm2657_vm14  ;;  %v2663_v53 = vor.u32 1.1754944e-38, %v2662_v59  ;;  %v2709_v42 = vsel %vm2706_vm5, %v2708_v2, %v2704_v9  ;;  %v8805_v55 = vld [vmem:[#allocation20_spill] sm:$0xff] }
 0x32c   :  { %v2534_v31 = vmul.f32 %v7542_v30, %v8802_v20  ;;  %v2625_v21 = vadd.f32 %v7685_v39, %v2624_v15  ;;  %vm2627_vm7 = vweird.f32 %v7685_v39  ;;  %3830 = vmatpush.msrb.mxu3 %v5351_v1  ;;  %vm2661_vm8 = vcmp.eq.f32.partialorder %v2660_v26, 8.507059e+37 }
 0x32d   :  { %v7939_v37 = vpop.xlane.xlu2 %1814  ;;  %v2655_v57 = vadd.f32 %v5317_v11, %v2654_v35  ;;  %v2670_v48 = vadd.f32 %v7713_v34, %v7879_v46  ;;  %vm2672_vm9 = vweird.f32 %v7713_v34  ;;  %vm2626_vm11 = vweird.f32 %v7612_v22  ;;  %v5357_v35 = vld [vmem:[%s8572_s0 + $0x110] sm:$0xff] }
 0x32e   :  { %v2632_v27 = vand.u32 2147483648, %v7612_v22  ;;  %v2535_v54 = vadd.f32 %v7542_v30, %v2534_v31  ;;  %v2710_v44 = vmul.f32 %v7424_v10, %v2709_v42  ;;  %v2675_v59 = vand.u32 2147483647, %v7661_v17  ;;  %vm7956_vm12 = vmor %vm2626_vm11, %vm2627_vm7 }
 0x32f   :  { %v2659_v18 = vsel %vm2658_vm6, %v5317_v11, %v2655_v57  ;;  %v2630_v46 = vand.u32 2147483647, %v7612_v22  ;;  %v2713_v19 = vsub.f32 1.0, %v7850_v24  ;;  %v2620_v15 = vmul.f32 %v8805_v55, %v2619_v52  ;;  %vm7965_vm13 = vmor %vm2671_vm10, %vm2672_vm9  ;;  %v7996_v2 = vpop.trf.xlu0  ;;  %v5353_v11 = vld [vmem:[%s8572_s0 + $0x118] sm:$0xff] }
 0x330   :  { %v2664_v49 = vsel %vm2661_vm8, %v2663_v53, %v2659_v18  ;;  %vm2536_vm14 = vweird.f32 %v7505_v4  ;;  %v2540_v10 = vand.u32 2147483647, %v7505_v4  ;;  %v2674_v22 = vsel %vm7965_vm13, %v7713_v34, %v2670_v48  ;;  %v8810_v53 = vld [vmem:[#allocation6_spill] sm:$0xff] }
 0x331   :  { %v2665_v45 = vmul.f32 %v7436_v40, %v2664_v49  ;;  %v2833_v40 = vsub.f32 1.0, %v7883_v33  ;;  %v2629_v24 = vsel %vm7956_vm12, %v7685_v39, %v2625_v21  ;;  %vm7981_vm10 = vmor %vm2536_vm14, %vm2537_vm1  ;;  %v2639_v33 = vmul.f32 %v7702_v6, %v2638_v51 }
 0x332   :  { %v2678_v26 = vor.u32 1.1754944e-38, %v2677_v25  ;;  %v2633_v9 = vor.u32 1.1754944e-38, %v2632_v27  ;;  %v2539_v34 = vsel %vm7981_vm10, %v7542_v30, %v2535_v54  ;;  %v2549_v39 = vmul.f32 %v7583_v13, %v2548_v63  ;;  %5033 = vmatmul.msk.f32.vlgmr.msra.gmra.mxu3 %vm2893_vm2, %v7933_v32  ;;  %v5352_v27 = vld [vmem:[%s8572_s0 + $0x138] sm:$0xff] }
 0x333   :  { %4387 = vxpose.xlu2.b32.start [1/2] (short) (narrow) %v2665_v45, 16  ;;  %4449 = vxpose.xlu1.b32.end [2/2] (short) (narrow) %v2710_v44, 16  ;;  %v8000_v60 = vmul.f32 %v7919_v58, %v7816_v12  ;;  %vm2676_vm15 = vcmp.eq.f32.partialorder %v2675_v59, 8.507059e+37  ;;  %vm2631_vm1 = vcmp.eq.f32.partialorder %v2630_v46, 8.507059e+37  ;;  %v2543_v17 = vor.u32 1.1754944e-38, %v2542_v3  ;;  %v5354_v46 = vld [vmem:[%s8572_s0 + $0x128] sm:$0xff] }
 0x334   :  { %4266 = vxpose.xlu0.b32.end [2/2] (short) (narrow) %v2620_v15, 16  ;;  %v2679_v20 = vsel %vm2676_vm15, %v2678_v26, %v2674_v22  ;;  %v2634_v30 = vsel %vm2631_vm1, %v2633_v9, %v2629_v24  ;;  %vm2541_vm3 = vcmp.eq.f32.partialorder %v2540_v10, 8.507059e+37  ;;  %v8007_v47 = vadd.f32 1e-12, %v7886_v36  ;;  %4073 = vmatpush.msra.mxu3 %v5352_v27  ;;  %v5355_v15 = vld [vmem:[%s8572_s0 + $0x130] sm:$0xff]  ;;  %v5356_v24 = vld [vmem:[%s8572_s0 + $0x120] sm:$0xff] }
 0x335   :  { %v1821_v51 = vpop.xlane.xlu2 %1820  ;;  %v2544_v63 = vsel %vm2541_vm3, %v2543_v17, %v2539_v34  ;;  %v2640_v31 = vadd.f32 %v7702_v6, %v2639_v33  ;;  %vm2642_vm5 = vweird.f32 %v7702_v6  ;;  %v2647_v50 = vand.u32 2147483648, %v7646_v0  ;;  %v8815_v26 = vld [vmem:[#allocation17_spill] sm:$0xff] }
 0x336   :  { %v8004_v25 = vadd.f32 1e-12, %v1821_v51  ;;  %v2550_v57 = vadd.f32 %v7583_v13, %v2549_v39  ;;  %vm2552_vm6 = vweird.f32 %v7583_v13  ;;  %v2557_v4 = vand.u32 2147483648, %v7528_v43  ;;  %4074 = vmatpush.msra.mxu3 %v5355_v15  ;;  %v8818_v51 = vld [vmem:[#allocation14_spill] sm:$0xff]  ;;  %v5358_v15 = vld [vmem:[%s8572_s0 + $0x168] sm:$0xff] }
 0x337   :  { %v2680_v3 = vmul.f32 %v6739_v29, %v2679_v20  ;;  %v2635_v52 = vmul.f32 %v6673_v62, %v2634_v30  ;;  %vm2641_vm7 = vweird.f32 %v7646_v0  ;;  %v2645_v36 = vand.u32 2147483647, %v7646_v0  ;;  %v3427_v49 = vpop.trf.xlu0 }
 0x338   :  { %5320 = vrcp.f32 %v8004_v25  ;;  %v2545_v42 = vmul.f32 %v8810_v53, %v2544_v63  ;;  %vm8021_vm8 = vmor %vm2641_vm7, %vm2642_vm5  ;;  %vm2551_vm9 = vweird.f32 %v7528_v43  ;;  %v2555_v1 = vand.u32 2147483647, %v7528_v43  ;;  %5029 = vmatmul.msk.f32.vlgmr.msra.gmra.mxu1 %vm2893_vm2, %v3427_v49 }
 0x339   :  { %5322 = vrcp.f32 %v8007_v47  ;;  %v2644_v62 = vsel %vm8021_vm8, %v7702_v6, %v2640_v31  ;;  %vm8035_vm11 = vmor %vm2551_vm9, %vm2552_vm6  ;;  %v2834_v0 = vmul.f32 %v7846_v16, %v2833_v40  ;;  %v2714_v43 = vmul.f32 %v7671_v28, %v2713_v19  ;;  %v3488_v6 = vpop.trf.xlu1  ;;  %3951 = vmatpush.msra.mxu1 %v5353_v11 }
 0x33a   :  { %v2727_v32 = vmul.f32 %v7833_v56, %v7600_v23  ;;  %v2648_v18 = vor.u32 1.1754944e-38, %v2647_v50  ;;  %v2554_v48 = vsel %vm8035_vm11, %v7583_v13, %v2550_v57  ;;  %5324 = vrcp.f32 %v7796_v14  ;;  %5031 = vmatmul.msk.f32.vlgmr.msra.gmra.mxu2 %vm2893_vm2, %v3488_v6  ;;  %5034 = vmatmul.msk.f32.gmra.mxu3 %vm2893_vm2, %v7996_v2 }
 0x33b   :  { %4388 = vxpose.xlu2.b32.end [2/2] (short) (narrow) %v2680_v3, 16  ;;  %4326 = vxpose.xlu1.b32.start [1/2] (short) (narrow) %v2635_v52, 16  ;;  %v2848_v54 = vsub.f32 1.0, %v8000_v60  ;;  %vm2646_vm12 = vcmp.eq.f32.partialorder %v2645_v36, 8.507059e+37  ;;  %v2558_v44 = vor.u32 1.1754944e-38, %v2557_v4  ;;  %vm2556_vm13 = vcmp.eq.f32.partialorder %v2555_v1, 8.507059e+37 }
 0x33c   :  { %4143 = vxpose.xlu0.b32.start [1/2] (short) (narrow) %v2545_v42, 16  ;;  %v2649_v13 = vsel %vm2646_vm12, %v2648_v18, %v2644_v62  ;;  %vm2717_vm14 = vweird.f32 %v7671_v28  ;;  %4012 = vmatpush.msra.mxu2 %v5354_v46  ;;  %v2835_v19 = vadd.f32 %v7846_v16, %v2834_v0  ;;  %vm2837_vm10 = vweird.f32 %v7846_v16  ;;  %v8821_v0 = vld [vmem:[#allocation19_spill] sm:$0xff]  ;;  %v8822_v18 = vld [vmem:[#allocation13_spill] sm:$0xff] }
 0x33d   :  { %v1824_v45 = vpop.xlane.xlu2 %1823  ;;  %v2559_v7 = vsel %vm2556_vm13, %v2558_v44, %v2554_v48  ;;  %v2715_v55 = vadd.f32 %v7671_v28, %v2714_v43  ;;  %v2728_v10 = vsub.f32 1.0, %v2727_v32  ;;  %v2842_v40 = vand.u32 2147483648, %v7724_v5  ;;  %3952 = vmatpush.msra.mxu1 %v5357_v35 }
 0x33e   :  { %v8053_v59 = vadd.f32 1e-12, %v1824_v45  ;;  %v8068_v61 = vpop.eup %5320  ;;  %vm2716_vm15 = vweird.f32 %v7603_v38  ;;  %v2722_v22 = vand.u32 2147483648, %v7603_v38  ;;  %4013 = vmatpush.msra.mxu2 %v5356_v24  ;;  %v2650_v9 = vmul.f32 %v8815_v26, %v2649_v13 }
 0x33f   :  { %v8079_v33 = vpop.eup %5322  ;;  %vm2836_vm1 = vweird.f32 %v7724_v5  ;;  %v2840_v34 = vand.u32 2147483647, %v7724_v5  ;;  %vm8086_vm3 = vmor %vm2716_vm15, %vm2717_vm14  ;;  %v2720_v60 = vand.u32 2147483647, %v7603_v38  ;;  %v2560_v17 = vmul.f32 %v8818_v51, %v2559_v7  ;;  %v3428_v52 = vpop.trf.xlu0  ;;  %v8828_v51 = vld [vmem:[#allocation25_spill] sm:$0xff] }
 0x340   :  { %5326 = vrcp.f32 %v8053_v59  ;;  %vm8095_vm5 = vmor %vm2836_vm1, %vm2837_vm10  ;;  %v8101_v5 = vpop.eup %5324  ;;  %v2772_v30 = vmul.f32 %v8068_v61, %v8004_v25  ;;  %v2719_v63 = vsel %vm8086_vm3, %v7671_v28, %v2715_v55  ;;  %v2849_v31 = vmul.f32 %v7919_v58, %v2848_v54  ;;  %5030 = vmatmul.msk.f32.gmra.mxu1 %vm2893_vm2, %v3428_v52 }
 0x341   :  { %v2839_v38 = vsel %vm8095_vm5, %v7846_v16, %v2835_v19  ;;  %v2802_v50 = vmul.f32 %v8079_v33, %v8007_v47  ;;  %v2843_v2 = vor.u32 1.1754944e-38, %v2842_v40  ;;  %v2723_v57 = vor.u32 1.1754944e-38, %v2722_v22  ;;  %v3489_v3 = vpop.trf.xlu1 }
 0x342   :  { %v2729_v4 = vmul.f32 %v7833_v56, %v2728_v10  ;;  %vm2841_vm6 = vcmp.eq.f32.partialorder %v2840_v34, 8.507059e+37  ;;  %vm2721_vm7 = vcmp.eq.f32.partialorder %v2720_v60, 8.507059e+37  ;;  %5032 = vmatmul.msk.f32.gmra.mxu2 %vm2893_vm2, %v3489_v3  ;;  %v8118_v36 = vadd.f32 1e-12, %v7939_v37 }
 0x343   :  { %4327 = vxpose.xlu1.b32.end [2/2] (short) (narrow) %v2650_v9, 16  ;;  %v2844_v16 = vsel %vm2841_vm6, %v2843_v2, %v2839_v38  ;;  %v2724_v28 = vsel %vm2721_vm7, %v2723_v57, %v2719_v63  ;;  %v2773_v53 = vsub.f32 1.0, %v2772_v30  ;;  %v2850_v42 = vadd.f32 %v7919_v58, %v2849_v31  ;;  %v8827_v9 = vld [vmem:[#allocation24_spill] sm:$0xff] }
 0x344   :  { %4144 = vxpose.xlu0.b32.end [2/2] (short) (narrow) %v2560_v17, 16  ;;  %vm2852_vm8 = vweird.f32 %v7919_v58  ;;  %v2803_v1 = vsub.f32 1.0, %v2802_v50  ;;  %v2857_v62 = vand.u32 2147483648, %v7816_v12  ;;  %v2730_v29 = vadd.f32 %v7833_v56, %v2729_v4 }
 0x345   :  { %vm2732_vm9 = vweird.f32 %v7833_v56  ;;  %v2845_v43 = vmul.f32 %v8821_v0, %v2844_v16  ;;  %vm2851_vm11 = vweird.f32 %v7816_v12  ;;  %v2855_v37 = vand.u32 2147483647, %v7816_v12 }
 0x346   :  { %v8122_v21 = vpop.eup %5326  ;;  %v2737_v32 = vand.u32 2147483648, %v7600_v23  ;;  %v2725_v48 = vmul.f32 %v8822_v18, %v2724_v28  ;;  %vm8132_vm12 = vmor %vm2851_vm11, %vm2852_vm8  ;;  %vm2731_vm13 = vweird.f32 %v7600_v23  ;;  %v2735_v49 = vand.u32 2147483647, %v7600_v23 }
 0x347   :  { %5328 = vrcp.f32 %v8118_v36  ;;  %v2787_v27 = vmul.f32 %v8122_v21, %v8053_v59  ;;  %v2854_v12 = vsel %vm8132_vm12, %v7919_v58, %v2850_v42  ;;  %vm8144_vm14 = vmor %vm2731_vm13, %vm2732_vm9  ;;  %v2774_v44 = vmul.f32 %v8068_v61, %v2773_v53  ;;  %v3732_v46 = vpop.trf.xlu0 }
 0x348   :  { %v2817_v23 = vmul.f32 %v8101_v5, %v7796_v14  ;;  %v2858_v13 = vor.u32 1.1754944e-38, %v2857_v62  ;;  %v2734_v58 = vsel %vm8144_vm14, %v7833_v56, %v2730_v29  ;;  %v2804_v11 = vmul.f32 %v8079_v33, %v2803_v1  ;;  %v8831_v29 = vld [vmem:[#allocation41_spill] sm:$0xff] }
 0x349   :  { %vm2856_vm10 = vcmp.eq.f32.partialorder %v2855_v37, 8.507059e+37  ;;  %v2738_v7 = vor.u32 1.1754944e-38, %v2737_v32  ;;  %v8161_v19 = vadd.f32 1e-12, %v7472_v8  ;;  %vm2736_vm15 = vcmp.eq.f32.partialorder %v2735_v49, 8.507059e+37  ;;  %v5359_v8 = vld [vmem:[%s8572_s0 + $0x160] sm:$0xff] }
 0x34a   :  { %5039 = vmatmul.msk.f32.vlgmr.msrb.gmra.mxu2 %vm2893_vm2, %v3732_v46  ;;  %v2859_v55 = vsel %vm2856_vm10, %v2858_v13, %v2854_v12  ;;  %v2788_v10 = vsub.f32 1.0, %v2787_v27  ;;  %v2775_v56 = vadd.f32 %v8068_v61, %v2774_v44  ;;  %vm2777_vm1 = vweird.f32 %v8068_v61 }
 0x34b   :  { %4753 = vxpose.xlu1.b32.start [1/2] (short) (narrow) %v2845_v43, 16  ;;  %4256 = vmatpush.msrb.mxu2 %v5358_v15  ;;  %v2739_v40 = vsel %vm2736_vm15, %v2738_v7, %v2734_v58  ;;  %v2818_v22 = vsub.f32 1.0, %v2817_v23  ;;  %v2782_v24 = vand.u32 2147483648, %v8004_v25  ;;  %v2805_v35 = vadd.f32 %v8079_v33, %v2804_v11  ;;  %v8836_v23 = vld [vmem:[#allocation45_spill] sm:$0xff]  ;;  %v8837_v11 = vld [vmem:[#allocation47_spill] sm:$0xff]  ;;  %v5371_v43 = vld [vmem:[%s8572_s0 + $0x190] sm:$0xff] }
 0x34c   :  { %v2917_v54 = vpop.f32.mrf.mxu0  ;;  %4509 = vxpose.xlu0.b32.start [1/2] (short) (narrow) %v2725_v48, 16  ;;  %vm2807_vm3 = vweird.f32 %v8079_v33  ;;  %v2860_v34 = vmul.f32 %v8827_v9, %v2859_v55  ;;  %vm2776_vm5 = vweird.f32 %v8004_v25  ;;  %v2780_v39 = vand.u32 2147483647, %v8004_v25 }
 0x34d   :  { %4814 = vst.msk [vmem:[%s8573_s2] sm:$0xff] %vm139_vm0, %v2917_v54  ;;  %4257 = vmatpush.msrb.mxu2 %v5359_v8  ;;  %v8174_v26 = vpop.eup %5328  ;;  %v2812_v60 = vand.u32 2147483648, %v8007_v47  ;;  %v2740_v17 = vmul.f32 %v8828_v51, %v2739_v40  ;;  %vm8181_vm6 = vmor %vm2776_vm5, %vm2777_vm1  ;;  %vm2806_vm7 = vweird.f32 %v8007_v47  ;;  %v2810_v30 = vand.u32 2147483647, %v8007_v47  ;;  %v5360_v54 = vld [vmem:[%s8572_s0 + $0x158] sm:$0xff] }
 0x34e   :  { %5330 = vrcp.f32 %v8161_v19  ;;  %v2779_v25 = vsel %vm8181_vm6, %v8068_v61, %v2775_v56  ;;  %vm2808_vm8 = vmor %vm2806_vm7, %vm2807_vm3  ;;  %v2789_v63 = vmul.f32 %v8122_v21, %v2788_v10  ;;  %v2742_v31 = vmul.f32 %v8174_v26, %v8118_v36 }
 0x34f   :  { %v2783_v47 = vor.u32 1.1754944e-38, %v2782_v24  ;;  %v2809_v50 = vsel %vm2808_vm8, %v8079_v33, %v2805_v35  ;;  %v2819_v2 = vmul.f32 %v8101_v5, %v2818_v22  ;;  %v3733_v61 = vpop.trf.xlu0  ;;  %vm2781_vm9 = vcmp.eq.f32.partialorder %v2780_v39, 8.507059e+37  ;;  %v8838_v35 = vld [vmem:[#allocation27_spill] sm:$0xff] }
 0x350   :  { %v2813_v57 = vor.u32 1.1754944e-38, %v2812_v60  ;;  %vm2811_vm11 = vcmp.eq.f32.partialorder %v2810_v30, 8.507059e+37  ;;  %v2790_v52 = vadd.f32 %v8122_v21, %v2789_v63  ;;  %vm2792_vm12 = vweird.f32 %v8122_v21  ;;  %v5362_v63 = vld [vmem:[%s8572_s0 + $0x188] sm:$0xff] }
 0x351   :  { %v2784_v4 = vsel %vm2781_vm9, %v2783_v47, %v2779_v25  ;;  %v2743_v16 = vsub.f32 1.0, %v2742_v31  ;;  %v2797_v28 = vand.u32 2147483648, %v8053_v59  ;;  %v2820_v53 = vadd.f32 %v8101_v5, %v2819_v2  ;;  %v5363_v47 = vld [vmem:[%s8572_s0 + $0x180] sm:$0xff]  ;;  %v3100_v2 = vpop.f32.mrf.mxu3 }
 0x352   :  { %5040 = vmatmul.msk.f32.gmra.mxu2 %vm2893_vm2, %v3733_v61  ;;  %v2814_v3 = vsel %vm2811_vm11, %v2813_v57, %v2809_v50  ;;  %vm2822_vm13 = vweird.f32 %v8101_v5  ;;  %v2785_v42 = vmul.f32 %v7468_v41, %v2784_v4  ;;  %vm2791_vm14 = vweird.f32 %v8053_v59  ;;  %4821 = vst.msk [vmem:[%s8573_s2 + $0x30] sm:$0xff] %vm139_vm0, %v3100_v2  ;;  %v5364_v4 = vld [vmem:[%s8572_s0 + $0x178] sm:$0xff] }
 0x353   :  { %4754 = vxpose.xlu1.b32.end [2/2] (short) (narrow) %v2860_v34, 16  ;;  %v2795_v1 = vand.u32 2147483647, %v8053_v59  ;;  %v2827_v62 = vand.u32 2147483648, %v7796_v14  ;;  %v2815_v0 = vmul.f32 %v8831_v29, %v2814_v3  ;;  %vm8215_vm10 = vmor %vm2791_vm14, %vm2792_vm12  ;;  %vm2821_vm15 = vweird.f32 %v7796_v14  ;;  %v5365_v3 = vld [vmem:[%s8572_s0 + $0x170] sm:$0xff]  ;;  %v5369_v29 = vld [vmem:[%s8572_s0 + $0x1a0] sm:$0xff] }
 0x354   :  { %v2920_v38 = vpop.f32.mrf.mxu0  ;;  %4510 = vxpose.xlu0.b32.end [2/2] (short) (narrow) %v2740_v17, 16  ;;  %v8208_v33 = vpop.eup %5330  ;;  %v2825_v37 = vand.u32 2147483647, %v7796_v14  ;;  %v2794_v41 = vsel %vm8215_vm10, %v8122_v21, %v2790_v52  ;;  %vm8224_vm1 = vmor %vm2821_vm15, %vm2822_vm13  ;;  %v2798_v14 = vor.u32 1.1754944e-38, %v2797_v28  ;;  %v2744_v21 = vmul.f32 %v8174_v26, %v2743_v16  ;;  %v8839_v17 = vld [vmem:[#allocation48_spill] sm:$0xff] }
 0x355   :  { %4816 = vst.msk [vmem:[%s8573_s2 + $0x8] sm:$0x1] %vm4815_vm4, %v2920_v38  ;;  %v2757_v18 = vmul.f32 %v8208_v33, %v8161_v19  ;;  %v2824_v48 = vsel %vm8224_vm1, %v8101_v5, %v2820_v53  ;;  %vm2796_vm3 = vcmp.eq.f32.partialorder %v2795_v1, 8.507059e+37  ;;  %v2828_v49 = vor.u32 1.1754944e-38, %v2827_v62  ;;  %v5361_v5 = vld [vmem:[%s8572_s0 + $0x150] sm:$0xff]  ;;  %v5367_v1 = vld [vmem:[%s8572_s0 + $0x1b8] sm:$0xff] }
 0x356   :  { %v2799_v27 = vsel %vm2796_vm3, %v2798_v14, %v2794_v41  ;;  %vm2826_vm5 = vcmp.eq.f32.partialorder %v2825_v37, 8.507059e+37  ;;  %v2745_v44 = vadd.f32 %v8174_v26, %v2744_v21  ;;  %vm2747_vm6 = vweird.f32 %v8174_v26  ;;  %v5368_v62 = vld [vmem:[%s8572_s0 + $0x198] sm:$0xff] }
 0x357   :  { %v3671_v6 = vpop.trf.xlu0  ;;  %v2829_v12 = vsel %vm2826_vm5, %v2828_v49, %v2824_v48  ;;  %v2758_v45 = vsub.f32 1.0, %v2757_v18  ;;  %v2800_v13 = vmul.f32 %v8836_v23, %v2799_v27  ;;  %v2752_v58 = vand.u32 2147483648, %v8118_v36  ;;  %v5372_v49 = vld [vmem:[%s8572_s0 + $0x1e8] sm:$0xff] }
 0x358   :  { %5037 = vmatmul.msk.f32.vlgmr.msrb.gmra.mxu1 %vm2893_vm2, %v3671_v6  ;;  %v2830_v46 = vmul.f32 %v8837_v11, %v2829_v12  ;;  %vm2746_vm7 = vweird.f32 %v8118_v36  ;;  %v2750_v7 = vand.u32 2147483647, %v8118_v36  ;;  %vm2762_vm11 = vweird.f32 %v8208_v33  ;;  %v5373_v27 = vld [vmem:[%s8572_s0 + $0x1c8] sm:$0xff]  ;;  %v5374_v12 = vld [vmem:[%s8572_s0 + $0x1e0] sm:$0xff] }
 0x359   :  { %4195 = vmatpush.msrb.mxu1 %v5360_v54  ;;  %vm2748_vm8 = vmor %vm2746_vm7, %vm2747_vm6  ;;  %v2759_v10 = vmul.f32 %v8208_v33, %v2758_v45  ;;  %v2753_v56 = vor.u32 1.1754944e-38, %v2752_v58  ;;  %v2767_v24 = vand.u32 2147483648, %v8161_v19  ;;  %vm2761_vm12 = vweird.f32 %v8161_v19  ;;  %v3103_v61 = vpop.f32.mrf.mxu3  ;;  %v5375_v45 = vld [vmem:[%s8572_s0 + $0x1c0] sm:$0xff] }
 0x35a   :  { %v2749_v15 = vsel %vm2748_vm8, %v8174_v26, %v2745_v44  ;;  %vm2751_vm9 = vcmp.eq.f32.partialorder %v2750_v7, 8.507059e+37  ;;  %v2765_v26 = vand.u32 2147483647, %v8161_v19  ;;  %vm2763_vm13 = vmor %vm2761_vm12, %vm2762_vm11  ;;  %4822 = vst.msk [vmem:[%s8573_s2 + $0x38] sm:$0x1] %vm4815_vm4, %v3103_v61  ;;  %v5376_v7 = vld [vmem:[%s8572_s0 + $0x1f8] sm:$0xff] }
 0x35b   :  { %4631 = vxpose.xlu1.b32.start [1/2] (short) (narrow) %v2785_v42, 16  ;;  %4196 = vmatpush.msrb.mxu1 %v5361_v5  ;;  %v2754_v22 = vsel %vm2751_vm9, %v2753_v56, %v2749_v15  ;;  %v2760_v36 = vadd.f32 %v8208_v33, %v2759_v10  ;;  %v2768_v60 = vor.u32 1.1754944e-38, %v2767_v24  ;;  %v5366_v42 = vld [vmem:[%s8572_s0 + $0x1a8] sm:$0xff]  ;;  %v5378_v24 = vld [vmem:[%s8572_s0 + $0x1d8] sm:$0xff] }
 0x35c   :  { %v3161_v32 = vpop.f32.mrf.mxu0  ;;  %4692 = vxpose.xlu0.b32.start [1/2] (short) (narrow) %v2815_v0, 16  ;;  %v2755_v8 = vmul.f32 %v8838_v35, %v2754_v22  ;;  %vm2766_vm14 = vcmp.eq.f32.partialorder %v2765_v26, 8.507059e+37  ;;  %v5370_v0 = vld [vmem:[%s8572_s0 + $0x1b0] sm:$0xff] }
 0x35d   :  { %4823 = vst.msk [vmem:[%s8573_s2 + $0x40] sm:$0xff] %vm139_vm0, %v3161_v32  ;;  %v2764_v34 = vsel %vm2763_vm13, %v8208_v33, %v2760_v36 }
 0x35e   :  { %v2769_v51 = vsel %vm2766_vm14, %v2768_v60, %v2764_v34 }
 0x35f   :  { %v3672_v40 = vpop.trf.xlu0  ;;  %v2770_v20 = vmul.f32 %v8839_v17, %v2769_v51 }
 0x360   :  { %5038 = vmatmul.msk.f32.gmra.mxu1 %vm2893_vm2, %v3672_v40 }
 0x363   :  { %4632 = vxpose.xlu1.b32.end [2/2] (short) (narrow) %v2800_v13, 16 }
 0x364   :  { %v3164_v55 = vpop.f32.mrf.mxu0  ;;  %4693 = vxpose.xlu0.b32.end [2/2] (short) (narrow) %v2830_v46, 16 }
 0x365   :  { %4824 = vst.msk [vmem:[%s8573_s2 + $0x48] sm:$0x1] %vm4815_vm4, %v3164_v55  ;;  %v5377_v55 = vld [vmem:[%s8572_s0 + $0x1f0] sm:$0xff] }
 0x367   :  { %v4037_v39 = vpop.trf.xlu0 }
 0x36c   :  { %v3405_v9 = vpop.f32.mrf.mxu0  ;;  %4570 = vxpose.xlu0.b32.start [1/2] (short) (narrow) %v2755_v8, 16  ;;  %v5379_v8 = vld [vmem:[%s8572_s0 + $0x1d0] sm:$0xff] }
 0x36d   :  { %4831 = vst.msk [vmem:[%s8573_s2 + $0x80] sm:$0xff] %vm139_vm0, %v3405_v9 }
 0x36f   :  { %v4038_v19 = vpop.trf.xlu0 }
 0x374   :  { %v3408_v30 = vpop.f32.mrf.mxu0  ;;  %4571 = vxpose.xlu0.b32.end [2/2] (short) (narrow) %v2770_v20, 16 }
 0x375   :  { %4832 = vst.msk [vmem:[%s8573_s2 + $0x88] sm:$0x1] %vm4815_vm4, %v3408_v30 }
 0x377   :  { %v3854_v25 = vpop.trf.xlu0 }
 0x378   :  { %5043 = vmatmul.msk.f32.vlgmr.msra.gmra.mxu0 %vm2893_vm2, %v3854_v25 }
 0x379   :  { %4378 = vmatpush.msra.mxu0 %v5362_v63 }
 0x37b   :  { %4379 = vmatpush.msra.mxu0 %v5363_v47 }
 0x37c   :  { %v3649_v38 = vpop.f32.mrf.mxu0 }
 0x37d   :  { %4839 = vst.msk [vmem:[%s8573_s2 + $0xc0] sm:$0xff] %vm139_vm0, %v3649_v38 }
 0x37f   :  { %v3855_v50 = vpop.trf.xlu0 }
 0x380   :  { %5044 = vmatmul.msk.f32.gmra.mxu0 %vm2893_vm2, %v3855_v50 }
 0x384   :  { %v3652_v31 = vpop.f32.mrf.mxu0 }
 0x385   :  { %4840 = vst.msk [vmem:[%s8573_s2 + $0xc8] sm:$0x1] %vm4815_vm4, %v3652_v31 }
 0x390   :  { %v3283_v33 = vpop.f32.mrf.mxu2 }
 0x391   :  { %4827 = vst.msk [vmem:[%s8573_s2 + $0x60] sm:$0xff] %vm139_vm0, %v3283_v33 }
 0x39c   :  { %v3286_v59 = vpop.f32.mrf.mxu2 }
 0x39d   :  { %4828 = vst.msk [vmem:[%s8573_s2 + $0x68] sm:$0x1] %vm4815_vm4, %v3286_v59 }
 0x39f   :  { %v3793_v57 = vpop.trf.xlu1 }
 0x3a0   :  { %5041 = vmatmul.msk.f32.vlgmr.msrb.gmra.mxu3 %vm2893_vm2, %v3793_v57 }
 0x3a1   :  { %4317 = vmatpush.msrb.mxu3 %v5364_v4 }
 0x3a3   :  { %4318 = vmatpush.msrb.mxu3 %v5365_v3 }
 0x3a4   :  { %v3344_v16 = vpop.f32.mrf.mxu3 }
 0x3a5   :  { %4829 = vst.msk [vmem:[%s8573_s2 + $0x70] sm:$0xff] %vm139_vm0, %v3344_v16 }
 0x3a7   :  { %v3794_v52 = vpop.trf.xlu1 }
 0x3a8   :  { %5042 = vmatmul.msk.f32.gmra.mxu3 %vm2893_vm2, %v3794_v52 }
 0x3ad   :  { %v3347_v37 = vpop.f32.mrf.mxu3 }
 0x3ae   :  { %4830 = vst.msk [vmem:[%s8573_s2 + $0x78] sm:$0x1] %vm4815_vm4, %v3347_v37 }
 0x3af   :  { %v3976_v28 = vpop.trf.xlu1  ;;  %v3915_v53 = vpop.trf.xlu0 }
 0x3b0   :  { %5045 = vmatmul.msk.f32.vlgmr.msra.gmra.mxu1 %vm2893_vm2, %v3915_v53  ;;  %5047 = vmatmul.msk.f32.vlgmr.msra.gmra.mxu2 %vm2893_vm2, %v3976_v28 }
 0x3b1   :  { %5049 = vmatmul.msk.f32.vlgmr.msra.gmra.mxu3 %vm2893_vm2, %v4037_v39  ;;  %4500 = vmatpush.msra.mxu2 %v5366_v42 }
 0x3b2   :  { %4561 = vmatpush.msra.mxu3 %v5367_v1  ;;  %4439 = vmatpush.msra.mxu1 %v5368_v62 }
 0x3b3   :  { %4501 = vmatpush.msra.mxu2 %v5369_v29 }
 0x3b4   :  { %4562 = vmatpush.msra.mxu3 %v5370_v0  ;;  %4440 = vmatpush.msra.mxu1 %v5371_v43 }
 0x3b5   :  { %v3466_v18 = vpop.f32.mrf.mxu1  ;;  %v3588_v14 = vpop.f32.mrf.mxu3 }
 0x3b6   :  { %4833 = vst.msk [vmem:[%s8573_s2 + $0x90] sm:$0xff] %vm139_vm0, %v3466_v18 }
 0x3b7   :  { %v3977_v32 = vpop.trf.xlu1  ;;  %v3916_v41 = vpop.trf.xlu0  ;;  %4837 = vst.msk [vmem:[%s8573_s2 + $0xb0] sm:$0xff] %vm139_vm0, %v3588_v14 }
 0x3b8   :  { %5046 = vmatmul.msk.f32.gmra.mxu1 %vm2893_vm2, %v3916_v41  ;;  %5048 = vmatmul.msk.f32.gmra.mxu2 %vm2893_vm2, %v3977_v32 }
 0x3b9   :  { %5050 = vmatmul.msk.f32.gmra.mxu3 %vm2893_vm2, %v4038_v19 }
 0x3bd   :  { %v3527_v6 = vpop.f32.mrf.mxu2  ;;  %v3469_v54 = vpop.f32.mrf.mxu1 }
 0x3be   :  { %4835 = vst.msk [vmem:[%s8573_s2 + $0xa0] sm:$0xff] %vm139_vm0, %v3527_v6  ;;  %v3591_v44 = vpop.f32.mrf.mxu3 }
 0x3bf   :  { %v4220_v48 = vpop.trf.xlu0  ;;  %v4098_v21 = vpop.trf.xlu1  ;;  %4834 = vst.msk [vmem:[%s8573_s2 + $0x98] sm:$0x1] %vm4815_vm4, %v3469_v54 }
 0x3c0   :  { %5055 = vmatmul.msk.f32.vlgmr.msrb.gmra.mxu2 %vm2893_vm2, %v4220_v48  ;;  %5051 = vmatmul.msk.f32.vlgmr.msrb.gmra.mxu0 %vm2893_vm2, %v4098_v21  ;;  %4838 = vst.msk [vmem:[%s8573_s2 + $0xb8] sm:$0x1] %vm4815_vm4, %v3591_v44 }
 0x3c1   :  { %4744 = vmatpush.msrb.mxu2 %v5372_v49  ;;  %4622 = vmatpush.msrb.mxu0 %v5373_v27 }
 0x3c3   :  { %4745 = vmatpush.msrb.mxu2 %v5374_v12  ;;  %4623 = vmatpush.msrb.mxu0 %v5375_v45 }
 0x3c5   :  { %v3530_v13 = vpop.f32.mrf.mxu2 }
 0x3c6   :  { %4836 = vst.msk [vmem:[%s8573_s2 + $0xa8] sm:$0x1] %vm4815_vm4, %v3530_v13 }
 0x3c7   :  { %v4221_v5 = vpop.trf.xlu0  ;;  %v4099_v23 = vpop.trf.xlu1 }
 0x3c8   :  { %5056 = vmatmul.msk.f32.gmra.mxu2 %vm2893_vm2, %v4221_v5  ;;  %5052 = vmatmul.msk.f32.gmra.mxu0 %vm2893_vm2, %v4099_v23 }
 0x3cc   :  { %v4403_v34 = vpop.trf.xlu2 }
 0x3cd   :  { %v3771_v46 = vpop.f32.mrf.mxu2 }
 0x3ce   :  { %4843 = vst.msk [vmem:[%s8573_s2 + $0xe0] sm:$0xff] %vm139_vm0, %v3771_v46 }
 0x3cf   :  { %v4464_v58 = vpop.trf.xlu1 }
 0x3d0   :  { %v4281_v11 = vpop.trf.xlu0  ;;  %5063 = vmatmul.msk.f32.vlgmr.msra.gmra.mxu2 %vm2893_vm2, %v4464_v58 }
 0x3d1   :  { %5057 = vmatmul.msk.f32.vlgmr.msrb.gmra.mxu3 %vm2893_vm2, %v4281_v11 }
 0x3d2   :  { %4805 = vmatpush.msrb.mxu3 %v5376_v7 }
 0x3d4   :  { %4806 = vmatpush.msrb.mxu3 %v5377_v55  ;;  %v4404_v51 = vpop.trf.xlu2 }
 0x3d5   :  { %v3774_v40 = vpop.f32.mrf.mxu2  ;;  %v3710_v56 = vpop.f32.mrf.mxu1 }
 0x3d6   :  { %4844 = vst.msk [vmem:[%s8573_s2 + $0xe8] sm:$0x1] %vm4815_vm4, %v3774_v40 }
 0x3d7   :  { %v4465_v15 = vpop.trf.xlu1  ;;  %4841 = vst.msk [vmem:[%s8573_s2 + $0xd0] sm:$0xff] %vm139_vm0, %v3710_v56 }
 0x3d8   :  { %v4282_v10 = vpop.trf.xlu0  ;;  %5064 = vmatmul.msk.f32.gmra.mxu2 %vm2893_vm2, %v4465_v15 }
 0x3d9   :  { %5058 = vmatmul.msk.f32.gmra.mxu3 %vm2893_vm2, %v4282_v10 }
 0x3dd   :  { %v3713_v35 = vpop.f32.mrf.mxu1 }
 0x3de   :  { %4842 = vst.msk [vmem:[%s8573_s2 + $0xd8] sm:$0x1] %vm4815_vm4, %v3713_v35 }
 0x3df   :  { %v4342_v22 = vpop.trf.xlu1 }
 0x3e0   :  { %v4159_v36 = vpop.trf.xlu0  ;;  %5059 = vmatmul.msk.f32.vlgmr.msra.gmra.mxu0 %vm2893_vm2, %v4342_v22 }
 0x3e1   :  { %5053 = vmatmul.msk.f32.vlgmr.msrb.gmra.mxu1 %vm2893_vm2, %v4159_v36 }
 0x3e2   :  { %4683 = vmatpush.msrb.mxu1 %v5378_v24 }
 0x3e4   :  { %4684 = vmatpush.msrb.mxu1 %v5379_v8 }
 0x3e7   :  { %v4343_v26 = vpop.trf.xlu1 }
 0x3e8   :  { %v4160_v9 = vpop.trf.xlu0  ;;  %5060 = vmatmul.msk.f32.gmra.mxu0 %vm2893_vm2, %v4343_v26 }
 0x3e9   :  { %5054 = vmatmul.msk.f32.gmra.mxu1 %vm2893_vm2, %v4160_v9 }
 0x3ef   :  { %v4769_v39 = vpop.trf.xlu1 }
 0x3f0   :  { %v4525_v60 = vpop.trf.xlu0 }
 0x3f1   :  { %5065 = vmatmul.msk.f32.vlgmr.msra.gmra.mxu3 %vm2893_vm2, %v4525_v60  ;;  %5061 = vmatmul.msk.f32.vlgmr.msra.gmra.mxu1 %vm2893_vm2, %v4403_v34 }
 0x3f5   :  { %v3893_v30 = vpop.f32.mrf.mxu0 }
 0x3f6   :  { %4847 = vst.msk [vmem:[%s8573_s2 + $0x100] sm:$0xff] %vm139_vm0, %v3893_v30 }
 0x3f7   :  { %v4770_v17 = vpop.trf.xlu1 }
 0x3f8   :  { %v4526_v20 = vpop.trf.xlu0 }
 0x3f9   :  { %5066 = vmatmul.msk.f32.gmra.mxu3 %vm2893_vm2, %v4526_v20  ;;  %5062 = vmatmul.msk.f32.gmra.mxu1 %vm2893_vm2, %v4404_v51 }
 0x3fd   :  { %v3896_v25 = vpop.f32.mrf.mxu0 }
 0x3fe   :  { %4848 = vst.msk [vmem:[%s8573_s2 + $0x108] sm:$0x1] %vm4815_vm4, %v3896_v25 }
 0x3ff   :  { %v4647_v19 = vpop.trf.xlu1 }
 0x400   :  { %v4708_v38 = vpop.trf.xlu0 }
 0x401   :  { %5071 = vmatmul.msk.f32.vlgmr.msrb.gmra.mxu2 %vm2893_vm2, %v4708_v38  ;;  %5073 = vmatmul.msk.f32.vlgmr.msrb.gmra.mxu3 %vm2893_vm2, %v4769_v39 }
 0x402   :  { %5069 = vmatmul.msk.f32.vlgmr.msrb.gmra.mxu1 %vm2893_vm2, %v4647_v19 }
 0x407   :  { %v4648_v63 = vpop.trf.xlu1 }
 0x408   :  { %v4709_v31 = vpop.trf.xlu0 }
 0x409   :  { %5072 = vmatmul.msk.f32.gmra.mxu2 %vm2893_vm2, %v4709_v31  ;;  %5074 = vmatmul.msk.f32.gmra.mxu3 %vm2893_vm2, %v4770_v17 }
 0x40a   :  { %5070 = vmatmul.msk.f32.gmra.mxu1 %vm2893_vm2, %v4648_v63 }
 0x410   :  { %v4586_v47 = vpop.trf.xlu0 }
 0x411   :  { %5067 = vmatmul.msk.f32.vlgmr.msrb.gmra.mxu0 %vm2893_vm2, %v4586_v47 }
 0x418   :  { %v4587_v50 = vpop.trf.xlu0 }
 0x419   :  { %5068 = vmatmul.msk.f32.gmra.mxu0 %vm2893_vm2, %v4587_v50 }
 0x423   :  { %v3832_v2 = vpop.f32.mrf.mxu3 }
 0x424   :  { %4845 = vst.msk [vmem:[%s8573_s2 + $0xf0] sm:$0xff] %vm139_vm0, %v3832_v2 }
 0x42b   :  { %v3835_v61 = vpop.f32.mrf.mxu3 }
 0x42c   :  { %4846 = vst.msk [vmem:[%s8573_s2 + $0xf8] sm:$0x1] %vm4815_vm4, %v3835_v61 }
 0x42d   :  { %v3954_v57 = vpop.f32.mrf.mxu1 }
 0x42e   :  { %4849 = vst.msk [vmem:[%s8573_s2 + $0x110] sm:$0xff] %vm139_vm0, %v3954_v57 }
 0x433   :  { %v4015_v4 = vpop.f32.mrf.mxu2 }
 0x434   :  { %4851 = vst.msk [vmem:[%s8573_s2 + $0x120] sm:$0xff] %vm139_vm0, %v4015_v4  ;;  %v4076_v3 = vpop.f32.mrf.mxu3 }
 0x435   :  { %4853 = vst.msk [vmem:[%s8573_s2 + $0x130] sm:$0xff] %vm139_vm0, %v4076_v3  ;;  %v3957_v52 = vpop.f32.mrf.mxu1 }
 0x436   :  { %4850 = vst.msk [vmem:[%s8573_s2 + $0x118] sm:$0x1] %vm4815_vm4, %v3957_v52 }
 0x43b   :  { %v4018_v16 = vpop.f32.mrf.mxu2 }
 0x43c   :  { %4852 = vst.msk [vmem:[%s8573_s2 + $0x128] sm:$0x1] %vm4815_vm4, %v4018_v16  ;;  %v4079_v28 = vpop.f32.mrf.mxu3 }
 0x43d   :  { %4854 = vst.msk [vmem:[%s8573_s2 + $0x138] sm:$0x1] %vm4815_vm4, %v4079_v28  ;;  %v4137_v53 = vpop.f32.mrf.mxu0 }
 0x43e   :  { %4855 = vst.msk [vmem:[%s8573_s2 + $0x140] sm:$0xff] %vm139_vm0, %v4137_v53 }
 0x443   :  { %v4259_v33 = vpop.f32.mrf.mxu2 }
 0x444   :  { %4859 = vst.msk [vmem:[%s8573_s2 + $0x160] sm:$0xff] %vm139_vm0, %v4259_v33 }
 0x445   :  { %v4140_v42 = vpop.f32.mrf.mxu0 }
 0x446   :  { %4856 = vst.msk [vmem:[%s8573_s2 + $0x148] sm:$0x1] %vm4815_vm4, %v4140_v42 }
 0x44b   :  { %v4262_v1 = vpop.f32.mrf.mxu2 }
 0x44c   :  { %4860 = vst.msk [vmem:[%s8573_s2 + $0x168] sm:$0x1] %vm4815_vm4, %v4262_v1 }
 0x453   :  { %v4503_v62 = vpop.f32.mrf.mxu2 }
 0x454   :  { %v4320_v29 = vpop.f32.mrf.mxu3  ;;  %4867 = vst.msk [vmem:[%s8573_s2 + $0x1a0] sm:$0xff] %vm139_vm0, %v4503_v62 }
 0x455   :  { %4861 = vst.msk [vmem:[%s8573_s2 + $0x170] sm:$0xff] %vm139_vm0, %v4320_v29 }
 0x45b   :  { %v4506_v0 = vpop.f32.mrf.mxu2 }
 0x45c   :  { %v4323_v43 = vpop.f32.mrf.mxu3  ;;  %4868 = vst.msk [vmem:[%s8573_s2 + $0x1a8] sm:$0x1] %vm4815_vm4, %v4506_v0 }
 0x45d   :  { %4862 = vst.msk [vmem:[%s8573_s2 + $0x178] sm:$0x1] %vm4815_vm4, %v4323_v43  ;;  %v4381_v37 = vpop.f32.mrf.mxu0 }
 0x45e   :  { %v4198_v32 = vpop.f32.mrf.mxu1  ;;  %4863 = vst.msk [vmem:[%s8573_s2 + $0x180] sm:$0xff] %vm139_vm0, %v4381_v37 }
 0x45f   :  { %4857 = vst.msk [vmem:[%s8573_s2 + $0x150] sm:$0xff] %vm139_vm0, %v4198_v32 }
 0x465   :  { %v4384_v41 = vpop.f32.mrf.mxu0 }
 0x466   :  { %v4201_v59 = vpop.f32.mrf.mxu1  ;;  %4864 = vst.msk [vmem:[%s8573_s2 + $0x188] sm:$0x1] %vm4815_vm4, %v4384_v41 }
 0x467   :  { %4858 = vst.msk [vmem:[%s8573_s2 + $0x158] sm:$0x1] %vm4815_vm4, %v4201_v59 }
 0x46e   :  { %v4442_v18 = vpop.f32.mrf.mxu1 }
 0x46f   :  { %4865 = vst.msk [vmem:[%s8573_s2 + $0x190] sm:$0xff] %vm139_vm0, %v4442_v18 }
 0x474   :  { %v4564_v14 = vpop.f32.mrf.mxu3 }
 0x475   :  { %4869 = vst.msk [vmem:[%s8573_s2 + $0x1b0] sm:$0xff] %vm139_vm0, %v4564_v14 }
 0x476   :  { %v4445_v48 = vpop.f32.mrf.mxu1 }
 0x477   :  { %4866 = vst.msk [vmem:[%s8573_s2 + $0x198] sm:$0x1] %vm4815_vm4, %v4445_v48 }
 0x47c   :  { %v4567_v21 = vpop.f32.mrf.mxu3 }
 0x47d   :  { %4870 = vst.msk [vmem:[%s8573_s2 + $0x1b8] sm:$0x1] %vm4815_vm4, %v4567_v21 }
 0x47f   :  { %v4686_v6 = vpop.f32.mrf.mxu1 }
 0x480   :  { %4873 = vst.msk [vmem:[%s8573_s2 + $0x1d0] sm:$0xff] %vm139_vm0, %v4686_v6 }
 0x484   :  { %v4747_v49 = vpop.f32.mrf.mxu2  ;;  %v4808_v27 = vpop.f32.mrf.mxu3 }
 0x485   :  { %4875 = vst.msk [vmem:[%s8573_s2 + $0x1e0] sm:$0xff] %vm139_vm0, %v4747_v49 }
 0x486   :  { %4877 = vst.msk [vmem:[%s8573_s2 + $0x1f0] sm:$0xff] %vm139_vm0, %v4808_v27 }
 0x487   :  { %v4689_v54 = vpop.f32.mrf.mxu1 }
 0x488   :  { %4874 = vst.msk [vmem:[%s8573_s2 + $0x1d8] sm:$0x1] %vm4815_vm4, %v4689_v54 }
 0x48c   :  { %v4750_v12 = vpop.f32.mrf.mxu2  ;;  %v4811_v45 = vpop.f32.mrf.mxu3 }
 0x48d   :  { %4876 = vst.msk [vmem:[%s8573_s2 + $0x1e8] sm:$0x1] %vm4815_vm4, %v4750_v12 }
 0x48e   :  { %4878 = vst.msk [vmem:[%s8573_s2 + $0x1f8] sm:$0x1] %vm4815_vm4, %v4811_v45  ;;  %v4625_v44 = vpop.f32.mrf.mxu0 }
 0x48f   :  { %4871 = vst.msk [vmem:[%s8573_s2 + $0x1c0] sm:$0xff] %vm139_vm0, %v4625_v44 }
 0x496   :  { %v4628_v5 = vpop.f32.mrf.mxu0 }
 0x497   :  { %4872 = vst.msk [vmem:[%s8573_s2 + $0x1c8] sm:$0x1] %vm4815_vm4, %v4628_v5 }

</bundles_post_ra>
